<compile_context>
chip_gen: v5e
topology: v5e:2x2
jax: 0.10.0
libtpu: 0.0.40
codegen_flags: <defaults>
</compile_context>

<pallas_src>
import jax
import jax.numpy as jnp
from jax.experimental import pallas as pl
from jax.experimental.pallas import tpu as pltpu

# ----------------------------- configuration --------------------------------
C_IN = 3
PATCH = 8
HZ = WZ = 16                  # template size
HX = WX = 32                  # search size
D = 32                        # hidden dim
D_MLP = 64
N_LAYERS = 2
FEAT_SZ = HX // PATCH         # 4   (box_head.feat_sz)
FEAT_LEN = FEAT_SZ * FEAT_SZ  # 16  (feat_len_s)
NZ = (HZ // PATCH) * (WZ // PATCH)   # 4 template tokens
NX = FEAT_LEN                        # 16 search tokens
N_TOK = NZ + NX                      # 20
K_PATCH = PATCH * PATCH * C_IN       # 192
D_HID = D // 2                       # 16 (head tower hidden)

_BLOCK_KEYS = ('ln1_g', 'ln1_b', 'w_qkv', 'b_qkv', 'wo', 'bo',
               'ln2_g', 'ln2_b', 'w1', 'b1', 'w2', 'b2')
_HEAD_KEYS = ('w1_all', 'b1_all', 'w2_bd', 'b2_all')


# ------------------------------- fused kernel --------------------------------
def _fused_kernel(*refs):
    n_blk = N_LAYERS * len(_BLOCK_KEYS)
    (patches_ref, pos_ref, mask_ref, valid_ref, coords_ref,
     pe_w_ref, pe_b_ref) = refs[:7]
    blk_refs = refs[7:7 + n_blk]
    hw1_ref, hb1_ref, hw2_ref, hb2_ref = refs[7 + n_blk:7 + n_blk + 4]
    tok_ref, halt_ref, maps_ref, bbox_ref = refs[7 + n_blk + 4:]

    bn = patches_ref.shape[0]          # B * N_TOK rows (batch folded on sublanes)
    nb = valid_ref.shape[1]            # batch size (static)

    # ---- patch embed + positional embedding (all batches at once) ----
    x = jnp.dot(patches_ref[...], pe_w_ref[...],
                preferred_element_type=jnp.float32) + pe_b_ref[...]
    x = x + pos_ref[...]

    same_batch = mask_ref[...] > 0.5   # (bn, bn) block-diagonal batch mask
    inv_sqrt_d = 1.0 / (D ** 0.5)

    halts = []
    for l in range(N_LAYERS):
        w = dict(zip(_BLOCK_KEYS,
                     blk_refs[l * len(_BLOCK_KEYS):(l + 1) * len(_BLOCK_KEYS)]))
        # --- LayerNorm 1 ---
        mu = jnp.mean(x, axis=-1, keepdims=True)
        var = jnp.mean(jnp.square(x - mu), axis=-1, keepdims=True)
        xn = (x - mu) * jax.lax.rsqrt(var + 1e-6) * w['ln1_g'][...] + w['ln1_b'][...]
        # --- fused QKV (single (D,3D) dot), single-head attention ---
        qkv = jnp.dot(xn, w['w_qkv'][...],
                      preferred_element_type=jnp.float32) + w['b_qkv'][...]
        q = qkv[:, 0:D]
        k = qkv[:, D:2 * D]
        v = qkv[:, 2 * D:3 * D]
        att = jax.lax.dot_general(q, k, (((1,), (1,)), ((), ())),
                                  preferred_element_type=jnp.float32) * inv_sqrt_d
        att = jnp.where(same_batch, att, -1e30)       # no cross-batch attention
        att = att - jnp.max(att, axis=-1, keepdims=True)
        att = jnp.exp(att)
        att = att / jnp.sum(att, axis=-1, keepdims=True)
        o_att = jnp.dot(att, v, preferred_element_type=jnp.float32)
        x = x + jnp.dot(o_att, w['wo'][...],
                        preferred_element_type=jnp.float32) + w['bo'][...]
        # --- LayerNorm 2 + MLP ---
        mu2 = jnp.mean(x, axis=-1, keepdims=True)
        var2 = jnp.mean(jnp.square(x - mu2), axis=-1, keepdims=True)
        yn = (x - mu2) * jax.lax.rsqrt(var2 + 1e-6) * w['ln2_g'][...] + w['ln2_b'][...]
        h = jnp.dot(yn, w['w1'][...], preferred_element_type=jnp.float32) + w['b1'][...]
        h = jax.nn.gelu(h, approximate=True)  # note: PyTorch default GELU is erf form
        x = x + jnp.dot(h, w['w2'][...], preferred_element_type=jnp.float32) + w['b2'][...]
        # A-ViT style halting score from the first feature channel of each token.
        halts.append(jax.nn.sigmoid(x[:, 0:1]))

    tok_ref[...] = x
    halt_ref[...] = jnp.concatenate(halts, axis=1)    # (bn, N_LAYERS)

    # ---- box head: fused towers, run on all rows (non-search rows discarded) ----
    hh = jnp.maximum(
        jnp.dot(x, hw1_ref[...], preferred_element_type=jnp.float32) + hb1_ref[...],
        0.0)
    out5 = jnp.dot(hh, hw2_ref[...], preferred_element_type=jnp.float32) + hb2_ref[...]
    lane = jax.lax.broadcasted_iota(jnp.int32, out5.shape, 1)
    apply_sig = (lane == 0) | (lane >= 3)             # sigmoid on score & size cols
    maps = jnp.where(apply_sig, jax.nn.sigmoid(out5), out5)
    maps_ref[...] = maps                              # (bn, 5) packed output

    score = maps[:, 0:1]
    off = maps[:, 1:3]
    size = maps[:, 3:5]
    rows = jax.lax.broadcasted_iota(jnp.int32, (bn, 1), 0)
    coords = coords_ref[...]
    col_x = coords[:, 0:1]
    col_y = coords[:, 1:2]
    valid_all = valid_ref[...]

    # cal_bbox: per-batch argmax over search-token scores, gather offset/size.
    boxes = []
    for b in range(nb):
        valid = valid_all[:, b:b + 1] > 0.5
        s_b = jnp.where(valid, score, -1.0)
        smax = jnp.max(s_b, axis=0, keepdims=True)
        first = jnp.min(jnp.where(s_b >= smax, rows, jnp.int32(bn)),
                        axis=0, keepdims=True)        # first argmax (torch tie-break)
        sel = (rows == first).astype(jnp.float32)     # (bn,1) one-hot
        x_sel = jnp.sum(col_x * sel, axis=0, keepdims=True)
        y_sel = jnp.sum(col_y * sel, axis=0, keepdims=True)
        off_sel = jnp.sum(off * sel, axis=0, keepdims=True)     # (1,2)
        size_sel = jnp.sum(size * sel, axis=0, keepdims=True)   # (1,2)
        cx = (x_sel + off_sel[:, 0:1]) * (1.0 / FEAT_SZ)
        cy = (y_sel + off_sel[:, 1:2]) * (1.0 / FEAT_SZ)
        boxes.append(jnp.concatenate([cx, cy, size_sel], axis=1))  # (1,4)
    bbox_ref[...] = jnp.concatenate(boxes, axis=0)    # (B,4)


# ------------------------------ pallas wrapper --------------------------------
def _fused_forward(patches, pos_rows, attn_mask, valid, coords, params):
    inputs = [patches, pos_rows, attn_mask, valid, coords,
              params['pe_w'], params['pe_b']]
    for blk in params['blocks']:
        inputs.extend(blk[k] for k in _BLOCK_KEYS)
    inputs.extend(params['head'][k] for k in _HEAD_KEYS)

    bn = patches.shape[0]
    nb = valid.shape[1]
    vmem = pl.BlockSpec(memory_space=pltpu.MemorySpace.VMEM)
    out_shape = (jax.ShapeDtypeStruct((bn, D), jnp.float32),
                 jax.ShapeDtypeStruct((bn, N_LAYERS), jnp.float32),
                 jax.ShapeDtypeStruct((bn, 5), jnp.float32),
                 jax.ShapeDtypeStruct((nb, 4), jnp.float32))
    return pl.pallas_call(
        _fused_kernel,
        out_shape=out_shape,
        in_specs=[vmem] * len(inputs),
        out_specs=(vmem, vmem, vmem, vmem),
    )(*inputs)


# --------------------------------- glue --------------------------------------
def patchify(img_nchw, p):
    B, C, H, W = img_nchw.shape
    x = jnp.transpose(img_nchw, (0, 2, 3, 1))                       # NHWC
    x = x.reshape(B, H // p, p, W // p, p, C)
    x = jnp.transpose(x, (0, 1, 3, 2, 4, 5))
    return x.reshape(B, (H // p) * (W // p), p * p * C)


def abavitrack_forward(params, template, search):
    B = template.shape[0]
    bn = B * N_TOK

    z_p = patchify(template, PATCH)                                 # (B, NZ, K)
    x_p = patchify(search, PATCH)                                   # (B, NX, K)
    patches = jnp.concatenate([z_p, x_p], axis=1).reshape(bn, K_PATCH)
    pos_rows = jnp.broadcast_to(params['pos'], (B, N_TOK, D)).reshape(bn, D)

    # Constant index helpers (baked in by XLA under jit; keeps non-power-of-2
    # integer division out of the kernel).
    batch_ids = jnp.repeat(jnp.arange(B, dtype=jnp.int32), N_TOK)   # (bn,)
    attn_mask = (batch_ids[:, None] == batch_ids[None, :]).astype(jnp.float32)
    tok_idx = jnp.tile(jnp.arange(N_TOK, dtype=jnp.int32), B)       # (bn,)
    is_search = tok_idx >= NZ
    valid = (is_search[:, None]
             & (batch_ids[:, None] == jnp.arange(B, dtype=jnp.int32)[None, :])
             ).astype(jnp.float32)                                  # (bn, B)
    sidx = jnp.maximum(tok_idx - NZ, 0)
    coords = jnp.stack([sidx % FEAT_SZ, sidx // FEAT_SZ],
                       axis=1).astype(jnp.float32)                  # (bn, 2)

    tok, halt, maps, bbox = _fused_forward(patches, pos_rows, attn_mask,
                                           valid, coords, params)

    feat = tok.reshape(B, N_TOK, D)
    halt = halt.reshape(B, N_TOK, N_LAYERS)
    halts = [halt[:, :, l] for l in range(N_LAYERS)]
    halting_score_layer = [jnp.mean(h) for h in halts]

    # A-ViT halting bookkeeping (plain JAX; see TODO at top)
    rho_token = sum(halts)                                          # (B, N)
    layer_mass = jnp.stack(halting_score_layer)                     # (L,)
    halting_distr = layer_mass / (jnp.sum(layer_mass) + 1e-8)
    distr_target = params['distr_target']
    kl_metric = jnp.sum(halting_distr *
                        (jnp.log(halting_distr + 1e-8) - jnp.log(distr_target + 1e-8)))
    rho_token_weight = jnp.ones_like(rho_token)

    # ---- forward_head maps back to PyTorch NCHW convention ----
    maps = maps.reshape(B, N_TOK, 5)[:, NZ:, :].reshape(B, FEAT_SZ, FEAT_SZ, 5)
    score_map = jnp.transpose(maps[..., 0:1], (0, 3, 1, 2))         # (B,1,fs,fs)
    offset_map = jnp.transpose(maps[..., 1:3], (0, 3, 1, 2))        # (B,2,fs,fs)
    size_map = jnp.transpose(maps[..., 3:5], (0, 3, 1, 2))          # (B,2,fs,fs)
    pred_boxes = bbox.reshape(B, 1, 4)                              # (bs, Nq=1, 4)

    return {
        'pred_boxes': pred_boxes,
        'score_map': score_map,
        'size_map': size_map,
        'offset_map': offset_map,
        'backbone_feat': feat,
        'rho_token': rho_token,
        'halting_score_layer': halting_score_layer,
        'distr_target': distr_target,
        'kl_metric': kl_metric,
        'rho_token_weight': rho_token_weight,
    }


# ----------------------------- parameter init --------------------------------
def init_params(key):
    keys = jax.random.split(key, 32)
    it = iter(keys)

    def w(shape, scale=0.02):
        return (scale * jax.random.normal(next(it), shape)).astype(jnp.float32)

    def zeros(shape):
        return jnp.zeros(shape, jnp.float32)

    params = {
        'pe_w': w((K_PATCH, D)),
        'pe_b': zeros((1, D)),
        'pos': w((1, N_TOK, D)),
        'blocks': [],
    }
    for _ in range(N_LAYERS):
        wq, wk, wv = w((D, D)), w((D, D)), w((D, D))
        params['blocks'].append({
            'ln1_g': jnp.ones((1, D), jnp.float32), 'ln1_b': zeros((1, D)),
            'w_qkv': jnp.concatenate([wq, wk, wv], axis=1),          # (D, 3D)
            'b_qkv': zeros((1, 3 * D)),
            'wo': w((D, D)), 'bo': zeros((1, D)),
            'ln2_g': jnp.ones((1, D), jnp.float32), 'ln2_b': zeros((1, D)),
            'w1': w((D, D_MLP)), 'b1': zeros((1, D_MLP)),
            'w2': w((D_MLP, D)), 'b2': zeros((1, D)),
        })
    # Box head: fused first layer + block-diagonal second layer
    wc1, wo1, ws1 = w((D, D_HID)), w((D, D_HID)), w((D, D_HID))
    wc2, wo2, ws2 = w((D_HID, 1)), w((D_HID, 2)), w((D_HID, 2))
    w2_bd = jnp.zeros((3 * D_HID, 5), jnp.float32)
    w2_bd = w2_bd.at[0:D_HID, 0:1].set(wc2)
    w2_bd = w2_bd.at[D_HID:2 * D_HID, 1:3].set(wo2)
    w2_bd = w2_bd.at[2 * D_HID:3 * D_HID, 3:5].set(ws2)
    params['head'] = {
        'w1_all': jnp.concatenate([wc1, wo1, ws1], axis=1),          # (D, 3*D_HID)
        'b1_all': zeros((1, 3 * D_HID)),
        'w2_bd': w2_bd,                                              # (3*D_HID, 5)
        'b2_all': zeros((1, 5)),
    }
    q = 0.5
    t = jnp.array([q * (1 - q) ** i for i in range(N_LAYERS)], jnp.float32)
    params['distr_target'] = t / jnp.sum(t)
    return params


# --------------------------------- main ---------------------------------------
if __name__ == "__main__":
    key = jax.random.PRNGKey(0)
    k_p, k_t, k_s = jax.random.split(key, 3)
    params = init_params(k_p)
    template = jax.random.normal(k_t, (2, C_IN, HZ, WZ), jnp.float32)   # NCHW
    search = jax.random.normal(k_s, (2, C_IN, HX, WX), jnp.float32)     # NCHW

    fwd = jax.jit(abavitrack_forward)
    out = fwd(params, template, search)
    out = jax.block_until_ready(out)

    assert out['pred_boxes'].shape == (2, 1, 4)
    assert out['score_map'].shape == (2, 1, FEAT_SZ, FEAT_SZ)
    assert out['size_map'].shape == (2, 2, FEAT_SZ, FEAT_SZ)
    assert out['offset_map'].shape == (2, 2, FEAT_SZ, FEAT_SZ)
    assert out['backbone_feat'].shape == (2, N_TOK, D)
    assert out['rho_token'].shape == (2, N_TOK)
    print("KERNEL_OK")
</pallas_src>

<mosaic_0001>
module attributes {stable_mosaic.version = 11 : i64} {
  func.func @_fused_kernel(%arg0: memref<40x192xf32, #tpu.memory_space<vmem>>, %arg1: memref<40x32xf32, #tpu.memory_space<vmem>>, %arg2: memref<40x40xf32, #tpu.memory_space<vmem>>, %arg3: memref<40x2xf32, #tpu.memory_space<vmem>>, %arg4: memref<40x2xf32, #tpu.memory_space<vmem>>, %arg5: memref<192x32xf32, #tpu.memory_space<vmem>>, %arg6: memref<1x32xf32, #tpu.memory_space<vmem>>, %arg7: memref<1x32xf32, #tpu.memory_space<vmem>>, %arg8: memref<1x32xf32, #tpu.memory_space<vmem>>, %arg9: memref<32x96xf32, #tpu.memory_space<vmem>>, %arg10: memref<1x96xf32, #tpu.memory_space<vmem>>, %arg11: memref<32x32xf32, #tpu.memory_space<vmem>>, %arg12: memref<1x32xf32, #tpu.memory_space<vmem>>, %arg13: memref<1x32xf32, #tpu.memory_space<vmem>>, %arg14: memref<1x32xf32, #tpu.memory_space<vmem>>, %arg15: memref<32x64xf32, #tpu.memory_space<vmem>>, %arg16: memref<1x64xf32, #tpu.memory_space<vmem>>, %arg17: memref<64x32xf32, #tpu.memory_space<vmem>>, %arg18: memref<1x32xf32, #tpu.memory_space<vmem>>, %arg19: memref<1x32xf32, #tpu.memory_space<vmem>>, %arg20: memref<1x32xf32, #tpu.memory_space<vmem>>, %arg21: memref<32x96xf32, #tpu.memory_space<vmem>>, %arg22: memref<1x96xf32, #tpu.memory_space<vmem>>, %arg23: memref<32x32xf32, #tpu.memory_space<vmem>>, %arg24: memref<1x32xf32, #tpu.memory_space<vmem>>, %arg25: memref<1x32xf32, #tpu.memory_space<vmem>>, %arg26: memref<1x32xf32, #tpu.memory_space<vmem>>, %arg27: memref<32x64xf32, #tpu.memory_space<vmem>>, %arg28: memref<1x64xf32, #tpu.memory_space<vmem>>, %arg29: memref<64x32xf32, #tpu.memory_space<vmem>>, %arg30: memref<1x32xf32, #tpu.memory_space<vmem>>, %arg31: memref<32x48xf32, #tpu.memory_space<vmem>>, %arg32: memref<1x48xf32, #tpu.memory_space<vmem>>, %arg33: memref<48x5xf32, #tpu.memory_space<vmem>>, %arg34: memref<1x5xf32, #tpu.memory_space<vmem>>, %arg35: memref<40x32xf32, #tpu.memory_space<vmem>>, %arg36: memref<40x2xf32, #tpu.memory_space<vmem>>, %arg37: memref<40x5xf32, #tpu.memory_space<vmem>>, %arg38: memref<2x4xf32, #tpu.memory_space<vmem>>) attributes {dimension_semantics = [], scalar_prefetch = 0 : i64, scratch_operands = 0 : i64, tpu.core_type = #tpu.core_type<tc>} {
    %c0 = arith.constant 0 : index
    %c0_0 = arith.constant 0 : index
    %0 = vector.load %arg0[%c0, %c0_0] : memref<40x192xf32, #tpu.memory_space<vmem>>, vector<40x192xf32>
    %c0_1 = arith.constant 0 : index
    %c0_2 = arith.constant 0 : index
    %1 = vector.load %arg5[%c0_1, %c0_2] : memref<192x32xf32, #tpu.memory_space<vmem>>, vector<192x32xf32>
    %cst = arith.constant dense<0.000000e+00> : vector<40x32xf32>
    %2 = tpu.matmul %0, %1, %cst {dimension_numbers = #tpu.dot_dimension_numbers<[1], [0], [0], [1], [0, 0, 1, 1], [], []>} : vector<40x192xf32>, vector<192x32xf32>, vector<40x32xf32> -> vector<40x32xf32>
    %c0_3 = arith.constant 0 : index
    %c0_4 = arith.constant 0 : index
    %3 = vector.load %arg6[%c0_3, %c0_4] : memref<1x32xf32, #tpu.memory_space<vmem>>, vector<1x32xf32>
    %4 = vector.broadcast %3 : vector<1x32xf32> to vector<40x32xf32>
    %5 = arith.addf %2, %4 : vector<40x32xf32>
    %c0_5 = arith.constant 0 : index
    %c0_6 = arith.constant 0 : index
    %6 = vector.load %arg1[%c0_5, %c0_6] : memref<40x32xf32, #tpu.memory_space<vmem>>, vector<40x32xf32>
    %7 = arith.addf %5, %6 : vector<40x32xf32>
    %c0_7 = arith.constant 0 : index
    %c0_8 = arith.constant 0 : index
    %8 = vector.load %arg2[%c0_7, %c0_8] : memref<40x40xf32, #tpu.memory_space<vmem>>, vector<40x40xf32>
    %cst_9 = arith.constant 5.000000e-01 : f32
    %9 = vector.broadcast %cst_9 : f32 to vector<40x40xf32>
    %10 = arith.cmpf ogt, %8, %9 : vector<40x40xf32>
    %cst_10 = arith.constant dense<0.000000e+00> : vector<40xf32>
    %11 = vector.multi_reduction <add>, %7, %cst_10 [1] : vector<40x32xf32> to vector<40xf32>
    %12 = vector.shape_cast %11 : vector<40xf32> to vector<40x1xf32>
    %cst_11 = arith.constant 3.200000e+01 : f32
    %13 = vector.broadcast %cst_11 : f32 to vector<40x1xf32>
    %14 = arith.divf %12, %13 : vector<40x1xf32>
    %15 = vector.broadcast %14 : vector<40x1xf32> to vector<40x32xf32>
    %16 = arith.subf %7, %15 : vector<40x32xf32>
    %17 = arith.mulf %16, %16 : vector<40x32xf32>
    %cst_12 = arith.constant dense<0.000000e+00> : vector<40xf32>
    %18 = vector.multi_reduction <add>, %17, %cst_12 [1] : vector<40x32xf32> to vector<40xf32>
    %19 = vector.shape_cast %18 : vector<40xf32> to vector<40x1xf32>
    %cst_13 = arith.constant 3.200000e+01 : f32
    %20 = vector.broadcast %cst_13 : f32 to vector<40x1xf32>
    %21 = arith.divf %19, %20 : vector<40x1xf32>
    %22 = vector.broadcast %14 : vector<40x1xf32> to vector<40x32xf32>
    %23 = arith.subf %7, %22 : vector<40x32xf32>
    %cst_14 = arith.constant 9.99999997E-7 : f32
    %24 = vector.broadcast %cst_14 : f32 to vector<40x1xf32>
    %25 = arith.addf %21, %24 : vector<40x1xf32>
    %26 = math.rsqrt %25 : vector<40x1xf32>
    %27 = vector.broadcast %26 : vector<40x1xf32> to vector<40x32xf32>
    %28 = arith.mulf %23, %27 : vector<40x32xf32>
    %c0_15 = arith.constant 0 : index
    %c0_16 = arith.constant 0 : index
    %29 = vector.load %arg7[%c0_15, %c0_16] : memref<1x32xf32, #tpu.memory_space<vmem>>, vector<1x32xf32>
    %30 = vector.broadcast %29 : vector<1x32xf32> to vector<40x32xf32>
    %31 = arith.mulf %28, %30 : vector<40x32xf32>
    %c0_17 = arith.constant 0 : index
    %c0_18 = arith.constant 0 : index
    %32 = vector.load %arg8[%c0_17, %c0_18] : memref<1x32xf32, #tpu.memory_space<vmem>>, vector<1x32xf32>
    %33 = vector.broadcast %32 : vector<1x32xf32> to vector<40x32xf32>
    %34 = arith.addf %31, %33 : vector<40x32xf32>
    %c0_19 = arith.constant 0 : index
    %c0_20 = arith.constant 0 : index
    %35 = vector.load %arg9[%c0_19, %c0_20] : memref<32x96xf32, #tpu.memory_space<vmem>>, vector<32x96xf32>
    %cst_21 = arith.constant dense<0.000000e+00> : vector<40x96xf32>
    %36 = tpu.matmul %34, %35, %cst_21 {dimension_numbers = #tpu.dot_dimension_numbers<[1], [0], [0], [1], [0, 0, 1, 1], [], []>} : vector<40x32xf32>, vector<32x96xf32>, vector<40x96xf32> -> vector<40x96xf32>
    %c0_22 = arith.constant 0 : index
    %c0_23 = arith.constant 0 : index
    %37 = vector.load %arg10[%c0_22, %c0_23] : memref<1x96xf32, #tpu.memory_space<vmem>>, vector<1x96xf32>
    %38 = vector.broadcast %37 : vector<1x96xf32> to vector<40x96xf32>
    %39 = arith.addf %36, %38 : vector<40x96xf32>
    %40 = vector.extract_strided_slice %39 {offsets = [0, 0], sizes = [40, 32], strides = [1, 1]} : vector<40x96xf32> to vector<40x32xf32>
    %41 = vector.extract_strided_slice %39 {offsets = [0, 32], sizes = [40, 32], strides = [1, 1]} : vector<40x96xf32> to vector<40x32xf32>
    %42 = vector.extract_strided_slice %39 {offsets = [0, 64], sizes = [40, 32], strides = [1, 1]} : vector<40x96xf32> to vector<40x32xf32>
    %cst_24 = arith.constant dense<0.000000e+00> : vector<40x40xf32>
    %43 = tpu.matmul %40, %41, %cst_24 {dimension_numbers = #tpu.dot_dimension_numbers<[1], [1], [0], [0], [0, 0, 1, 0], [], []>} : vector<40x32xf32>, vector<40x32xf32>, vector<40x40xf32> -> vector<40x40xf32>
    %cst_25 = arith.constant 0.176776692 : f32
    %44 = vector.broadcast %cst_25 : f32 to vector<40x40xf32>
    %45 = arith.mulf %43, %44 : vector<40x40xf32>
    %cst_26 = arith.constant -1.000000e+30 : f32
    %46 = vector.broadcast %cst_26 : f32 to vector<40x40xf32>
    %47 = arith.select %10, %45, %46 : vector<40x40xi1>, vector<40x40xf32>
    %cst_27 = arith.constant dense<0xFF800000> : vector<40xf32>
    %48 = vector.multi_reduction <maximumf>, %47, %cst_27 [1] : vector<40x40xf32> to vector<40xf32>
    %49 = vector.shape_cast %48 : vector<40xf32> to vector<40x1xf32>
    %50 = vector.broadcast %49 : vector<40x1xf32> to vector<40x40xf32>
    %51 = arith.subf %47, %50 : vector<40x40xf32>
    %52 = math.exp %51 : vector<40x40xf32>
    %cst_28 = arith.constant dense<0.000000e+00> : vector<40xf32>
    %53 = vector.multi_reduction <add>, %52, %cst_28 [1] : vector<40x40xf32> to vector<40xf32>
    %54 = vector.shape_cast %53 : vector<40xf32> to vector<40x1xf32>
    %55 = vector.broadcast %54 : vector<40x1xf32> to vector<40x40xf32>
    %56 = arith.divf %52, %55 : vector<40x40xf32>
    %cst_29 = arith.constant dense<0.000000e+00> : vector<40x32xf32>
    %57 = tpu.matmul %56, %42, %cst_29 {dimension_numbers = #tpu.dot_dimension_numbers<[1], [0], [0], [1], [0, 0, 1, 1], [], []>} : vector<40x40xf32>, vector<40x32xf32>, vector<40x32xf32> -> vector<40x32xf32>
    %c0_30 = arith.constant 0 : index
    %c0_31 = arith.constant 0 : index
    %58 = vector.load %arg11[%c0_30, %c0_31] : memref<32x32xf32, #tpu.memory_space<vmem>>, vector<32x32xf32>
    %cst_32 = arith.constant dense<0.000000e+00> : vector<40x32xf32>
    %59 = tpu.matmul %57, %58, %cst_32 {dimension_numbers = #tpu.dot_dimension_numbers<[1], [0], [0], [1], [0, 0, 1, 1], [], []>} : vector<40x32xf32>, vector<32x32xf32>, vector<40x32xf32> -> vector<40x32xf32>
    %60 = arith.addf %7, %59 : vector<40x32xf32>
    %c0_33 = arith.constant 0 : index
    %c0_34 = arith.constant 0 : index
    %61 = vector.load %arg12[%c0_33, %c0_34] : memref<1x32xf32, #tpu.memory_space<vmem>>, vector<1x32xf32>
    %62 = vector.broadcast %61 : vector<1x32xf32> to vector<40x32xf32>
    %63 = arith.addf %60, %62 : vector<40x32xf32>
    %cst_35 = arith.constant dense<0.000000e+00> : vector<40xf32>
    %64 = vector.multi_reduction <add>, %63, %cst_35 [1] : vector<40x32xf32> to vector<40xf32>
    %65 = vector.shape_cast %64 : vector<40xf32> to vector<40x1xf32>
    %cst_36 = arith.constant 3.200000e+01 : f32
    %66 = vector.broadcast %cst_36 : f32 to vector<40x1xf32>
    %67 = arith.divf %65, %66 : vector<40x1xf32>
    %68 = vector.broadcast %67 : vector<40x1xf32> to vector<40x32xf32>
    %69 = arith.subf %63, %68 : vector<40x32xf32>
    %70 = arith.mulf %69, %69 : vector<40x32xf32>
    %cst_37 = arith.constant dense<0.000000e+00> : vector<40xf32>
    %71 = vector.multi_reduction <add>, %70, %cst_37 [1] : vector<40x32xf32> to vector<40xf32>
    %72 = vector.shape_cast %71 : vector<40xf32> to vector<40x1xf32>
    %cst_38 = arith.constant 3.200000e+01 : f32
    %73 = vector.broadcast %cst_38 : f32 to vector<40x1xf32>
    %74 = arith.divf %72, %73 : vector<40x1xf32>
    %75 = vector.broadcast %67 : vector<40x1xf32> to vector<40x32xf32>
    %76 = arith.subf %63, %75 : vector<40x32xf32>
    %cst_39 = arith.constant 9.99999997E-7 : f32
    %77 = vector.broadcast %cst_39 : f32 to vector<40x1xf32>
    %78 = arith.addf %74, %77 : vector<40x1xf32>
    %79 = math.rsqrt %78 : vector<40x1xf32>
    %80 = vector.broadcast %79 : vector<40x1xf32> to vector<40x32xf32>
    %81 = arith.mulf %76, %80 : vector<40x32xf32>
    %c0_40 = arith.constant 0 : index
    %c0_41 = arith.constant 0 : index
    %82 = vector.load %arg13[%c0_40, %c0_41] : memref<1x32xf32, #tpu.memory_space<vmem>>, vector<1x32xf32>
    %83 = vector.broadcast %82 : vector<1x32xf32> to vector<40x32xf32>
    %84 = arith.mulf %81, %83 : vector<40x32xf32>
    %c0_42 = arith.constant 0 : index
    %c0_43 = arith.constant 0 : index
    %85 = vector.load %arg14[%c0_42, %c0_43] : memref<1x32xf32, #tpu.memory_space<vmem>>, vector<1x32xf32>
    %86 = vector.broadcast %85 : vector<1x32xf32> to vector<40x32xf32>
    %87 = arith.addf %84, %86 : vector<40x32xf32>
    %c0_44 = arith.constant 0 : index
    %c0_45 = arith.constant 0 : index
    %88 = vector.load %arg15[%c0_44, %c0_45] : memref<32x64xf32, #tpu.memory_space<vmem>>, vector<32x64xf32>
    %cst_46 = arith.constant dense<0.000000e+00> : vector<40x64xf32>
    %89 = tpu.matmul %87, %88, %cst_46 {dimension_numbers = #tpu.dot_dimension_numbers<[1], [0], [0], [1], [0, 0, 1, 1], [], []>} : vector<40x32xf32>, vector<32x64xf32>, vector<40x64xf32> -> vector<40x64xf32>
    %c0_47 = arith.constant 0 : index
    %c0_48 = arith.constant 0 : index
    %90 = vector.load %arg16[%c0_47, %c0_48] : memref<1x64xf32, #tpu.memory_space<vmem>>, vector<1x64xf32>
    %91 = vector.broadcast %90 : vector<1x64xf32> to vector<40x64xf32>
    %92 = arith.addf %89, %91 : vector<40x64xf32>
    %93 = arith.mulf %92, %92 : vector<40x64xf32>
    %94 = arith.mulf %92, %93 : vector<40x64xf32>
    %cst_49 = arith.constant 4.471500e-02 : f32
    %95 = vector.broadcast %cst_49 : f32 to vector<40x64xf32>
    %96 = arith.mulf %95, %94 : vector<40x64xf32>
    %97 = arith.addf %92, %96 : vector<40x64xf32>
    %cst_50 = arith.constant 0.797884583 : f32
    %98 = vector.broadcast %cst_50 : f32 to vector<40x64xf32>
    %99 = arith.mulf %98, %97 : vector<40x64xf32>
    %100 = math.tanh %99 : vector<40x64xf32>
    %cst_51 = arith.constant 1.000000e+00 : f32
    %101 = vector.broadcast %cst_51 : f32 to vector<40x64xf32>
    %102 = arith.addf %101, %100 : vector<40x64xf32>
    %cst_52 = arith.constant 5.000000e-01 : f32
    %103 = vector.broadcast %cst_52 : f32 to vector<40x64xf32>
    %104 = arith.mulf %103, %102 : vector<40x64xf32>
    %105 = arith.mulf %92, %104 : vector<40x64xf32>
    %c0_53 = arith.constant 0 : index
    %c0_54 = arith.constant 0 : index
    %106 = vector.load %arg17[%c0_53, %c0_54] : memref<64x32xf32, #tpu.memory_space<vmem>>, vector<64x32xf32>
    %cst_55 = arith.constant dense<0.000000e+00> : vector<40x32xf32>
    %107 = tpu.matmul %105, %106, %cst_55 {dimension_numbers = #tpu.dot_dimension_numbers<[1], [0], [0], [1], [0, 0, 1, 1], [], []>} : vector<40x64xf32>, vector<64x32xf32>, vector<40x32xf32> -> vector<40x32xf32>
    %108 = arith.addf %63, %107 : vector<40x32xf32>
    %c0_56 = arith.constant 0 : index
    %c0_57 = arith.constant 0 : index
    %109 = vector.load %arg18[%c0_56, %c0_57] : memref<1x32xf32, #tpu.memory_space<vmem>>, vector<1x32xf32>
    %110 = vector.broadcast %109 : vector<1x32xf32> to vector<40x32xf32>
    %111 = arith.addf %108, %110 : vector<40x32xf32>
    %112 = vector.extract_strided_slice %111 {offsets = [0, 0], sizes = [40, 1], strides = [1, 1]} : vector<40x32xf32> to vector<40x1xf32>
    %113 = arith.negf %112 : vector<40x1xf32>
    %114 = math.exp %113 : vector<40x1xf32>
    %cst_58 = arith.constant 1.000000e+00 : f32
    %115 = vector.broadcast %cst_58 : f32 to vector<40x1xf32>
    %116 = arith.addf %115, %114 : vector<40x1xf32>
    %117 = arith.divf %115, %116 : vector<40x1xf32>
    %cst_59 = arith.constant dense<0.000000e+00> : vector<40xf32>
    %118 = vector.multi_reduction <add>, %111, %cst_59 [1] : vector<40x32xf32> to vector<40xf32>
    %119 = vector.shape_cast %118 : vector<40xf32> to vector<40x1xf32>
    %cst_60 = arith.constant 3.200000e+01 : f32
    %120 = vector.broadcast %cst_60 : f32 to vector<40x1xf32>
    %121 = arith.divf %119, %120 : vector<40x1xf32>
    %122 = vector.broadcast %121 : vector<40x1xf32> to vector<40x32xf32>
    %123 = arith.subf %111, %122 : vector<40x32xf32>
    %124 = arith.mulf %123, %123 : vector<40x32xf32>
    %cst_61 = arith.constant dense<0.000000e+00> : vector<40xf32>
    %125 = vector.multi_reduction <add>, %124, %cst_61 [1] : vector<40x32xf32> to vector<40xf32>
    %126 = vector.shape_cast %125 : vector<40xf32> to vector<40x1xf32>
    %cst_62 = arith.constant 3.200000e+01 : f32
    %127 = vector.broadcast %cst_62 : f32 to vector<40x1xf32>
    %128 = arith.divf %126, %127 : vector<40x1xf32>
    %129 = vector.broadcast %121 : vector<40x1xf32> to vector<40x32xf32>
    %130 = arith.subf %111, %129 : vector<40x32xf32>
    %cst_63 = arith.constant 9.99999997E-7 : f32
    %131 = vector.broadcast %cst_63 : f32 to vector<40x1xf32>
    %132 = arith.addf %128, %131 : vector<40x1xf32>
    %133 = math.rsqrt %132 : vector<40x1xf32>
    %134 = vector.broadcast %133 : vector<40x1xf32> to vector<40x32xf32>
    %135 = arith.mulf %130, %134 : vector<40x32xf32>
    %c0_64 = arith.constant 0 : index
    %c0_65 = arith.constant 0 : index
    %136 = vector.load %arg19[%c0_64, %c0_65] : memref<1x32xf32, #tpu.memory_space<vmem>>, vector<1x32xf32>
    %137 = vector.broadcast %136 : vector<1x32xf32> to vector<40x32xf32>
    %138 = arith.mulf %135, %137 : vector<40x32xf32>
    %c0_66 = arith.constant 0 : index
    %c0_67 = arith.constant 0 : index
    %139 = vector.load %arg20[%c0_66, %c0_67] : memref<1x32xf32, #tpu.memory_space<vmem>>, vector<1x32xf32>
    %140 = vector.broadcast %139 : vector<1x32xf32> to vector<40x32xf32>
    %141 = arith.addf %138, %140 : vector<40x32xf32>
    %c0_68 = arith.constant 0 : index
    %c0_69 = arith.constant 0 : index
    %142 = vector.load %arg21[%c0_68, %c0_69] : memref<32x96xf32, #tpu.memory_space<vmem>>, vector<32x96xf32>
    %cst_70 = arith.constant dense<0.000000e+00> : vector<40x96xf32>
    %143 = tpu.matmul %141, %142, %cst_70 {dimension_numbers = #tpu.dot_dimension_numbers<[1], [0], [0], [1], [0, 0, 1, 1], [], []>} : vector<40x32xf32>, vector<32x96xf32>, vector<40x96xf32> -> vector<40x96xf32>
    %c0_71 = arith.constant 0 : index
    %c0_72 = arith.constant 0 : index
    %144 = vector.load %arg22[%c0_71, %c0_72] : memref<1x96xf32, #tpu.memory_space<vmem>>, vector<1x96xf32>
    %145 = vector.broadcast %144 : vector<1x96xf32> to vector<40x96xf32>
    %146 = arith.addf %143, %145 : vector<40x96xf32>
    %147 = vector.extract_strided_slice %146 {offsets = [0, 0], sizes = [40, 32], strides = [1, 1]} : vector<40x96xf32> to vector<40x32xf32>
    %148 = vector.extract_strided_slice %146 {offsets = [0, 32], sizes = [40, 32], strides = [1, 1]} : vector<40x96xf32> to vector<40x32xf32>
    %149 = vector.extract_strided_slice %146 {offsets = [0, 64], sizes = [40, 32], strides = [1, 1]} : vector<40x96xf32> to vector<40x32xf32>
    %cst_73 = arith.constant dense<0.000000e+00> : vector<40x40xf32>
    %150 = tpu.matmul %147, %148, %cst_73 {dimension_numbers = #tpu.dot_dimension_numbers<[1], [1], [0], [0], [0, 0, 1, 0], [], []>} : vector<40x32xf32>, vector<40x32xf32>, vector<40x40xf32> -> vector<40x40xf32>
    %cst_74 = arith.constant 0.176776692 : f32
    %151 = vector.broadcast %cst_74 : f32 to vector<40x40xf32>
    %152 = arith.mulf %150, %151 : vector<40x40xf32>
    %cst_75 = arith.constant -1.000000e+30 : f32
    %153 = vector.broadcast %cst_75 : f32 to vector<40x40xf32>
    %154 = arith.select %10, %152, %153 : vector<40x40xi1>, vector<40x40xf32>
    %cst_76 = arith.constant dense<0xFF800000> : vector<40xf32>
    %155 = vector.multi_reduction <maximumf>, %154, %cst_76 [1] : vector<40x40xf32> to vector<40xf32>
    %156 = vector.shape_cast %155 : vector<40xf32> to vector<40x1xf32>
    %157 = vector.broadcast %156 : vector<40x1xf32> to vector<40x40xf32>
    %158 = arith.subf %154, %157 : vector<40x40xf32>
    %159 = math.exp %158 : vector<40x40xf32>
    %cst_77 = arith.constant dense<0.000000e+00> : vector<40xf32>
    %160 = vector.multi_reduction <add>, %159, %cst_77 [1] : vector<40x40xf32> to vector<40xf32>
    %161 = vector.shape_cast %160 : vector<40xf32> to vector<40x1xf32>
    %162 = vector.broadcast %161 : vector<40x1xf32> to vector<40x40xf32>
    %163 = arith.divf %159, %162 : vector<40x40xf32>
    %cst_78 = arith.constant dense<0.000000e+00> : vector<40x32xf32>
    %164 = tpu.matmul %163, %149, %cst_78 {dimension_numbers = #tpu.dot_dimension_numbers<[1], [0], [0], [1], [0, 0, 1, 1], [], []>} : vector<40x40xf32>, vector<40x32xf32>, vector<40x32xf32> -> vector<40x32xf32>
    %c0_79 = arith.constant 0 : index
    %c0_80 = arith.constant 0 : index
    %165 = vector.load %arg23[%c0_79, %c0_80] : memref<32x32xf32, #tpu.memory_space<vmem>>, vector<32x32xf32>
    %cst_81 = arith.constant dense<0.000000e+00> : vector<40x32xf32>
    %166 = tpu.matmul %164, %165, %cst_81 {dimension_numbers = #tpu.dot_dimension_numbers<[1], [0], [0], [1], [0, 0, 1, 1], [], []>} : vector<40x32xf32>, vector<32x32xf32>, vector<40x32xf32> -> vector<40x32xf32>
    %167 = arith.addf %111, %166 : vector<40x32xf32>
    %c0_82 = arith.constant 0 : index
    %c0_83 = arith.constant 0 : index
    %168 = vector.load %arg24[%c0_82, %c0_83] : memref<1x32xf32, #tpu.memory_space<vmem>>, vector<1x32xf32>
    %169 = vector.broadcast %168 : vector<1x32xf32> to vector<40x32xf32>
    %170 = arith.addf %167, %169 : vector<40x32xf32>
    %cst_84 = arith.constant dense<0.000000e+00> : vector<40xf32>
    %171 = vector.multi_reduction <add>, %170, %cst_84 [1] : vector<40x32xf32> to vector<40xf32>
    %172 = vector.shape_cast %171 : vector<40xf32> to vector<40x1xf32>
    %cst_85 = arith.constant 3.200000e+01 : f32
    %173 = vector.broadcast %cst_85 : f32 to vector<40x1xf32>
    %174 = arith.divf %172, %173 : vector<40x1xf32>
    %175 = vector.broadcast %174 : vector<40x1xf32> to vector<40x32xf32>
    %176 = arith.subf %170, %175 : vector<40x32xf32>
    %177 = arith.mulf %176, %176 : vector<40x32xf32>
    %cst_86 = arith.constant dense<0.000000e+00> : vector<40xf32>
    %178 = vector.multi_reduction <add>, %177, %cst_86 [1] : vector<40x32xf32> to vector<40xf32>
    %179 = vector.shape_cast %178 : vector<40xf32> to vector<40x1xf32>
    %cst_87 = arith.constant 3.200000e+01 : f32
    %180 = vector.broadcast %cst_87 : f32 to vector<40x1xf32>
    %181 = arith.divf %179, %180 : vector<40x1xf32>
    %182 = vector.broadcast %174 : vector<40x1xf32> to vector<40x32xf32>
    %183 = arith.subf %170, %182 : vector<40x32xf32>
    %cst_88 = arith.constant 9.99999997E-7 : f32
    %184 = vector.broadcast %cst_88 : f32 to vector<40x1xf32>
    %185 = arith.addf %181, %184 : vector<40x1xf32>
    %186 = math.rsqrt %185 : vector<40x1xf32>
    %187 = vector.broadcast %186 : vector<40x1xf32> to vector<40x32xf32>
    %188 = arith.mulf %183, %187 : vector<40x32xf32>
    %c0_89 = arith.constant 0 : index
    %c0_90 = arith.constant 0 : index
    %189 = vector.load %arg25[%c0_89, %c0_90] : memref<1x32xf32, #tpu.memory_space<vmem>>, vector<1x32xf32>
    %190 = vector.broadcast %189 : vector<1x32xf32> to vector<40x32xf32>
    %191 = arith.mulf %188, %190 : vector<40x32xf32>
    %c0_91 = arith.constant 0 : index
    %c0_92 = arith.constant 0 : index
    %192 = vector.load %arg26[%c0_91, %c0_92] : memref<1x32xf32, #tpu.memory_space<vmem>>, vector<1x32xf32>
    %193 = vector.broadcast %192 : vector<1x32xf32> to vector<40x32xf32>
    %194 = arith.addf %191, %193 : vector<40x32xf32>
    %c0_93 = arith.constant 0 : index
    %c0_94 = arith.constant 0 : index
    %195 = vector.load %arg27[%c0_93, %c0_94] : memref<32x64xf32, #tpu.memory_space<vmem>>, vector<32x64xf32>
    %cst_95 = arith.constant dense<0.000000e+00> : vector<40x64xf32>
    %196 = tpu.matmul %194, %195, %cst_95 {dimension_numbers = #tpu.dot_dimension_numbers<[1], [0], [0], [1], [0, 0, 1, 1], [], []>} : vector<40x32xf32>, vector<32x64xf32>, vector<40x64xf32> -> vector<40x64xf32>
    %c0_96 = arith.constant 0 : index
    %c0_97 = arith.constant 0 : index
    %197 = vector.load %arg28[%c0_96, %c0_97] : memref<1x64xf32, #tpu.memory_space<vmem>>, vector<1x64xf32>
    %198 = vector.broadcast %197 : vector<1x64xf32> to vector<40x64xf32>
    %199 = arith.addf %196, %198 : vector<40x64xf32>
    %200 = arith.mulf %199, %199 : vector<40x64xf32>
    %201 = arith.mulf %199, %200 : vector<40x64xf32>
    %cst_98 = arith.constant 4.471500e-02 : f32
    %202 = vector.broadcast %cst_98 : f32 to vector<40x64xf32>
    %203 = arith.mulf %202, %201 : vector<40x64xf32>
    %204 = arith.addf %199, %203 : vector<40x64xf32>
    %cst_99 = arith.constant 0.797884583 : f32
    %205 = vector.broadcast %cst_99 : f32 to vector<40x64xf32>
    %206 = arith.mulf %205, %204 : vector<40x64xf32>
    %207 = math.tanh %206 : vector<40x64xf32>
    %cst_100 = arith.constant 1.000000e+00 : f32
    %208 = vector.broadcast %cst_100 : f32 to vector<40x64xf32>
    %209 = arith.addf %208, %207 : vector<40x64xf32>
    %cst_101 = arith.constant 5.000000e-01 : f32
    %210 = vector.broadcast %cst_101 : f32 to vector<40x64xf32>
    %211 = arith.mulf %210, %209 : vector<40x64xf32>
    %212 = arith.mulf %199, %211 : vector<40x64xf32>
    %c0_102 = arith.constant 0 : index
    %c0_103 = arith.constant 0 : index
    %213 = vector.load %arg29[%c0_102, %c0_103] : memref<64x32xf32, #tpu.memory_space<vmem>>, vector<64x32xf32>
    %cst_104 = arith.constant dense<0.000000e+00> : vector<40x32xf32>
    %214 = tpu.matmul %212, %213, %cst_104 {dimension_numbers = #tpu.dot_dimension_numbers<[1], [0], [0], [1], [0, 0, 1, 1], [], []>} : vector<40x64xf32>, vector<64x32xf32>, vector<40x32xf32> -> vector<40x32xf32>
    %215 = arith.addf %170, %214 : vector<40x32xf32>
    %c0_105 = arith.constant 0 : index
    %c0_106 = arith.constant 0 : index
    %216 = vector.load %arg30[%c0_105, %c0_106] : memref<1x32xf32, #tpu.memory_space<vmem>>, vector<1x32xf32>
    %217 = vector.broadcast %216 : vector<1x32xf32> to vector<40x32xf32>
    %218 = arith.addf %215, %217 : vector<40x32xf32>
    %219 = vector.extract_strided_slice %218 {offsets = [0, 0], sizes = [40, 1], strides = [1, 1]} : vector<40x32xf32> to vector<40x1xf32>
    %220 = arith.negf %219 : vector<40x1xf32>
    %221 = math.exp %220 : vector<40x1xf32>
    %cst_107 = arith.constant 1.000000e+00 : f32
    %222 = vector.broadcast %cst_107 : f32 to vector<40x1xf32>
    %223 = arith.addf %222, %221 : vector<40x1xf32>
    %224 = arith.divf %222, %223 : vector<40x1xf32>
    %c0_108 = arith.constant 0 : index
    %c0_109 = arith.constant 0 : index
    %225 = vector.load %arg35[%c0_108, %c0_109] : memref<40x32xf32, #tpu.memory_space<vmem>>, vector<40x32xf32>
    tpu.vector_store %arg35[%c0_108, %c0_109], %218 {strides = array<i32>} : memref<40x32xf32, #tpu.memory_space<vmem>>, vector<40x32xf32>,
    %226 = tpu.concatenate %117, %224 in 1 : vector<40x1xf32>, vector<40x1xf32> -> vector<40x2xf32>
    %c0_110 = arith.constant 0 : index
    %c0_111 = arith.constant 0 : index
    %227 = vector.load %arg36[%c0_110, %c0_111] : memref<40x2xf32, #tpu.memory_space<vmem>>, vector<40x2xf32>
    tpu.vector_store %arg36[%c0_110, %c0_111], %226 {strides = array<i32>} : memref<40x2xf32, #tpu.memory_space<vmem>>, vector<40x2xf32>,
    %c0_112 = arith.constant 0 : index
    %c0_113 = arith.constant 0 : index
    %228 = vector.load %arg31[%c0_112, %c0_113] : memref<32x48xf32, #tpu.memory_space<vmem>>, vector<32x48xf32>
    %cst_114 = arith.constant dense<0.000000e+00> : vector<40x48xf32>
    %229 = tpu.matmul %218, %228, %cst_114 {dimension_numbers = #tpu.dot_dimension_numbers<[1], [0], [0], [1], [0, 0, 1, 1], [], []>} : vector<40x32xf32>, vector<32x48xf32>, vector<40x48xf32> -> vector<40x48xf32>
    %c0_115 = arith.constant 0 : index
    %c0_116 = arith.constant 0 : index
    %230 = vector.load %arg32[%c0_115, %c0_116] : memref<1x48xf32, #tpu.memory_space<vmem>>, vector<1x48xf32>
    %231 = vector.broadcast %230 : vector<1x48xf32> to vector<40x48xf32>
    %232 = arith.addf %229, %231 : vector<40x48xf32>
    %cst_117 = arith.constant 0.000000e+00 : f32
    %233 = vector.broadcast %cst_117 : f32 to vector<40x48xf32>
    %234 = arith.maximumf %232, %233 : vector<40x48xf32>
    %c0_118 = arith.constant 0 : index
    %c0_119 = arith.constant 0 : index
    %235 = vector.load %arg33[%c0_118, %c0_119] : memref<48x5xf32, #tpu.memory_space<vmem>>, vector<48x5xf32>
    %cst_120 = arith.constant dense<0.000000e+00> : vector<40x5xf32>
    %236 = tpu.matmul %234, %235, %cst_120 {dimension_numbers = #tpu.dot_dimension_numbers<[1], [0], [0], [1], [0, 0, 1, 1], [], []>} : vector<40x48xf32>, vector<48x5xf32>, vector<40x5xf32> -> vector<40x5xf32>
    %c0_121 = arith.constant 0 : index
    %c0_122 = arith.constant 0 : index
    %237 = vector.load %arg34[%c0_121, %c0_122] : memref<1x5xf32, #tpu.memory_space<vmem>>, vector<1x5xf32>
    %238 = vector.broadcast %237 : vector<1x5xf32> to vector<40x5xf32>
    %239 = arith.addf %236, %238 : vector<40x5xf32>
    %240 = tpu.iota {dimensions = array<i32: 1>} : vector<40x5xi32>
    %c0_i32 = arith.constant 0 : i32
    %241 = vector.broadcast %c0_i32 : i32 to vector<40x5xi32>
    %242 = arith.cmpi eq, %240, %241 : vector<40x5xi32>
    %c3_i32 = arith.constant 3 : i32
    %243 = vector.broadcast %c3_i32 : i32 to vector<40x5xi32>
    %244 = arith.cmpi sge, %240, %243 : vector<40x5xi32>
    %245 = arith.ori %242, %244 : vector<40x5xi1>
    %246 = arith.negf %239 : vector<40x5xf32>
    %247 = math.exp %246 : vector<40x5xf32>
    %cst_123 = arith.constant 1.000000e+00 : f32
    %248 = vector.broadcast %cst_123 : f32 to vector<40x5xf32>
    %249 = arith.addf %248, %247 : vector<40x5xf32>
    %250 = arith.divf %248, %249 : vector<40x5xf32>
    %251 = arith.select %245, %250, %239 : vector<40x5xi1>, vector<40x5xf32>
    %c0_124 = arith.constant 0 : index
    %c0_125 = arith.constant 0 : index
    %252 = vector.load %arg37[%c0_124, %c0_125] : memref<40x5xf32, #tpu.memory_space<vmem>>, vector<40x5xf32>
    tpu.vector_store %arg37[%c0_124, %c0_125], %251 {strides = array<i32>} : memref<40x5xf32, #tpu.memory_space<vmem>>, vector<40x5xf32>,
    %253 = vector.extract_strided_slice %251 {offsets = [0, 0], sizes = [40, 1], strides = [1, 1]} : vector<40x5xf32> to vector<40x1xf32>
    %254 = vector.extract_strided_slice %251 {offsets = [0, 1], sizes = [40, 2], strides = [1, 1]} : vector<40x5xf32> to vector<40x2xf32>
    %255 = vector.extract_strided_slice %251 {offsets = [0, 3], sizes = [40, 2], strides = [1, 1]} : vector<40x5xf32> to vector<40x2xf32>
    %256 = tpu.iota {dimensions = array<i32: 0>} : vector<40x1xi32>
    %c0_126 = arith.constant 0 : index
    %c0_127 = arith.constant 0 : index
    %257 = vector.load %arg4[%c0_126, %c0_127] : memref<40x2xf32, #tpu.memory_space<vmem>>, vector<40x2xf32>
    %258 = vector.extract_strided_slice %257 {offsets = [0, 0], sizes = [40, 1], strides = [1, 1]} : vector<40x2xf32> to vector<40x1xf32>
    %259 = vector.extract_strided_slice %257 {offsets = [0, 1], sizes = [40, 1], strides = [1, 1]} : vector<40x2xf32> to vector<40x1xf32>
    %c0_128 = arith.constant 0 : index
    %c0_129 = arith.constant 0 : index
    %260 = vector.load %arg3[%c0_128, %c0_129] : memref<40x2xf32, #tpu.memory_space<vmem>>, vector<40x2xf32>
    %261 = vector.extract_strided_slice %260 {offsets = [0, 0], sizes = [40, 1], strides = [1, 1]} : vector<40x2xf32> to vector<40x1xf32>
    %cst_130 = arith.constant 5.000000e-01 : f32
    %262 = vector.broadcast %cst_130 : f32 to vector<40x1xf32>
    %263 = arith.cmpf ogt, %261, %262 : vector<40x1xf32>
    %cst_131 = arith.constant -1.000000e+00 : f32
    %264 = vector.broadcast %cst_131 : f32 to vector<40x1xf32>
    %265 = arith.select %263, %253, %264 : vector<40x1xi1>, vector<40x1xf32>
    %cst_132 = arith.constant dense<0xFF800000> : vector<1xf32>
    %266 = vector.multi_reduction <maximumf>, %265, %cst_132 [0] : vector<40x1xf32> to vector<1xf32>
    %267 = vector.shape_cast %266 : vector<1xf32> to vector<1x1xf32>
    %268 = vector.broadcast %267 : vector<1x1xf32> to vector<40x1xf32>
    %269 = arith.cmpf oge, %265, %268 : vector<40x1xf32>
    %c40_i32 = arith.constant 40 : i32
    %270 = vector.broadcast %c40_i32 : i32 to vector<40x1xi32>
    %271 = arith.select %269, %256, %270 : vector<40x1xi1>, vector<40x1xi32>
    %cst_133 = arith.constant dense<2147483647> : vector<1xi32>
    %272 = vector.multi_reduction <minsi>, %271, %cst_133 [0] : vector<40x1xi32> to vector<1xi32>
    %273 = vector.shape_cast %272 : vector<1xi32> to vector<1x1xi32>
    %274 = vector.broadcast %273 : vector<1x1xi32> to vector<40x1xi32>
    %275 = arith.cmpi eq, %256, %274 : vector<40x1xi32>
    %276 = arith.extui %275 : vector<40x1xi1> to vector<40x1xi32>
    %277 = arith.sitofp %276 : vector<40x1xi32> to vector<40x1xf32>
    %278 = arith.mulf %258, %277 : vector<40x1xf32>
    %cst_134 = arith.constant dense<0.000000e+00> : vector<1xf32>
    %279 = vector.multi_reduction <add>, %278, %cst_134 [0] : vector<40x1xf32> to vector<1xf32>
    %280 = vector.shape_cast %279 : vector<1xf32> to vector<1x1xf32>
    %281 = arith.mulf %259, %277 : vector<40x1xf32>
    %cst_135 = arith.constant dense<0.000000e+00> : vector<1xf32>
    %282 = vector.multi_reduction <add>, %281, %cst_135 [0] : vector<40x1xf32> to vector<1xf32>
    %283 = vector.shape_cast %282 : vector<1xf32> to vector<1x1xf32>
    %284 = vector.broadcast %277 : vector<40x1xf32> to vector<40x2xf32>
    %285 = arith.mulf %254, %284 : vector<40x2xf32>
    %cst_136 = arith.constant dense<0.000000e+00> : vector<2xf32>
    %286 = vector.multi_reduction <add>, %285, %cst_136 [0] : vector<40x2xf32> to vector<2xf32>
    %287 = vector.shape_cast %286 : vector<2xf32> to vector<1x2xf32>
    %288 = vector.broadcast %277 : vector<40x1xf32> to vector<40x2xf32>
    %289 = arith.mulf %255, %288 : vector<40x2xf32>
    %cst_137 = arith.constant dense<0.000000e+00> : vector<2xf32>
    %290 = vector.multi_reduction <add>, %289, %cst_137 [0] : vector<40x2xf32> to vector<2xf32>
    %291 = vector.shape_cast %290 : vector<2xf32> to vector<1x2xf32>
    %292 = vector.extract_strided_slice %287 {offsets = [0, 0], sizes = [1, 1], strides = [1, 1]} : vector<1x2xf32> to vector<1x1xf32>
    %293 = arith.addf %280, %292 : vector<1x1xf32>
    %cst_138 = arith.constant 2.500000e-01 : f32
    %294 = vector.broadcast %cst_138 : f32 to vector<1x1xf32>
    %295 = arith.mulf %293, %294 : vector<1x1xf32>
    %296 = vector.extract_strided_slice %287 {offsets = [0, 1], sizes = [1, 1], strides = [1, 1]} : vector<1x2xf32> to vector<1x1xf32>
    %297 = arith.addf %283, %296 : vector<1x1xf32>
    %cst_139 = arith.constant 2.500000e-01 : f32
    %298 = vector.broadcast %cst_139 : f32 to vector<1x1xf32>
    %299 = arith.mulf %297, %298 : vector<1x1xf32>
    %300 = tpu.concatenate %295, %299, %291 in 1 : vector<1x1xf32>, vector<1x1xf32>, vector<1x2xf32> -> vector<1x4xf32>
    %301 = vector.extract_strided_slice %260 {offsets = [0, 1], sizes = [40, 1], strides = [1, 1]} : vector<40x2xf32> to vector<40x1xf32>
    %cst_140 = arith.constant 5.000000e-01 : f32
    %302 = vector.broadcast %cst_140 : f32 to vector<40x1xf32>
    %303 = arith.cmpf ogt, %301, %302 : vector<40x1xf32>
    %cst_141 = arith.constant -1.000000e+00 : f32
    %304 = vector.broadcast %cst_141 : f32 to vector<40x1xf32>
    %305 = arith.select %303, %253, %304 : vector<40x1xi1>, vector<40x1xf32>
    %cst_142 = arith.constant dense<0xFF800000> : vector<1xf32>
    %306 = vector.multi_reduction <maximumf>, %305, %cst_142 [0] : vector<40x1xf32> to vector<1xf32>
    %307 = vector.shape_cast %306 : vector<1xf32> to vector<1x1xf32>
    %308 = vector.broadcast %307 : vector<1x1xf32> to vector<40x1xf32>
    %309 = arith.cmpf oge, %305, %308 : vector<40x1xf32>
    %c40_i32_143 = arith.constant 40 : i32
    %310 = vector.broadcast %c40_i32_143 : i32 to vector<40x1xi32>
    %311 = arith.select %309, %256, %310 : vector<40x1xi1>, vector<40x1xi32>
    %cst_144 = arith.constant dense<2147483647> : vector<1xi32>
    %312 = vector.multi_reduction <minsi>, %311, %cst_144 [0] : vector<40x1xi32> to vector<1xi32>
    %313 = vector.shape_cast %312 : vector<1xi32> to vector<1x1xi32>
    %314 = vector.broadcast %313 : vector<1x1xi32> to vector<40x1xi32>
    %315 = arith.cmpi eq, %256, %314 : vector<40x1xi32>
    %316 = arith.extui %315 : vector<40x1xi1> to vector<40x1xi32>
    %317 = arith.sitofp %316 : vector<40x1xi32> to vector<40x1xf32>
    %318 = arith.mulf %258, %317 : vector<40x1xf32>
    %cst_145 = arith.constant dense<0.000000e+00> : vector<1xf32>
    %319 = vector.multi_reduction <add>, %318, %cst_145 [0] : vector<40x1xf32> to vector<1xf32>
    %320 = vector.shape_cast %319 : vector<1xf32> to vector<1x1xf32>
    %321 = arith.mulf %259, %317 : vector<40x1xf32>
    %cst_146 = arith.constant dense<0.000000e+00> : vector<1xf32>
    %322 = vector.multi_reduction <add>, %321, %cst_146 [0] : vector<40x1xf32> to vector<1xf32>
    %323 = vector.shape_cast %322 : vector<1xf32> to vector<1x1xf32>
    %324 = vector.broadcast %317 : vector<40x1xf32> to vector<40x2xf32>
    %325 = arith.mulf %254, %324 : vector<40x2xf32>
    %cst_147 = arith.constant dense<0.000000e+00> : vector<2xf32>
    %326 = vector.multi_reduction <add>, %325, %cst_147 [0] : vector<40x2xf32> to vector<2xf32>
    %327 = vector.shape_cast %326 : vector<2xf32> to vector<1x2xf32>
    %328 = vector.broadcast %317 : vector<40x1xf32> to vector<40x2xf32>
    %329 = arith.mulf %255, %328 : vector<40x2xf32>
    %cst_148 = arith.constant dense<0.000000e+00> : vector<2xf32>
    %330 = vector.multi_reduction <add>, %329, %cst_148 [0] : vector<40x2xf32> to vector<2xf32>
    %331 = vector.shape_cast %330 : vector<2xf32> to vector<1x2xf32>
    %332 = vector.extract_strided_slice %327 {offsets = [0, 0], sizes = [1, 1], strides = [1, 1]} : vector<1x2xf32> to vector<1x1xf32>
    %333 = arith.addf %320, %332 : vector<1x1xf32>
    %cst_149 = arith.constant 2.500000e-01 : f32
    %334 = vector.broadcast %cst_149 : f32 to vector<1x1xf32>
    %335 = arith.mulf %333, %334 : vector<1x1xf32>
    %336 = vector.extract_strided_slice %327 {offsets = [0, 1], sizes = [1, 1], strides = [1, 1]} : vector<1x2xf32> to vector<1x1xf32>
    %337 = arith.addf %323, %336 : vector<1x1xf32>
    %cst_150 = arith.constant 2.500000e-01 : f32
    %338 = vector.broadcast %cst_150 : f32 to vector<1x1xf32>
    %339 = arith.mulf %337, %338 : vector<1x1xf32>
    %340 = tpu.concatenate %335, %339, %331 in 1 : vector<1x1xf32>, vector<1x1xf32>, vector<1x2xf32> -> vector<1x4xf32>
    %341 = tpu.concatenate %300, %340 in 0 : vector<1x4xf32>, vector<1x4xf32> -> vector<2x4xf32>
    %c0_151 = arith.constant 0 : index
    %c0_152 = arith.constant 0 : index
    %342 = vector.load %arg38[%c0_151, %c0_152] : memref<2x4xf32, #tpu.memory_space<vmem>>, vector<2x4xf32>
    tpu.vector_store %arg38[%c0_151, %c0_152], %341 {strides = array<i32>} : memref<2x4xf32, #tpu.memory_space<vmem>>, vector<2x4xf32>,
    return
  }
}

</mosaic_0001>

<bundles_post_ra>
// kernel: eq.17
= control target key start
LH: loop header
LB: loop body
LE: loop exit
PB: predicated region body
PF: predicated region fallthrough
CT: control target
= control target key end

     0   :  { %vm7_vm0 = vcmask 162816   ;;  %vm13_vm1 = vcmask 326816   ;;  %s39_s0 = inlined_call_operand.vmem [shape: s32[2,20], index: 0, kind: input, shape index: {}]   ;;  %s40_s1 = inlined_call_operand.vmem [shape: s32[40], index: 1, kind: output, shape index: {}]  }
   0x1   :  { %v4_v0 = vld [vmem:[%s39_s0] sm:$0x3]  ;;  %s22_s0 = smov 20  }
   0x2   :  { %5 = vst [vmem:[#allocation1] sm:$0x3] %v4_v0 }
   0x9   :  { %v10_v1 = vld [vmem:[#allocation1 + $0x1] sm:$0x1]   ;;  %v6_v2 = vld [vmem:[#allocation1] sm:$0x1]  }
   0xa   :  { %11 = vrot.lane.b32.xlu0 %v10_v1, %s22_s0  ;;  %8 = vst.msk [vmem:[#allocation0] sm:$0x1] %vm7_vm0, %v6_v2  }
  0x7c   :  { %v12_v3 = vpop.permute.xlu0 %11  }
  0x7d   :  { %14 = vst.msk [vmem:[#allocation0] sm:$0x1] %vm13_vm1, %v12_v3  }
  0x84   :  { %v17_v4 = vld [vmem:[#allocation0] sm:$0x1] }
  0x85   :  { %20 = vst [vmem:[%s40_s1] sm:$0x1] %v17_v4 }

// kernel: abavitrack_forward.1
= control target key start
LH: loop header
LB: loop body
LE: loop exit
PB: predicated region body
PF: predicated region fallthrough
CT: control target
= control target key end

     0   :  { %s3312_s6 = smov 1   ;;  %s3313_s10 = smov 2   ;;  %s4727_s0 = inlined_call_operand.smem [shape: u32[39], index: -1, kind: input, shape index: {}] }
   0x1   :  { %s3367_s5 = sld [smem:[%s4727_s0]]   ;;  %s3314_s14 = smov 3  }
   0x2   :  { %s3372_s9 = sld [smem:[%s4727_s0 + %s3312_s6]]   ;;  %s3315_s18 = smov 4  }
   0x3   :  { %s3377_s13 = sld [smem:[%s4727_s0 + %s3313_s10]]   ;;  %s3316_s22 = smov 5  }
   0x4   :  { %s3382_s17 = sld [smem:[%s4727_s0 + %s3314_s14]]   ;;  %s3317_s26 = smov 6  }
   0x5   :  { %s3387_s21 = sld [smem:[%s4727_s0 + %s3315_s18]]   ;;  %s3318_s30 = smov 7  }
   0x6   :  { %s3392_s25 = sld [smem:[%s4727_s0 + %s3316_s22]]   ;;  %s3319_s4 = smov 8  }
   0x7   :  { %s3397_s29 = sld [smem:[%s4727_s0 + %s3317_s26]]   ;;  %s3320_s10 = smov 9  }
   0x8   :  { %s3402_s3 = sld [smem:[%s4727_s0 + %s3318_s30]]   ;;  %s3321_s15 = smov 10  }
   0x9   :  { %s3407_s8 = sld [smem:[%s4727_s0 + %s3319_s4]]   ;;  %s3322_s20 = smov 11  }
   0xa   :  { %4737 = sst [smem:[#allocation5_spill]] %s3382_s17  ;;  %s3323_s26 = smov 12  }
   0xb   :  { %4738 = sst [smem:[#allocation6_spill]] %s3387_s21  ;;  %s3324_s1 = smov 13  }
   0xc   :  { %s3412_s14 = sld [smem:[%s4727_s0 + %s3320_s10]]   ;;  %s3325_s7 = smov 14  }
   0xd   :  { %s3417_s19 = sld [smem:[%s4727_s0 + %s3321_s15]]   ;;  %s3326_s15 = smov 15  }
   0xe   :  { %s3422_s24 = sld [smem:[%s4727_s0 + %s3322_s20]]   ;;  %s3327_s22 = smov 16  }
   0xf   :  { %s3427_s30 = sld [smem:[%s4727_s0 + %s3323_s26]]   ;;  %s3328_s28 = smov 17  }
  0x10   :  { %s3432_s6 = sld [smem:[%s4727_s0 + %s3324_s1]]  }
  0x11   :  { %s3437_s12 = sld [smem:[%s4727_s0 + %s3325_s7]]   ;;  %s3329_s7 = smov 18  }
  0x12   :  { %s3442_s20 = sld [smem:[%s4727_s0 + %s3326_s15]]   ;;  %s3330_s15 = smov 19  }
  0x13   :  { %s3447_s27 = sld [smem:[%s4727_s0 + %s3327_s22]]   ;;  %s3331_s22 = smov 20  }
  0x14   :  { %s3452_s4 = sld [smem:[%s4727_s0 + %s3328_s28]]   ;;  %s3332_s28 = smov 21  }
  0x15   :  { %s3457_s21 = sld [smem:[%s4727_s0 + %s3329_s7]]   ;;  %s3333_s7 = smov 22  }
  0x16   :  { %s3462_s17 = sld [smem:[%s4727_s0 + %s3330_s15]]   ;;  %s3334_s15 = smov 23  }
  0x19   :  { %4739 = sst [smem:[#allocation7_spill]] %s3447_s27 }
  0x1a   :  { %4740 = sst [smem:[#allocation8_spill]] %s3452_s4 }
  0x1b   :  { %4741 = sst [smem:[#allocation9_spill]] %s3457_s21 }
  0x1c   :  { %4742 = sst [smem:[#allocation10_spill]] %s3462_s17 }
  0x1d   :  { %s3467_s27 = sld [smem:[%s4727_s0 + %s3331_s22]]   ;;  %s3335_s22 = smov 24  }
  0x1e   :  { %s3472_s4 = sld [smem:[%s4727_s0 + %s3332_s28]]   ;;  %s3336_s28 = smov 25  }
  0x1f   :  { %s3477_s21 = sld [smem:[%s4727_s0 + %s3333_s7]]   ;;  %s3337_s7 = smov 26  }
  0x20   :  { %s3482_s17 = sld [smem:[%s4727_s0 + %s3334_s15]]   ;;  %s3338_s15 = smov 27  }
  0x23   :  { %4743 = sst [smem:[#allocation11_spill]] %s3467_s27 }
  0x24   :  { %4744 = sst [smem:[#allocation12_spill]] %s3472_s4 }
  0x25   :  { %4745 = sst [smem:[#allocation13_spill]] %s3477_s21 }
  0x26   :  { %4746 = sst [smem:[#allocation14_spill]] %s3482_s17 }
  0x27   :  { %s3487_s27 = sld [smem:[%s4727_s0 + %s3335_s22]]   ;;  %s3339_s22 = smov 28  }
  0x28   :  { %s3492_s4 = sld [smem:[%s4727_s0 + %s3336_s28]]   ;;  %s3340_s28 = smov 29  }
  0x29   :  { %s3497_s21 = sld [smem:[%s4727_s0 + %s3337_s7]]   ;;  %s3341_s7 = smov 30  }
  0x2a   :  { %s3502_s17 = sld [smem:[%s4727_s0 + %s3338_s15]]   ;;  %s3342_s15 = smov 31  }
  0x2d   :  { %4747 = sst [smem:[#allocation15_spill]] %s3487_s27 }
  0x2e   :  { %4748 = sst [smem:[#allocation16_spill]] %s3492_s4 }
  0x2f   :  { %4749 = sst [smem:[#allocation17_spill]] %s3497_s21 }
  0x30   :  { %4750 = sst [smem:[#allocation18_spill]] %s3502_s17 }
  0x31   :  { %s3507_s27 = sld [smem:[%s4727_s0 + %s3339_s22]]   ;;  %s3343_s22 = smov 32  }
  0x32   :  { %s3512_s4 = sld [smem:[%s4727_s0 + %s3340_s28]]   ;;  %s3344_s28 = smov 33  }
  0x33   :  { %s3517_s21 = sld [smem:[%s4727_s0 + %s3341_s7]]   ;;  %s3345_s7 = smov 34  }
  0x34   :  { %s3522_s17 = sld [smem:[%s4727_s0 + %s3342_s15]]   ;;  %s3346_s15 = smov 35  }
  0x37   :  { %4751 = sst [smem:[#allocation19_spill]] %s3507_s27 }
  0x38   :  { %4752 = sst [smem:[#allocation20_spill]] %s3512_s4 }
  0x39   :  { %4753 = sst [smem:[#allocation21_spill]] %s3517_s21 }
  0x3a   :  { %4754 = sst [smem:[#allocation22_spill]] %s3522_s17 }
  0x3b   :  { %s3527_s27 = sld [smem:[%s4727_s0 + %s3343_s22]]   ;;  %s3347_s22 = smov 36  }
  0x3c   :  { %s3532_s4 = sld [smem:[%s4727_s0 + %s3344_s28]]   ;;  %s3348_s28 = smov 37  }
  0x3d   :  { %s3537_s21 = sld [smem:[%s4727_s0 + %s3345_s7]]   ;;  %s3349_s7 = smov 38  }
  0x3e   :  { %s3542_s17 = sld [smem:[%s4727_s0 + %s3346_s15]]  }
  0x41   :  { %4755 = sst [smem:[#allocation23_spill]] %s3527_s27 }
  0x42   :  { %4756 = sst [smem:[#allocation24_spill]] %s3532_s4 }
  0x43   :  { %4757 = sst [smem:[#allocation25_spill]] %s3537_s21 }
  0x44   :  { %s3547_s27 = sld [smem:[%s4727_s0 + %s3347_s22]]  }
  0x45   :  { %s3552_s4 = sld [smem:[%s4727_s0 + %s3348_s28]]  }
  0x46   :  { %s3557_s21 = sld [smem:[%s4727_s0 + %s3349_s7]]  }
  0x47   :  { %v179_v0 = vld [vmem:[%s3392_s25 + $0x78] sm:$0xff]  ;;  %v178_v1 = vld [vmem:[%s3392_s25 + $0x70] sm:$0xff]  ;;  %v177_v2 = vld [vmem:[%s3392_s25 + $0x68] sm:$0xff]  ;;  %vm192_vm0 = vcmask 523264  }
  0x48   :  { %208 = vmatpush.msra.mxu0 %v179_v0  ;;  %v187_v3 = vld [vmem:[%s3392_s25 + $0xb8] sm:$0xff]  ;;  %v176_v4 = vld [vmem:[%s3392_s25 + $0x60] sm:$0xff]  ;;  %v186_v5 = vld [vmem:[%s3392_s25 + $0xb0] sm:$0xff] }
  0x49   :  { %248 = vmatpush.msra.mxu1 %v187_v3  ;;  %v185_v6 = vld [vmem:[%s3392_s25 + $0xa8] sm:$0xff]  ;;  %v175_v7 = vld [vmem:[%s3392_s25 + $0x58] sm:$0xff]  ;;  %v184_v8 = vld [vmem:[%s3392_s25 + $0xa0] sm:$0xff] }
  0x4a   :  { %209 = vmatpush.msra.mxu0 %v178_v1  ;;  %v174_v9 = vld [vmem:[%s3392_s25 + $0x50] sm:$0xff]  ;;  %v173_v10 = vld [vmem:[%s3392_s25 + $0x48] sm:$0xff]  ;;  %v183_v11 = vld [vmem:[%s3392_s25 + $0x98] sm:$0xff] }
  0x4b   :  { %249 = vmatpush.msra.mxu1 %v186_v5  ;;  %v182_v12 = vld [vmem:[%s3392_s25 + $0x90] sm:$0xff]  ;;  %v172_v13 = vld [vmem:[%s3392_s25 + $0x40] sm:$0xff]  ;;  %v181_v14 = vld [vmem:[%s3392_s25 + $0x88] sm:$0xff] }
  0x4c   :  { %210 = vmatpush.msra.mxu0 %v177_v2  ;;  %v171_v15 = vld [vmem:[%s3392_s25 + $0x38] sm:$0xff]  ;;  %v180_v16 = vld [vmem:[%s3392_s25 + $0x80] sm:$0xff]  ;;  %v170_v17 = vld [vmem:[%s3392_s25 + $0x30] sm:$0xff] }
  0x4d   :  { %250 = vmatpush.msra.mxu1 %v185_v6  ;;  %v155_v18 = vld [vmem:[%s3367_s5 + $0x8] sm:$0xff] }
  0x4e   :  { %211 = vmatpush.msra.mxu0 %v176_v4 }
  0x4f   :  { %251 = vmatpush.msra.mxu1 %v184_v8 }
  0x50   :  { %212 = vmatpush.msra.mxu0 %v175_v7 }
  0x51   :  { %252 = vmatpush.msra.mxu1 %v183_v11 }
  0x52   :  { %213 = vmatpush.msra.mxu0 %v174_v9 }
  0x53   :  { %253 = vmatpush.msra.mxu1 %v182_v12 }
  0x54   :  { %214 = vmatpush.msra.mxu0 %v173_v10 }
  0x55   :  { %254 = vmatpush.msra.mxu1 %v181_v14 }
  0x56   :  { %215 = vmatpush.msra.mxu0 %v172_v13 }
  0x57   :  { %83 = vsyncpa [#allocation3], 0  ;;  %v169_v19 = vld [vmem:[%s3392_s25 + $0x28] sm:$0xff]  ;;  %255 = vmatpush.msra.mxu1 %v180_v16  ;;  %v168_v20 = vld [vmem:[%s3392_s25 + $0x20] sm:$0xff]  ;;  %vm292_vm1 = vcmask 261120   ;;  %v3350_v6 = vmov 32.0  }
  0x58   :  { %216 = vmatpush.msra.mxu0 %v171_v15  ;;  %2874 = vmatmul.msk.f32.vlgmr.msra.gmra.mxu1 %vm192_vm0, %v155_v18  ;;  %v167_v21 = vld [vmem:[%s3392_s25 + $0x18] sm:$0xff]  ;;  %v166_v22 = vld [vmem:[%s3392_s25 + $0x10] sm:$0xff]  ;;  %v165_v24 = vld [vmem:[%s3392_s25 + $0x8] sm:$0xff]  ;;  %3124 = vrcp.f32 %v3350_v6  ;;  %s3351_s0 = smov 96   ;;  %s4771_s15 = sld [smem:[#allocation19_spill]] }
  0x59   :  { %v157_v23 = vld [vmem:[%s3367_s5 + $0x18] sm:$0xff]  ;;  %v164_v25 = vld [vmem:[%s3392_s25] sm:$0xff]  ;;  %v159_v27 = vld [vmem:[%s3367_s5 + $0x28] sm:$0xff]  ;;  %s4760_s25 = sld [smem:[#allocation9_spill]]  ;;  %s3357_s1 = smov 127  }
  0x5a   :  { %217 = vmatpush.msra.mxu0 %v170_v17  ;;  %v154_v26 = vld [vmem:[%s3367_s5] sm:$0xff]  ;;  %v156_v28 = vld [vmem:[%s3367_s5 + $0x10] sm:$0xff]  ;;  %v161_v29 = vld [vmem:[%s3367_s5 + $0x38] sm:$0xff]  ;;  %s4772_s16 = sld [smem:[#allocation22_spill]]  ;;  %s3358_s2 = smov [#allocation2]  }
  0x5b   :  { %v158_v30 = vld [vmem:[%s3367_s5 + $0x20] sm:$0xff]  ;;  %v163_v31 = vld [vmem:[%s3367_s5 + $0x48] sm:$0xff]  ;;  %v160_v32 = vld [vmem:[%s3367_s5 + $0x30] sm:$0xff]  ;;  %s4773_s18 = sld [smem:[#allocation21_spill]]  ;;  %s4701_s7 = sshll.u32 %s3358_s2, 4  ;;  %s2820_s7 = int_to_ptr.vmem [resolvable:$true] %s4701_s7 }
  0x5c   :  { %218 = vmatpush.msra.mxu0 %v169_v19  ;;  %v162_v33 = vld [vmem:[%s3367_s5 + $0x40] sm:$0xff]  ;;  %v273_v45 = vld [vmem:[%s3372_s9 + $0x8] sm:$0xff]  ;;  %v274_v52 = vld [vmem:[%s3372_s9 + $0x10] sm:$0xff]  ;;  %s3352_s5 = smov 64   ;;  %s4774_s22 = sld [smem:[#allocation24_spill]] }
  0x5d   :  { %v3105_v35 = vld [vmem:[%s3397_s29] ss:$0 sm:$0xff]  ;;  %v275_v59 = vld [vmem:[%s3372_s9 + $0x18] sm:$0xff]  ;;  %s4761_s29 = sld [smem:[#allocation12_spill]]  ;;  %s2821_s10 = sshll.u32 %s3557_s21, 4  ;;  %s2822_s10 = int_to_ptr.hbm [resolvable:$true] %s2821_s10 }
  0x5e   :  { %219 = vmatpush.msra.mxu0 %v168_v20  ;;  %v272_v38 = vld [vmem:[%s3372_s9] sm:$0xff]  ;;  %v3125_v7 = vpop.eup %3124  ;;  %s4775_s23 = sld [smem:[#allocation23_spill]]  ;;  %s3298_s11 = sshra.s32 %s2822_s10, 4  ;;  %s3299_s11 = int_to_ptr.hbm [resolvable:$true] %s3298_s11 }
  0x5f   :  { %v276_v2 = vld [vmem:[%s3372_s9 + $0x20] sm:$0xff]  ;;  %v309_v8 = vmul.f32 32.0, %v3125_v7  ;;  %vm313_vm2 = vweird.f32 %v3125_v7  ;;  %s4758_s9 = sld [smem:[#allocation8_spill]]  ;;  %p3303_p1 = scmp.lt.s32.totalorder %s3299_s11, %s3557_s21 }
  0x60   :  { %220 = vmatpush.msra.mxu0 %v167_v21  ;;  %2875 = vmatmul.msk.f32.gmra.mxu1 %vm192_vm0, %v157_v23  ;;  %s4776_s26 = sld [smem:[#allocation25_spill]] }
  0x61   :  { %v310_v9 = vsub.f32 1.0, %v309_v8  ;;  %s4779_s28 = sld [smem:[#allocation5_spill]] }
  0x62   :  { %221 = vmatpush.msra.mxu0 %v166_v22 }
  0x63   :  { %v311_v10 = vmul.f32 %v3125_v7, %v310_v9 }
  0x64   :  { %222 = vmatpush.msra.mxu0 %v165_v24 }
  0x65   :  { %v312_v11 = vadd.f32 %v3125_v7, %v311_v10 }
  0x66   :  { %223 = vmatpush.msra.mxu0 %v164_v25 }
  0x67   :  { %224 = vmatmul.f32.vlgmr.msra.gmra.mxu0 %v154_v26  ;;  %v3624_v12 = vsel %vm313_vm2, %v3125_v7, %v312_v11 }
  0x68   :  { %2876 = vmatmul.msk.f32.gmra.mxu1 %vm192_vm0, %v159_v27 }
  0x6f   :  { %227 = vmatmul.f32.gmra.mxu0 %v156_v28 }
  0x70   :  { %2877 = vmatmul.msk.f32.gmra.mxu1 %vm192_vm0, %v161_v29 }
  0x77   :  { %230 = vmatmul.f32.gmra.mxu0 %v158_v30 }
  0x78   :  { %2878 = vmatmul.msk.f32.gmra.mxu1 %vm192_vm0, %v163_v31 }
  0x7f   :  { %233 = vmatmul.f32.gmra.mxu0 %v160_v32 }
  0x87   :  { %236 = vmatmul.f32.gmra.mxu0 %v162_v33 }
  0xd5   :  { %v257_v34 = vpop.f32.mrf.mxu1 }
  0xdd   :  { %v260_v39 = vpop.f32.mrf.mxu1 }
  0xe4   :  { %v225_v36 = vpop.f32.mrf.mxu0 }
  0xe5   :  { %v226_v37 = vadd.f32 %v3105_v35, %v225_v36  ;;  %v263_v47 = vpop.f32.mrf.mxu1 }
  0xe7   :  { %v258_v40 = vadd.f32 %v257_v34, %v226_v37 }
  0xe9   :  { %v3600_v41 = vadd.f32 %v272_v38, %v258_v40  ;;  %v431_v38 = vld [vmem:[%s3412_s14 + $0x18] sm:$0xff]  ;;  %v429_v40 = vld [vmem:[%s3412_s14 + $0x8] sm:$0xff] }
  0xea   :  { %463 = vmatpush.msra.mxu2 %v431_v38 }
  0xeb   :  { %v293_v42 = vsel %vm292_vm1, %v3600_v41, 0.0 }
  0xec   :  { %v228_v43 = vpop.f32.mrf.mxu0  ;;  %294 = vadd.xlane.f32.xlu0 %v293_v42  ;;  %v428_v42 = vld [vmem:[%s3412_s14] sm:$0xff] }
  0xed   :  { %v229_v44 = vadd.f32 %v3105_v35, %v228_v43  ;;  %v266_v55 = vpop.f32.mrf.mxu1 }
  0xef   :  { %v261_v46 = vadd.f32 %v260_v39, %v229_v44  ;;  %v430_v39 = vld [vmem:[%s3412_s14 + $0x10] sm:$0xff]  ;;  %s4764_s14 = sld [smem:[#allocation13_spill]] }
  0xf0   :  { %464 = vmatpush.msra.mxu2 %v430_v39 }
  0xf1   :  { %v3605_v48 = vadd.f32 %v273_v45, %v261_v46 }
  0xf2   :  { %465 = vmatpush.msra.mxu2 %v429_v40 }
  0xf3   :  { %v296_v49 = vsel %vm292_vm1, %v3605_v48, 0.0 }
  0xf4   :  { %v231_v50 = vpop.f32.mrf.mxu0  ;;  %297 = vadd.xlane.f32.xlu0 %v296_v49  ;;  %466 = vmatpush.msra.mxu2 %v428_v42 }
  0xf5   :  { %v232_v51 = vadd.f32 %v3105_v35, %v231_v50  ;;  %v269_v0 = vpop.f32.mrf.mxu1 }
  0xf7   :  { %v264_v53 = vadd.f32 %v263_v47, %v232_v51 }
  0xf9   :  { %v3610_v54 = vadd.f32 %v274_v52, %v264_v53 }
  0xfb   :  { %v299_v56 = vsel %vm292_vm1, %v3610_v54, 0.0 }
  0xfc   :  { %v234_v57 = vpop.f32.mrf.mxu0  ;;  %300 = vadd.xlane.f32.xlu1 %v299_v56 }
  0xfd   :  { %v235_v58 = vadd.f32 %v3105_v35, %v234_v57 }
  0xff   :  { %v267_v60 = vadd.f32 %v266_v55, %v235_v58 }
 0x101   :  { %v3615_v61 = vadd.f32 %v275_v59, %v267_v60 }
 0x103   :  { %v302_v62 = vsel %vm292_vm1, %v3615_v61, 0.0 }
 0x104   :  { %v237_v63 = vpop.f32.mrf.mxu0  ;;  %303 = vadd.xlane.f32.xlu1 %v302_v62 }
 0x105   :  { %v238_v1 = vadd.f32 %v3105_v35, %v237_v63  ;;  %v3665_v63 = vld [vmem:[%s3402_s3] ss:$0 sm:$0xff]  ;;  %s4762_s3 = sld [smem:[#allocation10_spill]] }
 0x107   :  { %v270_v3 = vadd.f32 %v269_v0, %v238_v1 }
 0x109   :  { %v3620_v4 = vadd.f32 %v276_v2, %v270_v3  ;;  %v3668_v3 = vld [vmem:[%s3407_s8] ss:$0 sm:$0xff]  ;;  %s4763_s8 = sld [smem:[#allocation11_spill]] }
 0x10b   :  { %v305_v5 = vsel %vm292_vm1, %v3620_v4, 0.0 }
 0x10c   :  { %306 = vadd.xlane.f32.xlu2 %v305_v5 }
 0x15f   :  { %v295_v13 = vpop.xlane.xlu0 %294 }
 0x160   :  { %v315_v14 = vmul.f32 %v3624_v12, %v295_v13 }
 0x162   :  { %v320_v15 = vsub.f32 %v3600_v41, %v315_v14 }
 0x164   :  { %v325_v16 = vmul.f32 %v320_v15, %v320_v15 }
 0x166   :  { %v330_v17 = vsel %vm292_vm1, %v325_v16, 0.0 }
 0x167   :  { %331 = vadd.xlane.f32.xlu2 %v330_v17  ;;  %v298_v18 = vpop.xlane.xlu0 %297 }
 0x168   :  { %v316_v19 = vmul.f32 %v3624_v12, %v298_v18 }
 0x16a   :  { %v3631_v20 = vsub.f32 %v3605_v48, %v316_v19 }
 0x16c   :  { %v326_v21 = vmul.f32 %v3631_v20, %v3631_v20 }
 0x16e   :  { %v333_v22 = vsel %vm292_vm1, %v326_v21, 0.0 }
 0x16f   :  { %v301_v23 = vpop.xlane.xlu1 %300  ;;  %334 = vadd.xlane.f32.xlu0 %v333_v22 }
 0x170   :  { %v317_v24 = vmul.f32 %v3624_v12, %v301_v23 }
 0x172   :  { %v3638_v25 = vsub.f32 %v3610_v54, %v317_v24 }
 0x174   :  { %v327_v26 = vmul.f32 %v3638_v25, %v3638_v25 }
 0x176   :  { %v336_v27 = vsel %vm292_vm1, %v327_v26, 0.0 }
 0x177   :  { %337 = vadd.xlane.f32.xlu1 %v336_v27  ;;  %v304_v28 = vpop.xlane.xlu1 %303 }
 0x178   :  { %v318_v29 = vmul.f32 %v3624_v12, %v304_v28 }
 0x17a   :  { %v3645_v30 = vsub.f32 %v3615_v61, %v318_v29 }
 0x17c   :  { %v328_v31 = vmul.f32 %v3645_v30, %v3645_v30 }
 0x17e   :  { %v339_v32 = vsel %vm292_vm1, %v328_v31, 0.0 }
 0x17f   :  { %v307_v33 = vpop.xlane.xlu2 %306  ;;  %340 = vadd.xlane.f32.xlu2 %v339_v32 }
 0x180   :  { %v319_v34 = vmul.f32 %v3624_v12, %v307_v33 }
 0x182   :  { %v3652_v35 = vsub.f32 %v3620_v4, %v319_v34 }
 0x184   :  { %v329_v36 = vmul.f32 %v3652_v35, %v3652_v35 }
 0x186   :  { %v342_v37 = vsel %vm292_vm1, %v329_v36, 0.0 }
 0x187   :  { %343 = vadd.xlane.f32.xlu0 %v342_v37 }
 0x1da   :  { %v332_v43 = vpop.xlane.xlu2 %331 }
 0x1db   :  { %v345_v44 = vmul.f32 %v332_v43, %v3624_v12 }
 0x1dd   :  { %v350_v45 = vadd.f32 1e-06, %v345_v44 }
 0x1df   :  { %3126 = vrsqrt.f32 %v350_v45  ;;  %vm361_vm4 = vweird.f32 %v350_v45 }
 0x1e2   :  { %v335_v46 = vpop.xlane.xlu0 %334 }
 0x1e3   :  { %v346_v47 = vmul.f32 %v335_v46, %v3624_v12 }
 0x1e5   :  { %v3127_v49 = vpop.eup %3126  ;;  %v351_v50 = vadd.f32 1e-06, %v346_v47 }
 0x1e6   :  { %v356_v51 = vmul.f32 %v3127_v49, %v350_v45  ;;  %vm362_vm3 = vweird.f32 %v3127_v49 }
 0x1e7   :  { %3128 = vrsqrt.f32 %v351_v50  ;;  %vm363_vm5 = vmor %vm361_vm4, %vm362_vm3  ;;  %vm371_vm7 = vweird.f32 %v351_v50 }
 0x1e8   :  { %v357_v52 = vmul.f32 %v3127_v49, %v356_v51 }
 0x1ea   :  { %v358_v53 = vmul.f32 0.5, %v357_v52  ;;  %v338_v55 = vpop.xlane.xlu1 %337 }
 0x1eb   :  { %v347_v56 = vmul.f32 %v338_v55, %v3624_v12 }
 0x1ec   :  { %v359_v57 = vsub.f32 1.5, %v358_v53 }
 0x1ed   :  { %v3129_v58 = vpop.eup %3128  ;;  %v352_v59 = vadd.f32 1e-06, %v347_v56 }
 0x1ee   :  { %v360_v60 = vmul.f32 %v3127_v49, %v359_v57  ;;  %v366_v62 = vmul.f32 %v3129_v58, %v351_v50  ;;  %vm372_vm6 = vweird.f32 %v3129_v58  ;;  %v3108_v57 = vld [vmem:[%s3417_s19] ss:$0 sm:$0xff]  ;;  %s4765_s19 = sld [smem:[#allocation14_spill]] }
 0x1ef   :  { %3130 = vrsqrt.f32 %v352_v59  ;;  %vm373_vm8 = vmor %vm371_vm7, %vm372_vm6  ;;  %vm381_vm10 = vweird.f32 %v352_v59 }
 0x1f0   :  { %v364_v0 = vsel %vm363_vm5, %v3127_v49, %v360_v60  ;;  %v367_v1 = vmul.f32 %v3129_v58, %v366_v62  ;;  %vm560_vm5 = vcmask 326656  }
 0x1f1   :  { %v405_v2 = vmul.f32 %v364_v0, %v320_v15 }
 0x1f2   :  { %v368_v5 = vmul.f32 0.5, %v367_v1  ;;  %v341_v6 = vpop.xlane.xlu2 %340 }
 0x1f3   :  { %v348_v7 = vmul.f32 %v341_v6, %v3624_v12  ;;  %v414_v8 = vmul.f32 %v3665_v63, %v405_v2 }
 0x1f4   :  { %v369_v9 = vsub.f32 1.5, %v368_v5 }
 0x1f5   :  { %v3131_v10 = vpop.eup %3130  ;;  %v353_v11 = vadd.f32 1e-06, %v348_v7  ;;  %v423_v13 = vadd.f32 %v3668_v3, %v414_v8  ;;  %v3720_v8 = vld [vmem:[%s3377_s13] sm:$0xff] }
 0x1f6   :  { %v370_v14 = vmul.f32 %v3129_v58, %v369_v9  ;;  %v376_v16 = vmul.f32 %v3131_v10, %v352_v59  ;;  %vm382_vm9 = vweird.f32 %v3131_v10  ;;  %vm287_vm4 = vcmp.gt.f32.partialorder %v3720_v8, 0.5 }
 0x1f7   :  { %3132 = vrsqrt.f32 %v353_v11  ;;  %2879 = vmatmul.msk.f32.vlgmr.msra.gmra.mxu2 %vm292_vm1, %v423_v13  ;;  %vm383_vm11 = vmor %vm381_vm10, %vm382_vm9  ;;  %vm391_vm13 = vweird.f32 %v353_v11 }
 0x1f8   :  { %v374_v15 = vsel %vm373_vm8, %v3129_v58, %v370_v14  ;;  %v377_v17 = vmul.f32 %v3131_v10, %v376_v16  ;;  %v3727_v14 = vld [vmem:[%s3377_s13 + $0x8] sm:$0xff] }
 0x1f9   :  { %v406_v18 = vmul.f32 %v374_v15, %v3631_v20  ;;  %vm288_vm6 = vcmp.gt.f32.partialorder %v3727_v14, 0.5 }
 0x1fa   :  { %v378_v19 = vmul.f32 0.5, %v377_v17  ;;  %v344_v21 = vpop.xlane.xlu0 %343 }
 0x1fb   :  { %v349_v22 = vmul.f32 %v344_v21, %v3624_v12  ;;  %v415_v23 = vmul.f32 %v3665_v63, %v406_v18 }
 0x1fc   :  { %v379_v24 = vsub.f32 1.5, %v378_v19  ;;  %v3734_v19 = vld [vmem:[%s3377_s13 + $0x10] sm:$0xff] }
 0x1fd   :  { %v3133_v26 = vpop.eup %3132  ;;  %v354_v27 = vadd.f32 1e-06, %v349_v22  ;;  %v424_v28 = vadd.f32 %v3668_v3, %v415_v23  ;;  %vm289_vm7 = vcmp.gt.f32.partialorder %v3734_v19, 0.5 }
 0x1fe   :  { %v380_v29 = vmul.f32 %v3131_v10, %v379_v24  ;;  %v386_v31 = vmul.f32 %v3133_v26, %v353_v11  ;;  %vm392_vm12 = vweird.f32 %v3133_v26 }
 0x1ff   :  { %3134 = vrsqrt.f32 %v354_v27  ;;  %2880 = vmatmul.msk.f32.gmra.mxu2 %vm292_vm1, %v424_v28  ;;  %vm393_vm14 = vmor %vm391_vm13, %vm392_vm12  ;;  %vm401_vm2 = vweird.f32 %v354_v27 }
 0x200   :  { %v384_v20 = vsel %vm383_vm11, %v3131_v10, %v380_v29  ;;  %v387_v32 = vmul.f32 %v3133_v26, %v386_v31 }
 0x201   :  { %v407_v33 = vmul.f32 %v384_v20, %v3638_v25  ;;  %v3748_v20 = vld [vmem:[%s3377_s13 + $0x20] sm:$0xff] }
 0x202   :  { %v388_v34 = vmul.f32 0.5, %v387_v32  ;;  %vm291_vm9 = vcmp.gt.f32.partialorder %v3748_v20, 0.5 }
 0x203   :  { %v416_v36 = vmul.f32 %v3665_v63, %v407_v33 }
 0x204   :  { %v389_v37 = vsub.f32 1.5, %v388_v34 }
 0x205   :  { %v3135_v38 = vpop.eup %3134  ;;  %v425_v39 = vadd.f32 %v3668_v3, %v416_v36 }
 0x206   :  { %v390_v40 = vmul.f32 %v3133_v26, %v389_v37  ;;  %v396_v42 = vmul.f32 %v3135_v38, %v354_v27  ;;  %vm402_vm15 = vweird.f32 %v3135_v38 }
 0x207   :  { %2881 = vmatmul.msk.f32.gmra.mxu2 %vm292_vm1, %v425_v39  ;;  %vm403_vm3 = vmor %vm401_vm2, %vm402_vm15 }
 0x208   :  { %v394_v43 = vsel %vm393_vm14, %v3133_v26, %v390_v40  ;;  %v397_v44 = vmul.f32 %v3135_v38, %v396_v42  ;;  %v3741_v26 = vld [vmem:[%s3377_s13 + $0x18] sm:$0xff]  ;;  %s4759_s13 = sld [smem:[#allocation7_spill]] }
 0x209   :  { %v408_v45 = vmul.f32 %v394_v43, %v3645_v30  ;;  %vm290_vm8 = vcmp.gt.f32.partialorder %v3741_v26, 0.5 }
 0x20a   :  { %v398_v46 = vmul.f32 0.5, %v397_v44 }
 0x20b   :  { %v417_v25 = vmul.f32 %v3665_v63, %v408_v45 }
 0x20c   :  { %v399_v47 = vsub.f32 1.5, %v398_v46 }
 0x20d   :  { %v426_v49 = vadd.f32 %v3668_v3, %v417_v25 }
 0x20e   :  { %v400_v50 = vmul.f32 %v3135_v38, %v399_v47 }
 0x20f   :  { %2882 = vmatmul.msk.f32.gmra.mxu2 %vm292_vm1, %v426_v49 }
 0x210   :  { %v404_v51 = vsel %vm403_vm3, %v3135_v38, %v400_v50 }
 0x211   :  { %v409_v52 = vmul.f32 %v404_v51, %v3652_v35 }
 0x213   :  { %v418_v53 = vmul.f32 %v3665_v63, %v409_v52 }
 0x215   :  { %v427_v30 = vadd.f32 %v3668_v3, %v418_v53 }
 0x217   :  { %2883 = vmatmul.msk.f32.gmra.mxu2 %vm292_vm1, %v427_v30 }
 0x27a   :  { %v468_v55 = vpop.f32.mrf.mxu2 }
 0x27b   :  { %v3702_v1 = vadd.f32 %v3108_v57, %v468_v55 }
 0x282   :  { %v471_v56 = vpop.f32.mrf.mxu2 }
 0x283   :  { %v3697_v63 = vadd.f32 %v3108_v57, %v471_v56 }
 0x28a   :  { %v474_v58 = vpop.f32.mrf.mxu2 }
 0x28b   :  { %v3692_v59 = vadd.f32 %v3108_v57, %v474_v58 }
 0x28d   :  { %492 = vrot.lane.b32.xlu0 %v3692_v59, %s3351_s0 }
 0x292   :  { %v477_v60 = vpop.f32.mrf.mxu2 }
 0x293   :  { %v478_v62 = vadd.f32 %v3108_v57, %v477_v60 }
 0x295   :  { %494 = vrot.lane.b32.xlu2 %v478_v62, %s3351_s0 }
 0x29a   :  { %v480_v35 = vpop.f32.mrf.mxu2 }
 0x29b   :  { %v481_v0 = vadd.f32 %v3108_v57, %v480_v35 }
 0x29d   :  { %490 = vrot.lane.b32.xlu2 %v3697_v63, %s3351_s0  ;;  %496 = vrot.lane.b32.xlu1 %v481_v0, %s3351_s0  ;;  %v3039_v37 = vpack.i.bf16 %v478_v62, %v481_v0 }
 0x2a5   :  { %488 = vrot.lane.b32.xlu1 %v3702_v1, %s3351_s0 }
 0x2ef   :  { %v495_v3 = vpop.permute.xlu2 %494 }
 0x2f7   :  { %v491_v6 = vpop.permute.xlu2 %490 }
 0x2ff   :  { %v493_v5 = vpop.permute.xlu0 %492 }
 0x30f   :  { %v497_v2 = vpop.permute.xlu1 %496 }
 0x310   :  { %2884 = vmatpush.xpose.msk.msra.mxu3 %vm292_vm1, %v497_v2 }
 0x314   :  { %2885 = vmatpush.xpose.msk.msra.mxu3 %vm292_vm1, %v495_v3 }
 0x317   :  { %v489_v7 = vpop.permute.xlu1 %488 }
 0x318   :  { %2886 = vmatpush.xpose.msk.msra.mxu3 %vm292_vm1, %v493_v5 }
 0x31c   :  { %2887 = vmatpush.xpose.msk.msra.mxu3 %vm292_vm1, %v491_v6 }
 0x320   :  { %2888 = vmatpush.xpose.msk.msra.mxu3 %vm292_vm1, %v489_v7 }
 0x323   :  { %2889 = vmatmul.msk.f32.vlgmr.msra.gmra.mxu3 %vm292_vm1, %v3702_v1 }
 0x32b   :  { %2890 = vmatmul.msk.f32.gmra.mxu3 %vm292_vm1, %v3697_v63 }
 0x333   :  { %2891 = vmatmul.msk.f32.gmra.mxu3 %vm292_vm1, %v3692_v59 }
 0x33b   :  { %2892 = vmatmul.msk.f32.gmra.mxu3 %vm292_vm1, %v478_v62  ;;  %v3044_v62 = vpack.i.bf16 %v3697_v63, %v3692_v59 }
 0x343   :  { %2893 = vmatmul.msk.f32.gmra.mxu3 %vm292_vm1, %v481_v0 }
 0x3a6   :  { %v535_v9 = vpop.f32.mrf.mxu3 }
 0x3a7   :  { %v550_v10 = vmul.f32 0.17677669, %v535_v9 }
 0x3a9   :  { %v555_v11 = vsel %vm287_vm4, %v550_v10, -1e+30 }
 0x3aa   :  { %v561_v13 = vsel %vm560_vm5, %v555_v11, -inf }
 0x3ab   :  { %562 = vmax.xlane.f32.xlu0 %v561_v13 }
 0x3ae   :  { %v538_v16 = vpop.f32.mrf.mxu3 }
 0x3af   :  { %v551_v15 = vmul.f32 0.17677669, %v538_v16 }
 0x3b1   :  { %v556_v17 = vsel %vm288_vm6, %v551_v15, -1e+30 }
 0x3b2   :  { %v564_v18 = vsel %vm560_vm5, %v556_v17, -inf }
 0x3b3   :  { %565 = vmax.xlane.f32.xlu2 %v564_v18 }
 0x3b6   :  { %v541_v21 = vpop.f32.mrf.mxu3 }
 0x3b7   :  { %v552_v22 = vmul.f32 0.17677669, %v541_v21 }
 0x3b9   :  { %v557_v23 = vsel %vm289_vm7, %v552_v22, -1e+30 }
 0x3ba   :  { %v567_v24 = vsel %vm560_vm5, %v557_v23, -inf }
 0x3bb   :  { %568 = vmax.xlane.f32.xlu1 %v567_v24 }
 0x3be   :  { %v544_v27 = vpop.f32.mrf.mxu3 }
 0x3bf   :  { %v553_v28 = vmul.f32 0.17677669, %v544_v27 }
 0x3c1   :  { %v558_v29 = vsel %vm290_vm8, %v553_v28, -1e+30 }
 0x3c2   :  { %v570_v31 = vsel %vm560_vm5, %v558_v29, -inf }
 0x3c3   :  { %571 = vmax.xlane.f32.xlu0 %v570_v31 }
 0x3c6   :  { %v547_v32 = vpop.f32.mrf.mxu3 }
 0x3c7   :  { %v554_v33 = vmul.f32 0.17677669, %v547_v32 }
 0x3c9   :  { %v559_v34 = vsel %vm291_vm9, %v554_v33, -1e+30 }
 0x3ca   :  { %v573_v36 = vsel %vm560_vm5, %v559_v34, -inf }
 0x3cb   :  { %574 = vmax.xlane.f32.xlu2 %v573_v36 }
 0x3e3   :  { %3040 = vrot.lane.b32.xlu2 %v3039_v37, %s3352_s5 }
 0x41e   :  { %v563_v38 = vpop.xlane.xlu0 %562 }
 0x41f   :  { %v576_v39 = vsub.f32 %v555_v11, %v563_v38 }
 0x421   :  { %v581_v40 = vmul.f32 1.442695, %v576_v39 }
 0x423   :  { %3136 = vpow2.f32 %v581_v40 }
 0x426   :  { %v566_v42 = vpop.xlane.xlu2 %565 }
 0x427   :  { %v577_v43 = vsub.f32 %v556_v17, %v566_v42 }
 0x429   :  { %v3755_v44 = vpop.eup %3136  ;;  %v583_v45 = vmul.f32 1.442695, %v577_v43 }
 0x42a   :  { %v591_v46 = vsel %vm560_vm5, %v3755_v44, 0.0 }
 0x42b   :  { %3138 = vpow2.f32 %v583_v45  ;;  %592 = vadd.xlane.f32.xlu1 %v591_v46 }
 0x42e   :  { %v569_v25 = vpop.xlane.xlu1 %568 }
 0x42f   :  { %v578_v47 = vsub.f32 %v557_v23, %v569_v25 }
 0x431   :  { %v3759_v49 = vpop.eup %3138  ;;  %v585_v50 = vmul.f32 1.442695, %v578_v47 }
 0x432   :  { %v594_v51 = vsel %vm560_vm5, %v3759_v49, 0.0 }
 0x433   :  { %3140 = vpow2.f32 %v585_v50  ;;  %595 = vadd.xlane.f32.xlu0 %v594_v51 }
 0x436   :  { %v572_v52 = vpop.xlane.xlu0 %571 }
 0x437   :  { %v579_v53 = vsub.f32 %v558_v29, %v572_v52 }
 0x439   :  { %v3763_v30 = vpop.eup %3140  ;;  %v587_v55 = vmul.f32 1.442695, %v579_v53 }
 0x43a   :  { %v597_v56 = vsel %vm560_vm5, %v3763_v30, 0.0 }
 0x43b   :  { %3142 = vpow2.f32 %v587_v55  ;;  %598 = vadd.xlane.f32.xlu0 %v597_v56 }
 0x43e   :  { %v575_v57 = vpop.xlane.xlu2 %574 }
 0x43f   :  { %v580_v3 = vsub.f32 %v559_v34, %v575_v57 }
 0x441   :  { %v3767_v58 = vpop.eup %3142  ;;  %v589_v5 = vmul.f32 1.442695, %v580_v3 }
 0x442   :  { %v600_v60 = vsel %vm560_vm5, %v3767_v58, 0.0 }
 0x443   :  { %601 = vadd.xlane.f32.xlu2 %v600_v60  ;;  %3144 = vpow2.f32 %v589_v5 }
 0x444   :  { %3045 = vrot.lane.b32.xlu1 %v3044_v62, %s3352_s5 }
 0x446   :  { %v3041_v35 = vpop.permute.xlu2 %3040 }
 0x447   :  { %v3042_v0 = vunpack.i.l.bf16 %v3041_v35  ;;  %v3043_v2 = vunpack.i.h.bf16 %v3041_v35 }
 0x449   :  { %722 = vmatpush.msrb.mxu2 %v3042_v0  ;;  %v3776_v6 = vpop.eup %3144 }
 0x44a   :  { %v603_v7 = vsel %vm560_vm5, %v3776_v6, 0.0 }
 0x44b   :  { %723 = vmatpush.msrb.mxu2 %v3043_v2 }
 0x44f   :  { %681 = vrot.lane.b32.xlu0 %v3702_v1, %s3352_s5 }
 0x46e   :  { %604 = vadd.xlane.f32.xlu1 %v603_v7 }
 0x49e   :  { %v593_v59 = vpop.xlane.xlu1 %592 }
 0x49f   :  { %3146 = vrcp.f32 %v593_v59  ;;  %v617_v27 = vand.u32 2147483648, %v593_v59  ;;  %vm611_vm11 = vweird.f32 %v593_v59  ;;  %v615_v28 = vand.u32 2147483647, %v593_v59 }
 0x4a1   :  { %v618_v34 = vor.u32 1.1754944e-38, %v617_v27  ;;  %vm616_vm13 = vcmp.eq.f32.partialorder %v615_v28, 8.507059e+37  ;;  %v743_v27 = vld [vmem:[%s3422_s24] sm:$0xff] }
 0x4a5   :  { %v3147_v9 = vpop.eup %3146 }
 0x4a6   :  { %v596_v63 = vpop.xlane.xlu0 %595  ;;  %v607_v10 = vmul.f32 %v3147_v9, %v593_v59  ;;  %vm612_vm10 = vweird.f32 %v3147_v9  ;;  %v746_v59 = vld [vmem:[%s3422_s24 + $0x18] sm:$0xff] }
 0x4a7   :  { %3148 = vrcp.f32 %v596_v63  ;;  %vm613_vm12 = vmor %vm611_vm11, %vm612_vm10  ;;  %v632_v40 = vand.u32 2147483648, %v596_v63  ;;  %vm626_vm15 = vweird.f32 %v596_v63  ;;  %v630_v45 = vand.u32 2147483647, %v596_v63  ;;  %774 = vmatpush.msrb.mxu1 %v746_v59 }
 0x4a8   :  { %v608_v11 = vsub.f32 1.0, %v607_v10  ;;  %v744_v10 = vld [vmem:[%s3422_s24 + $0x8] sm:$0xff] }
 0x4a9   :  { %v633_v50 = vor.u32 1.1754944e-38, %v632_v40  ;;  %vm631_vm3 = vcmp.eq.f32.partialorder %v630_v45, 8.507059e+37 }
 0x4aa   :  { %v609_v1 = vmul.f32 %v3147_v9, %v608_v11 }
 0x4ac   :  { %v610_v18 = vadd.f32 %v3147_v9, %v609_v1 }
 0x4ad   :  { %v3149_v16 = vpop.eup %3148 }
 0x4ae   :  { %v599_v13 = vpop.xlane.xlu0 %598  ;;  %v622_v15 = vmul.f32 %v3149_v16, %v596_v63  ;;  %v614_v33 = vsel %vm613_vm12, %v3147_v9, %v610_v18  ;;  %vm627_vm14 = vweird.f32 %v3149_v16  ;;  %v745_v63 = vld [vmem:[%s3422_s24 + $0x10] sm:$0xff]  ;;  %s4766_s24 = sld [smem:[#allocation15_spill]] }
 0x4af   :  { %3150 = vrcp.f32 %v599_v13  ;;  %v619_v36 = vsel %vm616_vm13, %v618_v34, %v614_v33  ;;  %vm628_vm2 = vmor %vm626_vm15, %vm627_vm14  ;;  %v647_v55 = vand.u32 2147483648, %v599_v13  ;;  %vm641_vm11 = vweird.f32 %v599_v13  ;;  %775 = vmatpush.msrb.mxu1 %v745_v63 }
 0x4b0   :  { %v623_v21 = vsub.f32 1.0, %v622_v15  ;;  %v620_v43 = vmul.f32 %v3755_v44, %v619_v36  ;;  %v645_v57 = vand.u32 2147483647, %v599_v13 }
 0x4b1   :  { %v648_v62 = vor.u32 1.1754944e-38, %v647_v55  ;;  %776 = vmatpush.msrb.mxu1 %v744_v10 }
 0x4b2   :  { %v624_v31 = vmul.f32 %v3149_v16, %v623_v21  ;;  %vm646_vm13 = vcmp.eq.f32.partialorder %v645_v57, 8.507059e+37 }
 0x4b3   :  { %777 = vmatpush.msrb.mxu1 %v743_v27 }
 0x4b4   :  { %v625_v38 = vadd.f32 %v3149_v16, %v624_v31 }
 0x4b5   :  { %v3151_v24 = vpop.eup %3150 }
 0x4b6   :  { %v3046_v17 = vpop.permute.xlu1 %3045  ;;  %v602_v22 = vpop.xlane.xlu2 %601  ;;  %v637_v32 = vmul.f32 %v3151_v24, %v599_v13  ;;  %v629_v47 = vsel %vm628_vm2, %v3149_v16, %v625_v38  ;;  %vm642_vm10 = vweird.f32 %v3151_v24 }
 0x4b7   :  { %v3047_v23 = vunpack.i.l.bf16 %v3046_v17  ;;  %v3048_v29 = vunpack.i.h.bf16 %v3046_v17  ;;  %3152 = vrcp.f32 %v602_v22  ;;  %v634_v51 = vsel %vm631_vm3, %v633_v50, %v629_v47  ;;  %vm643_vm12 = vmor %vm641_vm11, %vm642_vm10 }
 0x4b8   :  { %v638_v37 = vsub.f32 1.0, %v637_v32  ;;  %v635_v56 = vmul.f32 %v3759_v49, %v634_v51  ;;  %v662_v2 = vand.u32 2147483648, %v602_v22  ;;  %vm656_vm15 = vweird.f32 %v602_v22 }
 0x4b9   :  { %724 = vmatpush.msrb.mxu2 %v3047_v23  ;;  %v660_v5 = vand.u32 2147483647, %v602_v22 }
 0x4ba   :  { %v639_v46 = vmul.f32 %v3151_v24, %v638_v37  ;;  %v663_v7 = vor.u32 1.1754944e-38, %v662_v2 }
 0x4bb   :  { %725 = vmatpush.msrb.mxu2 %v3048_v29  ;;  %vm661_vm3 = vcmp.eq.f32.partialorder %v660_v5, 8.507059e+37 }
 0x4bc   :  { %v640_v53 = vadd.f32 %v3151_v24, %v639_v46 }
 0x4bd   :  { %v3153_v39 = vpop.eup %3152 }
 0x4be   :  { %v652_v25 = vmul.f32 %v3153_v39, %v602_v22  ;;  %v644_v60 = vsel %vm643_vm12, %v3151_v24, %v640_v53  ;;  %vm657_vm14 = vweird.f32 %v3153_v39 }
 0x4bf   :  { %v649_v35 = vsel %vm646_vm13, %v648_v62, %v644_v60  ;;  %vm658_vm2 = vmor %vm656_vm15, %vm657_vm14 }
 0x4c0   :  { %v653_v52 = vsub.f32 1.0, %v652_v25  ;;  %v650_v3 = vmul.f32 %v3763_v30, %v649_v35 }
 0x4c1   :  { %v682_v42 = vpop.permute.xlu0 %681 }
 0x4c2   :  { %726 = vmatpush.msrb.mxu2 %v682_v42  ;;  %v654_v44 = vmul.f32 %v3153_v39, %v653_v52 }
 0x4c3   :  { %2894 = vmatmul.msk.f32.vlgmr.msrb.gmra.mxu2 %vm560_vm5, %v620_v43 }
 0x4c4   :  { %v655_v0 = vadd.f32 %v3153_v39, %v654_v44 }
 0x4c6   :  { %v659_v49 = vsel %vm658_vm2, %v3153_v39, %v655_v0 }
 0x4c7   :  { %v664_v9 = vsel %vm661_vm3, %v663_v7, %v659_v49 }
 0x4c8   :  { %v665_v11 = vmul.f32 %v3767_v58, %v664_v9 }
 0x4cb   :  { %2895 = vmatmul.msk.f32.gmra.mxu2 %vm560_vm5, %v635_v56 }
 0x4d3   :  { %2896 = vmatmul.msk.f32.gmra.mxu2 %vm560_vm5, %v650_v3 }
 0x4db   :  { %2897 = vmatmul.msk.f32.gmra.mxu2 %vm560_vm5, %v665_v11 }
 0x4e1   :  { %v605_v13 = vpop.xlane.xlu1 %604 }
 0x4e2   :  { %3154 = vrcp.f32 %v605_v13  ;;  %v677_v15 = vand.u32 2147483648, %v605_v13  ;;  %v675_v18 = vand.u32 2147483647, %v605_v13  ;;  %vm671_vm11 = vweird.f32 %v605_v13 }
 0x4e4   :  { %v678_v22 = vor.u32 1.1754944e-38, %v677_v15  ;;  %vm676_vm13 = vcmp.eq.f32.partialorder %v675_v18, 8.507059e+37  ;;  %v939_v18 = vld [vmem:[%s3442_s20 + $0x18] sm:$0xff] }
 0x4e5   :  { %971 = vmatpush.msrb.mxu3 %v939_v18 }
 0x4e8   :  { %v3155_v30 = vpop.eup %3154 }
 0x4e9   :  { %v667_v16 = vmul.f32 %v3155_v30, %v605_v13  ;;  %vm672_vm10 = vweird.f32 %v3155_v30 }
 0x4ea   :  { %vm673_vm12 = vmor %vm671_vm11, %vm672_vm10 }
 0x4eb   :  { %v668_v1 = vsub.f32 1.0, %v667_v16 }
 0x4ed   :  { %v669_v17 = vmul.f32 %v3155_v30, %v668_v1 }
 0x4ef   :  { %v670_v21 = vadd.f32 %v3155_v30, %v669_v17 }
 0x4f1   :  { %v674_v23 = vsel %vm673_vm12, %v3155_v30, %v670_v21  ;;  %v938_v21 = vld [vmem:[%s3442_s20 + $0x10] sm:$0xff] }
 0x4f2   :  { %v679_v58 = vsel %vm676_vm13, %v678_v22, %v674_v23  ;;  %972 = vmatpush.msrb.mxu3 %v938_v21  ;;  %v937_v22 = vld [vmem:[%s3442_s20 + $0x8] sm:$0xff]  ;;  %v936_v23 = vld [vmem:[%s3442_s20] sm:$0xff]  ;;  %s4770_s20 = sld [smem:[#allocation20_spill]] }
 0x4f3   :  { %v680_v24 = vmul.f32 %v3776_v6, %v679_v58  ;;  %v3109_v6 = vld [vmem:[%s3427_s30] ss:$0 sm:$0xff]  ;;  %s4767_s30 = sld [smem:[#allocation18_spill]] }
 0x4f4   :  { %973 = vmatpush.msrb.mxu3 %v937_v22 }
 0x4f5   :  { %2898 = vmatmul.msk.f32.gmra.mxu2 %vm560_vm5, %v680_v24 }
 0x4f6   :  { %974 = vmatpush.msrb.mxu3 %v936_v23 }
 0x546   :  { %v728_v28 = vpop.f32.mrf.mxu2 }
 0x547   :  { %2899 = vmatmul.msk.f32.vlgmr.msrb.gmra.mxu1 %vm292_vm1, %v728_v28 }
 0x54e   :  { %v731_v29 = vpop.f32.mrf.mxu2 }
 0x54f   :  { %2900 = vmatmul.msk.f32.gmra.mxu1 %vm292_vm1, %v731_v29 }
 0x556   :  { %v734_v31 = vpop.f32.mrf.mxu2 }
 0x557   :  { %2901 = vmatmul.msk.f32.gmra.mxu1 %vm292_vm1, %v734_v31 }
 0x55e   :  { %v737_v32 = vpop.f32.mrf.mxu2 }
 0x55f   :  { %2902 = vmatmul.msk.f32.gmra.mxu1 %vm292_vm1, %v737_v32 }
 0x578   :  { %v740_v33 = vpop.f32.mrf.mxu2 }
 0x579   :  { %2903 = vmatmul.msk.f32.gmra.mxu1 %vm292_vm1, %v740_v33 }
 0x5c4   :  { %v779_v34 = vpop.f32.mrf.mxu1 }
 0x5c5   :  { %v794_v36 = vadd.f32 %v779_v34, %v3600_v41 }
 0x5c7   :  { %v3801_v37 = vadd.f32 %v3109_v6, %v794_v36 }
 0x5c9   :  { %v808_v38 = vsel %vm292_vm1, %v3801_v37, 0.0 }
 0x5ca   :  { %809 = vadd.xlane.f32.xlu0 %v808_v38 }
 0x5cc   :  { %v782_v39 = vpop.f32.mrf.mxu1 }
 0x5cd   :  { %v795_v40 = vadd.f32 %v782_v39, %v3605_v48 }
 0x5cf   :  { %v3806_v42 = vadd.f32 %v3109_v6, %v795_v40 }
 0x5d1   :  { %v811_v43 = vsel %vm292_vm1, %v3806_v42, 0.0 }
 0x5d2   :  { %812 = vadd.xlane.f32.xlu2 %v811_v43 }
 0x5d4   :  { %v785_v45 = vpop.f32.mrf.mxu1 }
 0x5d5   :  { %v796_v46 = vadd.f32 %v785_v45, %v3610_v54 }
 0x5d7   :  { %v3811_v25 = vadd.f32 %v3109_v6, %v796_v46 }
 0x5d9   :  { %v814_v41 = vsel %vm292_vm1, %v3811_v25, 0.0 }
 0x5da   :  { %815 = vadd.xlane.f32.xlu1 %v814_v41  ;;  %v3864_v41 = vld [vmem:[%s3432_s6] ss:$0 sm:$0xff]  ;;  %s4768_s6 = sld [smem:[#allocation16_spill]] }
 0x5dc   :  { %v788_v47 = vpop.f32.mrf.mxu1 }
 0x5dd   :  { %v797_v50 = vadd.f32 %v788_v47, %v3615_v61 }
 0x5df   :  { %v3816_v51 = vadd.f32 %v3109_v6, %v797_v50 }
 0x5e1   :  { %v817_v48 = vsel %vm292_vm1, %v3816_v51, 0.0 }
 0x5e2   :  { %818 = vadd.xlane.f32.xlu2 %v817_v48 }
 0x5f6   :  { %v791_v52 = vpop.f32.mrf.mxu1 }
 0x5f7   :  { %v798_v53 = vadd.f32 %v791_v52, %v3620_v4  ;;  %v3867_v52 = vld [vmem:[%s3437_s12] ss:$0 sm:$0xff]  ;;  %s4769_s12 = sld [smem:[#allocation17_spill]] }
 0x5f9   :  { %v3821_v55 = vadd.f32 %v3109_v6, %v798_v53 }
 0x5fb   :  { %v820_v54 = vsel %vm292_vm1, %v3821_v55, 0.0 }
 0x5fc   :  { %821 = vadd.xlane.f32.xlu0 %v820_v54 }
 0x63d   :  { %v810_v56 = vpop.xlane.xlu0 %809 }
 0x63e   :  { %v823_v57 = vmul.f32 %v810_v56, %v3624_v12 }
 0x640   :  { %v828_v61 = vsub.f32 %v3801_v37, %v823_v57 }
 0x642   :  { %v833_v44 = vmul.f32 %v828_v61, %v828_v61 }
 0x644   :  { %v838_v60 = vsel %vm292_vm1, %v833_v44, 0.0 }
 0x645   :  { %v813_v62 = vpop.xlane.xlu2 %812  ;;  %839 = vadd.xlane.f32.xlu1 %v838_v60 }
 0x646   :  { %v824_v35 = vmul.f32 %v813_v62, %v3624_v12 }
 0x648   :  { %v3830_v4 = vsub.f32 %v3806_v42, %v824_v35 }
 0x64a   :  { %v834_v0 = vmul.f32 %v3830_v4, %v3830_v4 }
 0x64c   :  { %v841_v2 = vsel %vm292_vm1, %v834_v0, 0.0 }
 0x64d   :  { %v816_v3 = vpop.xlane.xlu1 %815  ;;  %842 = vadd.xlane.f32.xlu2 %v841_v2 }
 0x64e   :  { %v825_v5 = vmul.f32 %v816_v3, %v3624_v12 }
 0x650   :  { %v3837_v49 = vsub.f32 %v3811_v25, %v825_v5 }
 0x652   :  { %v835_v7 = vmul.f32 %v3837_v49, %v3837_v49 }
 0x654   :  { %v844_v59 = vsel %vm292_vm1, %v835_v7, 0.0 }
 0x655   :  { %v819_v63 = vpop.xlane.xlu2 %818  ;;  %845 = vadd.xlane.f32.xlu0 %v844_v59 }
 0x656   :  { %v826_v9 = vmul.f32 %v819_v63, %v3624_v12 }
 0x658   :  { %v3844_v10 = vsub.f32 %v3816_v51, %v826_v9 }
 0x65a   :  { %v836_v11 = vmul.f32 %v3844_v10, %v3844_v10 }
 0x65c   :  { %v847_v13 = vsel %vm292_vm1, %v836_v11, 0.0 }
 0x65d   :  { %848 = vadd.xlane.f32.xlu1 %v847_v13 }
 0x66f   :  { %v822_v30 = vpop.xlane.xlu0 %821 }
 0x670   :  { %v827_v16 = vmul.f32 %v822_v30, %v3624_v12 }
 0x672   :  { %v3851_v1 = vsub.f32 %v3821_v55, %v827_v16 }
 0x674   :  { %v837_v15 = vmul.f32 %v3851_v1, %v3851_v1 }
 0x676   :  { %v850_v17 = vsel %vm292_vm1, %v837_v15, 0.0 }
 0x677   :  { %851 = vadd.xlane.f32.xlu2 %v850_v17 }
 0x6b8   :  { %v840_v58 = vpop.xlane.xlu1 %839 }
 0x6b9   :  { %v853_v24 = vmul.f32 %v840_v58, %v3624_v12 }
 0x6bb   :  { %v858_v27 = vadd.f32 1e-06, %v853_v24 }
 0x6bd   :  { %3156 = vrsqrt.f32 %v858_v27  ;;  %vm869_vm15 = vweird.f32 %v858_v27 }
 0x6c0   :  { %v843_v28 = vpop.xlane.xlu2 %842 }
 0x6c1   :  { %v854_v29 = vmul.f32 %v843_v28, %v3624_v12 }
 0x6c3   :  { %v3157_v31 = vpop.eup %3156  ;;  %v859_v32 = vadd.f32 1e-06, %v854_v29 }
 0x6c4   :  { %v864_v33 = vmul.f32 %v3157_v31, %v858_v27  ;;  %vm870_vm14 = vweird.f32 %v3157_v31 }
 0x6c5   :  { %3158 = vrsqrt.f32 %v859_v32  ;;  %vm871_vm2 = vmor %vm869_vm15, %vm870_vm14  ;;  %vm879_vm10 = vweird.f32 %v859_v32 }
 0x6c6   :  { %v865_v6 = vmul.f32 %v3157_v31, %v864_v33 }
 0x6c8   :  { %v866_v34 = vmul.f32 0.5, %v865_v6  ;;  %v846_v36 = vpop.xlane.xlu0 %845 }
 0x6c9   :  { %v855_v38 = vmul.f32 %v846_v36, %v3624_v12 }
 0x6ca   :  { %v867_v39 = vsub.f32 1.5, %v866_v34 }
 0x6cb   :  { %v3159_v40 = vpop.eup %3158  ;;  %v860_v43 = vadd.f32 1e-06, %v855_v38 }
 0x6cc   :  { %v868_v45 = vmul.f32 %v3157_v31, %v867_v39  ;;  %v874_v46 = vmul.f32 %v3159_v40, %v859_v32  ;;  %vm880_vm3 = vweird.f32 %v3159_v40 }
 0x6cd   :  { %3160 = vrsqrt.f32 %v860_v43  ;;  %vm881_vm11 = vmor %vm879_vm10, %vm880_vm3  ;;  %vm889_vm13 = vweird.f32 %v860_v43 }
 0x6ce   :  { %v872_v47 = vsel %vm871_vm2, %v3157_v31, %v868_v45  ;;  %v875_v50 = vmul.f32 %v3159_v40, %v874_v46  ;;  %v1043_v45 = vld [vmem:[%s4758_s9 + $0x38] sm:$0xff]  ;;  %v1042_v46 = vld [vmem:[%s4758_s9 + $0x30] sm:$0xff] }
 0x6cf   :  { %v913_v48 = vmul.f32 %v872_v47, %v828_v61  ;;  %1067 = vmatpush.msrb.mxu0 %v1043_v45  ;;  %2984 = vmatpush.msra.mxu2 %v1043_v45  ;;  %v1041_v47 = vld [vmem:[%s4758_s9 + $0x28] sm:$0xff] }
 0x6d0   :  { %v876_v53 = vmul.f32 0.5, %v875_v50  ;;  %v849_v54 = vpop.xlane.xlu1 %848  ;;  %v1038_v50 = vld [vmem:[%s4758_s9 + $0x10] sm:$0xff] }
 0x6d1   :  { %v856_v56 = vmul.f32 %v849_v54, %v3624_v12  ;;  %v922_v57 = vmul.f32 %v3864_v41, %v913_v48  ;;  %1068 = vmatpush.msrb.mxu0 %v1042_v46  ;;  %2985 = vmatpush.msra.mxu2 %v1042_v46  ;;  %v1037_v48 = vld [vmem:[%s4758_s9 + $0x8] sm:$0xff] }
 0x6d2   :  { %v877_v44 = vsub.f32 1.5, %v876_v53  ;;  %v3112_v53 = vld [vmem:[%s4759_s13] ss:$0 sm:$0xff] }
 0x6d3   :  { %v3161_v60 = vpop.eup %3160  ;;  %v861_v62 = vadd.f32 1e-06, %v856_v56  ;;  %v931_v35 = vadd.f32 %v3867_v52, %v922_v57  ;;  %1069 = vmatpush.msrb.mxu0 %v1041_v47  ;;  %2986 = vmatpush.msra.mxu2 %v1041_v47 }
 0x6d4   :  { %v878_v0 = vmul.f32 %v3159_v40, %v877_v44  ;;  %v884_v2 = vmul.f32 %v3161_v60, %v860_v43  ;;  %vm890_vm12 = vweird.f32 %v3161_v60 }
 0x6d5   :  { %3162 = vrsqrt.f32 %v861_v62  ;;  %2904 = vmatmul.msk.f32.vlgmr.msrb.gmra.mxu3 %vm292_vm1, %v931_v35  ;;  %vm891_vm14 = vmor %vm889_vm13, %vm890_vm12  ;;  %vm899_vm2 = vweird.f32 %v861_v62 }
 0x6d6   :  { %v882_v61 = vsel %vm881_vm11, %v3159_v40, %v878_v0  ;;  %v885_v3 = vmul.f32 %v3161_v60, %v884_v2 }
 0x6d7   :  { %v914_v5 = vmul.f32 %v882_v61, %v3830_v4 }
 0x6d8   :  { %v886_v7 = vmul.f32 0.5, %v885_v3 }
 0x6d9   :  { %v923_v59 = vmul.f32 %v3864_v41, %v914_v5 }
 0x6da   :  { %v887_v63 = vsub.f32 1.5, %v886_v7 }
 0x6db   :  { %v3163_v9 = vpop.eup %3162  ;;  %v932_v11 = vadd.f32 %v3867_v52, %v923_v59 }
 0x6dc   :  { %v888_v13 = vmul.f32 %v3161_v60, %v887_v63  ;;  %v894_v30 = vmul.f32 %v3163_v9, %v861_v62  ;;  %vm900_vm15 = vweird.f32 %v3163_v9 }
 0x6dd   :  { %2905 = vmatmul.msk.f32.gmra.mxu3 %vm292_vm1, %v932_v11  ;;  %vm901_vm3 = vmor %vm899_vm2, %vm900_vm15 }
 0x6de   :  { %v892_v16 = vsel %vm891_vm14, %v3161_v60, %v888_v13  ;;  %v895_v15 = vmul.f32 %v3163_v9, %v894_v30 }
 0x6df   :  { %v915_v17 = vmul.f32 %v892_v16, %v3837_v49 }
 0x6e0   :  { %v896_v18 = vmul.f32 0.5, %v895_v15 }
 0x6e1   :  { %v924_v4 = vmul.f32 %v3864_v41, %v915_v17 }
 0x6e2   :  { %v897_v21 = vsub.f32 1.5, %v896_v18 }
 0x6e3   :  { %v933_v22 = vadd.f32 %v3867_v52, %v924_v4 }
 0x6e4   :  { %v898_v23 = vmul.f32 %v3163_v9, %v897_v21 }
 0x6e5   :  { %2906 = vmatmul.msk.f32.gmra.mxu3 %vm292_vm1, %v933_v22 }
 0x6e6   :  { %v902_v58 = vsel %vm901_vm3, %v3163_v9, %v898_v23 }
 0x6e7   :  { %v916_v24 = vmul.f32 %v902_v58, %v3844_v10 }
 0x6e9   :  { %v925_v27 = vmul.f32 %v3864_v41, %v916_v24 }
 0x6ea   :  { %v852_v28 = vpop.xlane.xlu2 %851 }
 0x6eb   :  { %v857_v49 = vmul.f32 %v852_v28, %v3624_v12  ;;  %v934_v29 = vadd.f32 %v3867_v52, %v925_v27 }
 0x6ed   :  { %v862_v31 = vadd.f32 1e-06, %v857_v49  ;;  %2907 = vmatmul.msk.f32.gmra.mxu3 %vm292_vm1, %v934_v29 }
 0x6ef   :  { %3164 = vrsqrt.f32 %v862_v31  ;;  %vm909_vm11 = vweird.f32 %v862_v31 }
 0x6f5   :  { %v3165_v32 = vpop.eup %3164 }
 0x6f6   :  { %v904_v33 = vmul.f32 %v3165_v32, %v862_v31  ;;  %vm910_vm10 = vweird.f32 %v3165_v32 }
 0x6f7   :  { %vm911_vm12 = vmor %vm909_vm11, %vm910_vm10 }
 0x6f8   :  { %v905_v6 = vmul.f32 %v3165_v32, %v904_v33 }
 0x6fa   :  { %v906_v34 = vmul.f32 0.5, %v905_v6 }
 0x6fc   :  { %v907_v36 = vsub.f32 1.5, %v906_v34 }
 0x6fe   :  { %v908_v10 = vmul.f32 %v3165_v32, %v907_v36 }
 0x700   :  { %v912_v38 = vsel %vm911_vm12, %v3165_v32, %v908_v10 }
 0x701   :  { %v917_v39 = vmul.f32 %v912_v38, %v3851_v1  ;;  %v1040_v1 = vld [vmem:[%s4758_s9 + $0x20] sm:$0xff] }
 0x702   :  { %1070 = vmatpush.msrb.mxu0 %v1040_v1  ;;  %2987 = vmatpush.msra.mxu2 %v1040_v1 }
 0x703   :  { %v926_v40 = vmul.f32 %v3864_v41, %v917_v39  ;;  %v1039_v41 = vld [vmem:[%s4758_s9 + $0x18] sm:$0xff] }
 0x704   :  { %1071 = vmatpush.msrb.mxu0 %v1039_v41  ;;  %2988 = vmatpush.msra.mxu2 %v1039_v41 }
 0x705   :  { %v935_v43 = vadd.f32 %v3867_v52, %v926_v40  ;;  %v1036_v52 = vld [vmem:[%s4758_s9] sm:$0xff] }
 0x706   :  { %1072 = vmatpush.msrb.mxu0 %v1038_v50  ;;  %2989 = vmatpush.msra.mxu2 %v1038_v50 }
 0x707   :  { %2908 = vmatmul.msk.f32.gmra.mxu3 %vm292_vm1, %v935_v43 }
 0x708   :  { %1073 = vmatpush.msrb.mxu0 %v1037_v48  ;;  %2990 = vmatpush.msra.mxu2 %v1037_v48 }
 0x70a   :  { %1074 = vmatpush.msrb.mxu0 %v1036_v52  ;;  %2991 = vmatpush.msra.mxu2 %v1036_v52 }
 0x758   :  { %v976_v54 = vpop.f32.mrf.mxu3 }
 0x759   :  { %v977_v56 = vadd.f32 %v3112_v53, %v976_v54 }
 0x75b   :  { %v991_v57 = vmul.f32 %v977_v56, %v977_v56 }
 0x75d   :  { %v996_v44 = vmul.f32 %v991_v57, %v977_v56 }
 0x75f   :  { %v1001_v60 = vmul.f32 0.044715, %v996_v44  ;;  %v3113_v44 = vld [vmem:[%s4760_s25] ss:$0 sm:$0xff] }
 0x760   :  { %v979_v62 = vpop.f32.mrf.mxu3 }
 0x761   :  { %v1006_v35 = vadd.f32 %v1001_v60, %v977_v56  ;;  %v980_v0 = vadd.f32 %v3112_v53, %v979_v62 }
 0x763   :  { %v1011_v2 = vmul.f32 0.7978846, %v1006_v35  ;;  %v992_v61 = vmul.f32 %v980_v0, %v980_v0 }
 0x765   :  { %3166 = vtanh.f32 %v1011_v2  ;;  %v997_v3 = vmul.f32 %v992_v61, %v980_v0 }
 0x767   :  { %v1002_v5 = vmul.f32 0.044715, %v997_v3 }
 0x768   :  { %v982_v7 = vpop.f32.mrf.mxu3 }
 0x769   :  { %v1007_v59 = vadd.f32 %v1002_v5, %v980_v0  ;;  %v983_v63 = vadd.f32 %v3112_v53, %v982_v7 }
 0x76b   :  { %v3167_v9 = vpop.eup %3166  ;;  %v993_v11 = vmul.f32 %v983_v63, %v983_v63  ;;  %v1012_v13 = vmul.f32 0.7978846, %v1007_v59 }
 0x76c   :  { %v1021_v30 = vadd.f32 1.0, %v3167_v9 }
 0x76d   :  { %v998_v16 = vmul.f32 %v993_v11, %v983_v63  ;;  %3168 = vtanh.f32 %v1012_v13 }
 0x76e   :  { %v1026_v15 = vmul.f32 0.5, %v1021_v30 }
 0x76f   :  { %v1003_v17 = vmul.f32 0.044715, %v998_v16 }
 0x770   :  { %v985_v18 = vpop.f32.mrf.mxu3  ;;  %v1031_v4 = vmul.f32 %v1026_v15, %v977_v56 }
 0x771   :  { %v1008_v21 = vadd.f32 %v1003_v17, %v983_v63  ;;  %v986_v22 = vadd.f32 %v3112_v53, %v985_v18 }
 0x772   :  { %2909 = vmatmul.msk.f32.vlgmr.msrb.gmra.mxu0 %vm192_vm0, %v1031_v4 }
 0x773   :  { %v3169_v23 = vpop.eup %3168  ;;  %v994_v58 = vmul.f32 %v986_v22, %v986_v22  ;;  %v1013_v24 = vmul.f32 0.7978846, %v1008_v21 }
 0x774   :  { %v1022_v27 = vadd.f32 1.0, %v3169_v23 }
 0x775   :  { %v999_v28 = vmul.f32 %v994_v58, %v986_v22  ;;  %3170 = vtanh.f32 %v1013_v24 }
 0x776   :  { %v1027_v49 = vmul.f32 0.5, %v1022_v27 }
 0x777   :  { %v1004_v29 = vmul.f32 0.044715, %v999_v28 }
 0x778   :  { %v1032_v31 = vmul.f32 %v1027_v49, %v980_v0 }
 0x779   :  { %v1009_v32 = vadd.f32 %v1004_v29, %v986_v22 }
 0x77a   :  { %2910 = vmatmul.msk.f32.gmra.mxu0 %vm192_vm0, %v1032_v31 }
 0x77b   :  { %v3171_v33 = vpop.eup %3170  ;;  %v1014_v6 = vmul.f32 0.7978846, %v1009_v32 }
 0x77c   :  { %v1023_v34 = vadd.f32 1.0, %v3171_v33 }
 0x77d   :  { %3172 = vtanh.f32 %v1014_v6 }
 0x77e   :  { %v1028_v36 = vmul.f32 0.5, %v1023_v34 }
 0x780   :  { %v1033_v10 = vmul.f32 %v1028_v36, %v983_v63 }
 0x782   :  { %2911 = vmatmul.msk.f32.gmra.mxu0 %vm192_vm0, %v1033_v10 }
 0x783   :  { %v3173_v38 = vpop.eup %3172 }
 0x784   :  { %v1024_v39 = vadd.f32 1.0, %v3173_v38 }
 0x786   :  { %v1029_v40 = vmul.f32 0.5, %v1024_v39 }
 0x788   :  { %v1034_v43 = vmul.f32 %v1029_v40, %v986_v22 }
 0x78a   :  { %v988_v45 = vpop.f32.mrf.mxu3  ;;  %2912 = vmatmul.msk.f32.gmra.mxu0 %vm192_vm0, %v1034_v43  ;;  %v1331_v43 = vld [vmem:[%s4761_s29 + $0x18] sm:$0xff] }
 0x78b   :  { %v989_v46 = vadd.f32 %v3112_v53, %v988_v45  ;;  %1363 = vmatpush.msrb.mxu2 %v1331_v43  ;;  %v1330_v45 = vld [vmem:[%s4761_s29 + $0x10] sm:$0xff] }
 0x78d   :  { %v995_v47 = vmul.f32 %v989_v46, %v989_v46  ;;  %1364 = vmatpush.msrb.mxu2 %v1330_v45 }
 0x78f   :  { %v1000_v1 = vmul.f32 %v995_v47, %v989_v46  ;;  %v1328_v47 = vld [vmem:[%s4761_s29] sm:$0xff] }
 0x791   :  { %v1005_v41 = vmul.f32 0.044715, %v1000_v1 }
 0x793   :  { %v1010_v50 = vadd.f32 %v1005_v41, %v989_v46 }
 0x795   :  { %v1015_v48 = vmul.f32 0.7978846, %v1010_v50 }
 0x797   :  { %3174 = vtanh.f32 %v1015_v48 }
 0x79d   :  { %v3175_v52 = vpop.eup %3174 }
 0x79e   :  { %v1025_v54 = vadd.f32 1.0, %v3175_v52 }
 0x7a0   :  { %v1030_v56 = vmul.f32 0.5, %v1025_v54 }
 0x7a2   :  { %v1035_v57 = vmul.f32 %v1030_v56, %v989_v46  ;;  %v1329_v46 = vld [vmem:[%s4761_s29 + $0x8] sm:$0xff] }
 0x7a3   :  { %1365 = vmatpush.msrb.mxu2 %v1329_v46 }
 0x7a4   :  { %2913 = vmatmul.msk.f32.vlgmr.msra.gmra.mxu2 %vm192_vm0, %v1035_v57 }
 0x7a5   :  { %1366 = vmatpush.msrb.mxu2 %v1328_v47 }
 0x7ef   :  { %v1076_v60 = vpop.f32.mrf.mxu0 }
 0x7f0   :  { %v1091_v62 = vadd.f32 %v1076_v60, %v3801_v37 }
 0x7f2   :  { %v3906_v35 = vadd.f32 %v3113_v44, %v1091_v62 }
 0x7f4   :  { %v1200_v53 = vsel %vm292_vm1, %v3906_v35, 0.0 }
 0x7f5   :  { %1201 = vadd.xlane.f32.xlu0 %v1200_v53 }
 0x7f7   :  { %v1079_v0 = vpop.f32.mrf.mxu0 }
 0x7f8   :  { %v1092_v2 = vadd.f32 %v1079_v0, %v3806_v42 }
 0x7fa   :  { %v3911_v61 = vadd.f32 %v3113_v44, %v1092_v2 }
 0x7fc   :  { %v1203_v3 = vsel %vm292_vm1, %v3911_v61, 0.0 }
 0x7fd   :  { %1204 = vadd.xlane.f32.xlu1 %v1203_v3 }
 0x7ff   :  { %v1082_v5 = vpop.f32.mrf.mxu0 }
 0x800   :  { %v1093_v7 = vadd.f32 %v1082_v5, %v3811_v25 }
 0x802   :  { %v3916_v59 = vadd.f32 %v3113_v44, %v1093_v7 }
 0x804   :  { %v1206_v37 = vsel %vm292_vm1, %v3916_v59, 0.0 }
 0x805   :  { %1207 = vadd.xlane.f32.xlu2 %v1206_v37  ;;  %v3969_v37 = vld [vmem:[%s4762_s3] ss:$0 sm:$0xff] }
 0x807   :  { %v1085_v63 = vpop.f32.mrf.mxu0 }
 0x808   :  { %v1094_v9 = vadd.f32 %v1085_v63, %v3816_v51 }
 0x80a   :  { %v3921_v11 = vadd.f32 %v3113_v44, %v1094_v9 }
 0x80c   :  { %v1209_v42 = vsel %vm292_vm1, %v3921_v11, 0.0 }
 0x80d   :  { %1210 = vadd.xlane.f32.xlu0 %v1209_v42 }
 0x827   :  { %v1088_v13 = vpop.f32.mrf.mxu2 }
 0x828   :  { %v1095_v30 = vadd.f32 %v1088_v13, %v3821_v55  ;;  %v3972_v13 = vld [vmem:[%s4763_s8] ss:$0 sm:$0xff] }
 0x82a   :  { %v3926_v16 = vadd.f32 %v3113_v44, %v1095_v30 }
 0x82c   :  { %v1212_v25 = vsel %vm292_vm1, %v3926_v16, 0.0 }
 0x82d   :  { %1213 = vadd.xlane.f32.xlu1 %v1212_v25 }
 0x868   :  { %v1202_v15 = vpop.xlane.xlu0 %1201 }
 0x869   :  { %v1215_v17 = vmul.f32 %v1202_v15, %v3624_v12 }
 0x86b   :  { %v1220_v51 = vsub.f32 %v3906_v35, %v1215_v17 }
 0x86d   :  { %v1225_v18 = vmul.f32 %v1220_v51, %v1220_v51 }
 0x86f   :  { %v1230_v4 = vsel %vm292_vm1, %v1225_v18, 0.0 }
 0x870   :  { %v1205_v21 = vpop.xlane.xlu1 %1204  ;;  %1231 = vadd.xlane.f32.xlu2 %v1230_v4 }
 0x871   :  { %v1216_v22 = vmul.f32 %v1205_v21, %v3624_v12 }
 0x873   :  { %v3935_v55 = vsub.f32 %v3911_v61, %v1216_v22 }
 0x875   :  { %v1226_v23 = vmul.f32 %v3935_v55, %v3935_v55 }
 0x877   :  { %v1233_v58 = vsel %vm292_vm1, %v1226_v23, 0.0 }
 0x878   :  { %v1208_v24 = vpop.xlane.xlu2 %1207  ;;  %1234 = vadd.xlane.f32.xlu0 %v1233_v58 }
 0x879   :  { %v1217_v27 = vmul.f32 %v1208_v24, %v3624_v12 }
 0x87b   :  { %v3942_v28 = vsub.f32 %v3916_v59, %v1217_v27 }
 0x87d   :  { %v1227_v49 = vmul.f32 %v3942_v28, %v3942_v28 }
 0x87f   :  { %v1236_v29 = vsel %vm292_vm1, %v1227_v49, 0.0 }
 0x880   :  { %1237 = vadd.xlane.f32.xlu1 %v1236_v29  ;;  %v1211_v31 = vpop.xlane.xlu0 %1210 }
 0x881   :  { %v1218_v32 = vmul.f32 %v1211_v31, %v3624_v12 }
 0x883   :  { %v3949_v33 = vsub.f32 %v3921_v11, %v1218_v32 }
 0x885   :  { %v1228_v6 = vmul.f32 %v3949_v33, %v3949_v33 }
 0x887   :  { %v1239_v34 = vsel %vm292_vm1, %v1228_v6, 0.0 }
 0x888   :  { %1240 = vadd.xlane.f32.xlu2 %v1239_v34 }
 0x8a0   :  { %v1214_v36 = vpop.xlane.xlu1 %1213 }
 0x8a1   :  { %v1219_v10 = vmul.f32 %v1214_v36, %v3624_v12 }
 0x8a3   :  { %v3956_v38 = vsub.f32 %v3926_v16, %v1219_v10 }
 0x8a5   :  { %v1229_v39 = vmul.f32 %v3956_v38, %v3956_v38 }
 0x8a7   :  { %v1242_v40 = vsel %vm292_vm1, %v1229_v39, 0.0 }
 0x8a8   :  { %1243 = vadd.xlane.f32.xlu0 %v1242_v40 }
 0x8e3   :  { %v1232_v1 = vpop.xlane.xlu2 %1231 }
 0x8e4   :  { %v1245_v41 = vmul.f32 %v1232_v1, %v3624_v12 }
 0x8e6   :  { %v1250_v50 = vadd.f32 1e-06, %v1245_v41 }
 0x8e8   :  { %3176 = vrsqrt.f32 %v1250_v50  ;;  %vm1261_vm14 = vweird.f32 %v1250_v50 }
 0x8eb   :  { %v1235_v48 = vpop.xlane.xlu0 %1234 }
 0x8ec   :  { %v1246_v52 = vmul.f32 %v1235_v48, %v3624_v12 }
 0x8ee   :  { %v3177_v54 = vpop.eup %3176  ;;  %v1251_v56 = vadd.f32 1e-06, %v1246_v52 }
 0x8ef   :  { %v1256_v57 = vmul.f32 %v3177_v54, %v1250_v50  ;;  %vm1262_vm13 = vweird.f32 %v3177_v54 }
 0x8f0   :  { %3178 = vrsqrt.f32 %v1251_v56  ;;  %vm1263_vm15 = vmor %vm1261_vm14, %vm1262_vm13  ;;  %vm1271_vm3 = vweird.f32 %v1251_v56 }
 0x8f1   :  { %v1257_v44 = vmul.f32 %v3177_v54, %v1256_v57 }
 0x8f3   :  { %v1258_v60 = vmul.f32 0.5, %v1257_v44  ;;  %v1238_v62 = vpop.xlane.xlu1 %1237 }
 0x8f4   :  { %v1247_v53 = vmul.f32 %v1238_v62, %v3624_v12 }
 0x8f5   :  { %v1259_v0 = vsub.f32 1.5, %v1258_v60 }
 0x8f6   :  { %v3179_v2 = vpop.eup %3178  ;;  %v1252_v3 = vadd.f32 1e-06, %v1247_v53 }
 0x8f7   :  { %v1260_v5 = vmul.f32 %v3177_v54, %v1259_v0  ;;  %v1266_v7 = vmul.f32 %v3179_v2, %v1251_v56  ;;  %vm1272_vm2 = vweird.f32 %v3179_v2 }
 0x8f8   :  { %3180 = vrsqrt.f32 %v1252_v3  ;;  %vm1273_vm10 = vmor %vm1271_vm3, %vm1272_vm2  ;;  %vm1281_vm12 = vweird.f32 %v1252_v3 }
 0x8f9   :  { %v1264_v63 = vsel %vm1263_vm15, %v3177_v54, %v1260_v5  ;;  %v1267_v9 = vmul.f32 %v3179_v2, %v1266_v7 }
 0x8fa   :  { %v1305_v42 = vmul.f32 %v1264_v63, %v1220_v51  ;;  %v3116_v63 = vld [vmem:[%s4764_s14] ss:$0 sm:$0xff] }
 0x8fb   :  { %v1268_v30 = vmul.f32 0.5, %v1267_v9  ;;  %v1241_v25 = vpop.xlane.xlu2 %1240 }
 0x8fc   :  { %v1314_v15 = vmul.f32 %v3969_v37, %v1305_v42  ;;  %v1248_v17 = vmul.f32 %v1241_v25, %v3624_v12 }
 0x8fd   :  { %v1269_v18 = vsub.f32 1.5, %v1268_v30 }
 0x8fe   :  { %v3181_v4 = vpop.eup %3180  ;;  %v1253_v21 = vadd.f32 1e-06, %v1248_v17  ;;  %v1323_v22 = vadd.f32 %v3972_v13, %v1314_v15 }
 0x8ff   :  { %v1270_v23 = vmul.f32 %v3179_v2, %v1269_v18  ;;  %v1276_v58 = vmul.f32 %v3181_v4, %v1252_v3  ;;  %vm1282_vm11 = vweird.f32 %v3181_v4 }
 0x900   :  { %3182 = vrsqrt.f32 %v1253_v21  ;;  %2919 = vmatmul.msk.f32.vlgmr.msrb.gmra.mxu2 %vm292_vm1, %v1323_v22  ;;  %vm1283_vm13 = vmor %vm1281_vm12, %vm1282_vm11  ;;  %vm1291_vm15 = vweird.f32 %v1253_v21 }
 0x901   :  { %v1274_v51 = vsel %vm1273_vm10, %v3179_v2, %v1270_v23  ;;  %v1277_v24 = vmul.f32 %v3181_v4, %v1276_v58 }
 0x902   :  { %v1306_v27 = vmul.f32 %v1274_v51, %v3935_v55 }
 0x903   :  { %v1278_v49 = vmul.f32 0.5, %v1277_v24 }
 0x904   :  { %v1315_v29 = vmul.f32 %v3969_v37, %v1306_v27 }
 0x905   :  { %v1279_v31 = vsub.f32 1.5, %v1278_v49 }
 0x906   :  { %v3183_v32 = vpop.eup %3182  ;;  %v1324_v6 = vadd.f32 %v3972_v13, %v1315_v29 }
 0x907   :  { %v1280_v34 = vmul.f32 %v3181_v4, %v1279_v31  ;;  %v1286_v36 = vmul.f32 %v3183_v32, %v1253_v21  ;;  %vm1292_vm14 = vweird.f32 %v3183_v32 }
 0x908   :  { %2920 = vmatmul.msk.f32.gmra.mxu2 %vm292_vm1, %v1324_v6  ;;  %vm1293_vm2 = vmor %vm1291_vm15, %vm1292_vm14 }
 0x909   :  { %v1284_v10 = vsel %vm1283_vm13, %v3181_v4, %v1280_v34  ;;  %v1287_v39 = vmul.f32 %v3183_v32, %v1286_v36 }
 0x90a   :  { %v1307_v40 = vmul.f32 %v1284_v10, %v3942_v28 }
 0x90b   :  { %v1288_v43 = vmul.f32 0.5, %v1287_v39 }
 0x90c   :  { %v1316_v55 = vmul.f32 %v3969_v37, %v1307_v40 }
 0x90d   :  { %v1289_v45 = vsub.f32 1.5, %v1288_v43 }
 0x90e   :  { %v1325_v46 = vadd.f32 %v3972_v13, %v1316_v55 }
 0x90f   :  { %v1290_v47 = vmul.f32 %v3183_v32, %v1289_v45 }
 0x910   :  { %2921 = vmatmul.msk.f32.gmra.mxu2 %vm292_vm1, %v1325_v46 }
 0x911   :  { %v1294_v1 = vsel %vm1293_vm2, %v3183_v32, %v1290_v47 }
 0x912   :  { %v1308_v41 = vmul.f32 %v1294_v1, %v3949_v33 }
 0x914   :  { %v1317_v50 = vmul.f32 %v3969_v37, %v1308_v41 }
 0x916   :  { %v1326_v48 = vadd.f32 %v3972_v13, %v1317_v50 }
 0x918   :  { %2922 = vmatmul.msk.f32.gmra.mxu2 %vm292_vm1, %v1326_v48 }
 0x91b   :  { %v1244_v28 = vpop.xlane.xlu0 %1243 }
 0x91c   :  { %v1249_v52 = vmul.f32 %v1244_v28, %v3624_v12 }
 0x91e   :  { %v1254_v54 = vadd.f32 1e-06, %v1249_v52 }
 0x920   :  { %3184 = vrsqrt.f32 %v1254_v54  ;;  %vm1301_vm10 = vweird.f32 %v1254_v54 }
 0x926   :  { %v3185_v56 = vpop.eup %3184 }
 0x927   :  { %v1296_v57 = vmul.f32 %v3185_v56, %v1254_v54  ;;  %vm1302_vm3 = vweird.f32 %v3185_v56 }
 0x928   :  { %vm1303_vm11 = vmor %vm1301_vm10, %vm1302_vm3 }
 0x929   :  { %v1297_v44 = vmul.f32 %v3185_v56, %v1296_v57 }
 0x92b   :  { %v1298_v60 = vmul.f32 0.5, %v1297_v44 }
 0x92d   :  { %v1299_v62 = vsub.f32 1.5, %v1298_v60 }
 0x92f   :  { %v1300_v53 = vmul.f32 %v3185_v56, %v1299_v62 }
 0x931   :  { %v1304_v33 = vsel %vm1303_vm11, %v3185_v56, %v1300_v53 }
 0x932   :  { %v1309_v0 = vmul.f32 %v1304_v33, %v3956_v38 }
 0x934   :  { %v1318_v2 = vmul.f32 %v3969_v37, %v1309_v0 }
 0x936   :  { %v1327_v3 = vadd.f32 %v3972_v13, %v1318_v2 }
 0x938   :  { %2923 = vmatmul.msk.f32.gmra.mxu2 %vm292_vm1, %v1327_v3 }
 0x983   :  { %v1368_v5 = vpop.f32.mrf.mxu2 }
 0x984   :  { %v4000_v25 = vadd.f32 %v3116_v63, %v1368_v5 }
 0x98b   :  { %v1371_v7 = vpop.f32.mrf.mxu2 }
 0x98c   :  { %v4006_v13 = vadd.f32 %v3116_v63, %v1371_v7 }
 0x993   :  { %v1374_v9 = vpop.f32.mrf.mxu2 }
 0x994   :  { %v3996_v42 = vadd.f32 %v3116_v63, %v1374_v9 }
 0x996   :  { %1392 = vrot.lane.b32.xlu0 %v3996_v42, %s3351_s0  ;;  %v3054_v62 = vpack.i.bf16 %v4006_v13, %v3996_v42 }
 0x99b   :  { %v1377_v30 = vpop.f32.mrf.mxu2 }
 0x99c   :  { %v1378_v15 = vadd.f32 %v3116_v63, %v1377_v30 }
 0x99e   :  { %1394 = vrot.lane.b32.xlu2 %v1378_v15, %s3351_s0  ;;  %1388 = vrot.lane.b32.xlu0 %v4000_v25, %s3351_s0 }
 0x9bb   :  { %v1380_v38 = vpop.f32.mrf.mxu2 }
 0x9bc   :  { %v1381_v37 = vadd.f32 %v3116_v63, %v1380_v38 }
 0x9be   :  { %1396 = vrot.lane.b32.xlu1 %v1381_v37, %s3351_s0  ;;  %v3049_v19 = vpack.i.bf16 %v1378_v15, %v1381_v37 }
 0x9c6   :  { %1390 = vrot.lane.b32.xlu1 %v4006_v13, %s3351_s0  ;;  %s3300_s0 = scalar_lea.hbm %s3299_s11, 2 }
 0x9c7   :  { %p3301_p0 = scmp.ne.s32.totalorder %s3299_s11, %s3300_s0 }
 0x9f8   :  { %v1395_v18 = vpop.permute.xlu2 %1394 }
 0xa08   :  { %v1393_v4 = vpop.permute.xlu0 %1392 }
 0xa10   :  { %v1389_v22 = vpop.permute.xlu0 %1388 }
 0xa30   :  { %v1397_v17 = vpop.permute.xlu1 %1396 }
 0xa31   :  { %2924 = vmatpush.xpose.msk.msra.mxu1 %vm292_vm1, %v1397_v17 }
 0xa35   :  { %2925 = vmatpush.xpose.msk.msra.mxu1 %vm292_vm1, %v1395_v18 }
 0xa38   :  { %v1391_v21 = vpop.permute.xlu1 %1390 }
 0xa39   :  { %2926 = vmatpush.xpose.msk.msra.mxu1 %vm292_vm1, %v1393_v4 }
 0xa3d   :  { %2927 = vmatpush.xpose.msk.msra.mxu1 %vm292_vm1, %v1391_v21 }
 0xa41   :  { %2928 = vmatpush.xpose.msk.msra.mxu1 %vm292_vm1, %v1389_v22 }
 0xa44   :  { %2929 = vmatmul.msk.f32.vlgmr.msra.gmra.mxu1 %vm292_vm1, %v4000_v25 }
 0xa4c   :  { %2930 = vmatmul.msk.f32.gmra.mxu1 %vm292_vm1, %v4006_v13 }
 0xa54   :  { %2931 = vmatmul.msk.f32.gmra.mxu1 %vm292_vm1, %v3996_v42 }
 0xa5c   :  { %2932 = vmatmul.msk.f32.gmra.mxu1 %vm292_vm1, %v1378_v15 }
 0xa64   :  { %2933 = vmatmul.msk.f32.gmra.mxu1 %vm292_vm1, %v1381_v37 }
 0xac1   :  { %v1435_v23 = vpop.f32.mrf.mxu1 }
 0xac2   :  { %v1450_v58 = vmul.f32 0.17677669, %v1435_v23 }
 0xac4   :  { %v1455_v51 = vsel %vm287_vm4, %v1450_v58, -1e+30 }
 0xac5   :  { %v1460_v24 = vsel %vm560_vm5, %v1455_v51, -inf }
 0xac6   :  { %1461 = vmax.xlane.f32.xlu2 %v1460_v24 }
 0xac9   :  { %v1438_v27 = vpop.f32.mrf.mxu1 }
 0xaca   :  { %v1451_v49 = vmul.f32 0.17677669, %v1438_v27 }
 0xacc   :  { %v1456_v29 = vsel %vm288_vm6, %v1451_v49, -1e+30 }
 0xacd   :  { %v1463_v31 = vsel %vm560_vm5, %v1456_v29, -inf }
 0xace   :  { %1464 = vmax.xlane.f32.xlu1 %v1463_v31 }
 0xad1   :  { %v1441_v32 = vpop.f32.mrf.mxu1 }
 0xad2   :  { %v1452_v6 = vmul.f32 0.17677669, %v1441_v32 }
 0xad4   :  { %v1457_v34 = vsel %vm289_vm7, %v1452_v6, -1e+30 }
 0xad5   :  { %v1466_v36 = vsel %vm560_vm5, %v1457_v34, -inf }
 0xad6   :  { %1467 = vmax.xlane.f32.xlu0 %v1466_v36 }
 0xad9   :  { %v1444_v8 = vpop.f32.mrf.mxu1 }
 0xada   :  { %v1453_v10 = vmul.f32 0.17677669, %v1444_v8 }
 0xadc   :  { %v1458_v39 = vsel %vm290_vm8, %v1453_v10, -1e+30 }
 0xadd   :  { %v1469_v40 = vsel %vm560_vm5, %v1458_v39, -inf }
 0xade   :  { %1470 = vmax.xlane.f32.xlu2 %v1469_v40 }
 0xae1   :  { %v1447_v14 = vpop.f32.mrf.mxu1 }
 0xae2   :  { %v1454_v43 = vmul.f32 0.17677669, %v1447_v14 }
 0xae4   :  { %v1459_v55 = vsel %vm291_vm9, %v1454_v43, -1e+30 }
 0xae5   :  { %v1472_v45 = vsel %vm560_vm5, %v1459_v55, -inf }
 0xae6   :  { %1473 = vmax.xlane.f32.xlu1 %v1472_v45 }
 0xaff   :  { %3050 = vrot.lane.b32.xlu1 %v3049_v19, %s3352_s5 }
 0xb39   :  { %v1462_v46 = vpop.xlane.xlu2 %1461 }
 0xb3a   :  { %v1475_v47 = vsub.f32 %v1455_v51, %v1462_v46 }
 0xb3c   :  { %v1480_v1 = vmul.f32 1.442695, %v1475_v47 }
 0xb3e   :  { %3186 = vpow2.f32 %v1480_v1 }
 0xb41   :  { %v1465_v26 = vpop.xlane.xlu1 %1464 }
 0xb42   :  { %v1476_v41 = vsub.f32 %v1456_v29, %v1465_v26 }
 0xb44   :  { %v4039_v50 = vpop.eup %3186  ;;  %v1482_v48 = vmul.f32 1.442695, %v1476_v41 }
 0xb45   :  { %v1490_v28 = vsel %vm560_vm5, %v4039_v50, 0.0 }
 0xb46   :  { %3188 = vpow2.f32 %v1482_v48  ;;  %1491 = vadd.xlane.f32.xlu0 %v1490_v28 }
 0xb49   :  { %v1468_v20 = vpop.xlane.xlu0 %1467 }
 0xb4a   :  { %v1477_v52 = vsub.f32 %v1457_v34, %v1468_v20 }
 0xb4c   :  { %v4043_v54 = vpop.eup %3188  ;;  %v1484_v56 = vmul.f32 1.442695, %v1477_v52 }
 0xb4d   :  { %v1493_v57 = vsel %vm560_vm5, %v4043_v54, 0.0 }
 0xb4e   :  { %3190 = vpow2.f32 %v1484_v56  ;;  %1494 = vadd.xlane.f32.xlu2 %v1493_v57 }
 0xb51   :  { %v1471_v5 = vpop.xlane.xlu2 %1470 }
 0xb52   :  { %v1478_v63 = vsub.f32 %v1458_v39, %v1471_v5 }
 0xb54   :  { %v4047_v44 = vpop.eup %3190  ;;  %v1486_v30 = vmul.f32 1.442695, %v1478_v63 }
 0xb55   :  { %v1496_v60 = vsel %vm560_vm5, %v4047_v44, 0.0 }
 0xb56   :  { %1497 = vadd.xlane.f32.xlu2 %v1496_v60  ;;  %v1645_v60 = vld [vmem:[%s4765_s19 + $0x18] sm:$0xff] }
 0xb57   :  { %1673 = vmatpush.msra.mxu0 %v1645_v60 }
 0xb59   :  { %v1474_v53 = vpop.xlane.xlu1 %1473 }
 0xb5a   :  { %v1479_v33 = vsub.f32 %v1459_v55, %v1474_v53  ;;  %3055 = vrot.lane.b32.xlu0 %v3054_v62, %s3352_s5  ;;  %v1644_v62 = vld [vmem:[%s4765_s19 + $0x10] sm:$0xff]  ;;  %v1643_v53 = vld [vmem:[%s4765_s19 + $0x8] sm:$0xff] }
 0xb5b   :  { %1674 = vmatpush.msra.mxu0 %v1644_v62 }
 0xb5c   :  { %v1488_v0 = vmul.f32 1.442695, %v1479_v33 }
 0xb5d   :  { %1675 = vmatpush.msra.mxu0 %v1643_v53 }
 0xb5e   :  { %3192 = vpow2.f32 %v1488_v0 }
 0xb5f   :  { %3194 = vpow2.f32 %v1486_v30 }
 0xb64   :  { %v4054_v2 = vpop.eup %3192 }
 0xb65   :  { %v1502_v3 = vsel %vm560_vm5, %v4054_v2, 0.0  ;;  %v4060_v15 = vpop.eup %3194 }
 0xb66   :  { %1503 = vadd.xlane.f32.xlu1 %v1502_v3  ;;  %v1499_v38 = vsel %vm560_vm5, %v4060_v15, 0.0 }
 0xb6e   :  { %1580 = vrot.lane.b32.xlu2 %v4000_v25, %s3352_s5  ;;  %s3302_s5 = scalar_lea.hbm %s3557_s21, 2 }
 0xb6f   :  { %p3304_p2 = scmp.lt.s32.totalorder %s3302_s5, %s3300_s0 }
 0xb71   :  { %v3051_v7 = vpop.permute.xlu1 %3050  ;;  %p3305_p3 = por %p3304_p2, %p3303_p1 }
 0xb72   :  { %v3052_v9 = vunpack.i.l.bf16 %v3051_v7  ;;  %v3053_v42 = vunpack.i.h.bf16 %v3051_v7 }
 0xb73   :  { %p3306_p4 = pnand %p3305_p3, %p3301_p0 }
 0xb74   :  { %1621 = vmatpush.msra.mxu3 %v3052_v9 }
 0xb76   :  { %1622 = vmatpush.msra.mxu3 %v3053_v42 }
 0xb84   :  { %1500 = vadd.xlane.f32.xlu0 %v1499_v38 }
 0xbb9   :  { %v1492_v37 = vpop.xlane.xlu0 %1491 }
 0xbba   :  { %3196 = vrcp.f32 %v1492_v37  ;;  %v1516_v23 = vand.u32 2147483648, %v1492_v37  ;;  %vm1510_vm6 = vweird.f32 %v1492_v37  ;;  %v1514_v24 = vand.u32 2147483647, %v1492_v37 }
 0xbbc   :  { %v1517_v31 = vor.u32 1.1754944e-38, %v1516_v23  ;;  %vm1515_vm8 = vcmp.eq.f32.partialorder %v1514_v24, 8.507059e+37  ;;  %v1642_v24 = vld [vmem:[%s4765_s19] sm:$0xff] }
 0xbbd   :  { %1676 = vmatpush.msra.mxu0 %v1642_v24 }
 0xbc0   :  { %v3197_v13 = vpop.eup %3196 }
 0xbc1   :  { %v1506_v17 = vmul.f32 %v3197_v13, %v1492_v37  ;;  %v1495_v25 = vpop.xlane.xlu2 %1494  ;;  %vm1511_vm4 = vweird.f32 %v3197_v13 }
 0xbc2   :  { %3198 = vrcp.f32 %v1495_v25  ;;  %vm1512_vm7 = vmor %vm1510_vm6, %vm1511_vm4  ;;  %v1531_v39 = vand.u32 2147483648, %v1495_v25  ;;  %vm1525_vm12 = vweird.f32 %v1495_v25  ;;  %v1529_v55 = vand.u32 2147483647, %v1495_v25 }
 0xbc3   :  { %v1507_v18 = vsub.f32 1.0, %v1506_v17 }
 0xbc4   :  { %v1532_v46 = vor.u32 1.1754944e-38, %v1531_v39  ;;  %vm1530_vm14 = vcmp.eq.f32.partialorder %v1529_v55, 8.507059e+37 }
 0xbc5   :  { %v1508_v4 = vmul.f32 %v3197_v13, %v1507_v18 }
 0xbc7   :  { %v1509_v22 = vadd.f32 %v3197_v13, %v1508_v4 }
 0xbc8   :  { %v3199_v21 = vpop.eup %3198 }
 0xbc9   :  { %v1521_v58 = vmul.f32 %v3199_v21, %v1495_v25  ;;  %v1498_v51 = vpop.xlane.xlu2 %1497  ;;  %v1513_v49 = vsel %vm1512_vm7, %v3197_v13, %v1509_v22  ;;  %vm1526_vm9 = vweird.f32 %v3199_v21 }
 0xbca   :  { %3200 = vrcp.f32 %v1498_v51  ;;  %v1518_v34 = vsel %vm1515_vm8, %v1517_v31, %v1513_v49  ;;  %vm1527_vm13 = vmor %vm1525_vm12, %vm1526_vm9  ;;  %v1546_v41 = vand.u32 2147483648, %v1498_v51  ;;  %vm1540_vm2 = vweird.f32 %v1498_v51 }
 0xbcb   :  { %v1522_v27 = vsub.f32 1.0, %v1521_v58  ;;  %v1519_v43 = vmul.f32 %v4039_v50, %v1518_v34  ;;  %v1544_v48 = vand.u32 2147483647, %v1498_v51 }
 0xbcc   :  { %v3056_v29 = vpop.permute.xlu0 %3055  ;;  %v1547_v20 = vor.u32 1.1754944e-38, %v1546_v41 }
 0xbcd   :  { %v1523_v32 = vmul.f32 %v3199_v21, %v1522_v27  ;;  %v3057_v6 = vunpack.i.l.bf16 %v3056_v29  ;;  %v3058_v36 = vunpack.i.h.bf16 %v3056_v29  ;;  %vm1545_vm10 = vcmp.eq.f32.partialorder %v1544_v48, 8.507059e+37 }
 0xbcf   :  { %1623 = vmatpush.msra.mxu3 %v3057_v6  ;;  %v1524_v10 = vadd.f32 %v3199_v21, %v1523_v32 }
 0xbd0   :  { %v3201_v8 = vpop.eup %3200 }
 0xbd1   :  { %v1536_v40 = vmul.f32 %v3201_v8, %v1498_v51  ;;  %v1581_v14 = vpop.permute.xlu2 %1580  ;;  %1624 = vmatpush.msra.mxu3 %v3058_v36  ;;  %v1528_v19 = vsel %vm1527_vm13, %v3199_v21, %v1524_v10  ;;  %vm1541_vm15 = vweird.f32 %v3201_v8 }
 0xbd2   :  { %v1533_v1 = vsel %vm1530_vm14, %v1532_v46, %v1528_v19  ;;  %vm1542_vm3 = vmor %vm1540_vm2, %vm1541_vm15 }
 0xbd3   :  { %v1537_v45 = vsub.f32 1.0, %v1536_v40  ;;  %1625 = vmatpush.msra.mxu3 %v1581_v14  ;;  %v1534_v50 = vmul.f32 %v4043_v54, %v1533_v1 }
 0xbd4   :  { %2934 = vmatmul.msk.f32.vlgmr.msra.gmra.mxu3 %vm560_vm5, %v1519_v43 }
 0xbd5   :  { %v1538_v47 = vmul.f32 %v3201_v8, %v1537_v45 }
 0xbd7   :  { %v1539_v26 = vadd.f32 %v3201_v8, %v1538_v47 }
 0xbd9   :  { %v1543_v28 = vsel %vm1542_vm3, %v3201_v8, %v1539_v26  ;;  %v1504_v57 = vpop.xlane.xlu1 %1503 }
 0xbda   :  { %v1548_v52 = vsel %vm1545_vm10, %v1547_v20, %v1543_v28  ;;  %3202 = vrcp.f32 %v1504_v57  ;;  %v1576_v25 = vand.u32 2147483648, %v1504_v57  ;;  %vm1570_vm9 = vweird.f32 %v1504_v57 }
 0xbdb   :  { %v1549_v56 = vmul.f32 %v4047_v44, %v1548_v52  ;;  %v1574_v21 = vand.u32 2147483647, %v1504_v57 }
 0xbdc   :  { %2935 = vmatmul.msk.f32.gmra.mxu3 %vm560_vm5, %v1534_v50  ;;  %v1577_v23 = vor.u32 1.1754944e-38, %v1576_v25 }
 0xbdd   :  { %vm1575_vm13 = vcmp.eq.f32.partialorder %v1574_v21, 8.507059e+37  ;;  %v1837_v21 = vld [vmem:[%s4767_s30 + $0x10] sm:$0xff] }
 0xbe0   :  { %v3203_v33 = vpop.eup %3202 }
 0xbe1   :  { %v1566_v0 = vmul.f32 %v3203_v33, %v1504_v57  ;;  %vm1571_vm8 = vweird.f32 %v3203_v33 }
 0xbe2   :  { %vm1572_vm12 = vmor %vm1570_vm9, %vm1571_vm8 }
 0xbe3   :  { %v1567_v5 = vsub.f32 1.0, %v1566_v0 }
 0xbe4   :  { %2936 = vmatmul.msk.f32.gmra.mxu3 %vm560_vm5, %v1549_v56 }
 0xbe5   :  { %v1568_v44 = vmul.f32 %v3203_v33, %v1567_v5 }
 0xbe7   :  { %v1569_v17 = vadd.f32 %v3203_v33, %v1568_v44 }
 0xbe9   :  { %v1573_v22 = vsel %vm1572_vm12, %v3203_v33, %v1569_v17 }
 0xbea   :  { %v1578_v58 = vsel %vm1575_vm13, %v1577_v23, %v1573_v22  ;;  %v1836_v22 = vld [vmem:[%s4767_s30 + $0x8] sm:$0xff]  ;;  %v1835_v23 = vld [vmem:[%s4767_s30] sm:$0xff] }
 0xbeb   :  { %v1579_v51 = vmul.f32 %v4054_v2, %v1578_v58  ;;  %v3117_v2 = vld [vmem:[%s4766_s24] ss:$0 sm:$0xff] }
 0xbf7   :  { %v1501_v54 = vpop.xlane.xlu0 %1500 }
 0xbf8   :  { %3204 = vrcp.f32 %v1501_v54  ;;  %v1561_v9 = vand.u32 2147483648, %v1501_v54  ;;  %v1559_v30 = vand.u32 2147483647, %v1501_v54  ;;  %vm1555_vm4 = vweird.f32 %v1501_v54 }
 0xbfa   :  { %v1562_v37 = vor.u32 1.1754944e-38, %v1561_v9  ;;  %vm1560_vm7 = vcmp.eq.f32.partialorder %v1559_v30, 8.507059e+37 }
 0xbfe   :  { %v3205_v3 = vpop.eup %3204 }
 0xbff   :  { %v1551_v7 = vmul.f32 %v3205_v3, %v1501_v54  ;;  %vm1556_vm11 = vweird.f32 %v3205_v3 }
 0xc00   :  { %vm1557_vm6 = vmor %vm1555_vm4, %vm1556_vm11 }
 0xc01   :  { %v1552_v63 = vsub.f32 1.0, %v1551_v7 }
 0xc03   :  { %v1553_v42 = vmul.f32 %v3205_v3, %v1552_v63 }
 0xc05   :  { %v1554_v38 = vadd.f32 %v3205_v3, %v1553_v42 }
 0xc07   :  { %v1558_v13 = vsel %vm1557_vm6, %v3205_v3, %v1554_v38 }
 0xc08   :  { %v1563_v18 = vsel %vm1560_vm7, %v1562_v37, %v1558_v13 }
 0xc09   :  { %v1564_v4 = vmul.f32 %v4060_v15, %v1563_v18 }
 0xc0b   :  { %2937 = vmatmul.msk.f32.gmra.mxu3 %vm560_vm5, %v1564_v4  ;;  %v1838_v4 = vld [vmem:[%s4767_s30 + $0x18] sm:$0xff] }
 0xc0c   :  { %1870 = vmatpush.msra.mxu2 %v1838_v4 }
 0xc0e   :  { %1871 = vmatpush.msra.mxu2 %v1837_v21 }
 0xc10   :  { %1872 = vmatpush.msra.mxu2 %v1836_v22 }
 0xc12   :  { %1873 = vmatpush.msra.mxu2 %v1835_v23 }
 0xc13   :  { %2938 = vmatmul.msk.f32.gmra.mxu3 %vm560_vm5, %v1579_v51 }
 0xc57   :  { %v1627_v27 = vpop.f32.mrf.mxu3 }
 0xc58   :  { %2939 = vmatmul.msk.f32.vlgmr.msra.gmra.mxu0 %vm292_vm1, %v1627_v27 }
 0xc5f   :  { %v1630_v49 = vpop.f32.mrf.mxu3 }
 0xc60   :  { %2940 = vmatmul.msk.f32.gmra.mxu0 %vm292_vm1, %v1630_v49 }
 0xc67   :  { %v1633_v15 = vpop.f32.mrf.mxu3 }
 0xc68   :  { %2941 = vmatmul.msk.f32.gmra.mxu0 %vm292_vm1, %v1633_v15 }
 0xc8e   :  { %v1636_v29 = vpop.f32.mrf.mxu3 }
 0xc8f   :  { %2942 = vmatmul.msk.f32.gmra.mxu0 %vm292_vm1, %v1636_v29 }
 0xc96   :  { %v1639_v31 = vpop.f32.mrf.mxu3 }
 0xc97   :  { %2943 = vmatmul.msk.f32.gmra.mxu0 %vm292_vm1, %v1639_v31 }
 0xcd5   :  { %v1678_v32 = vpop.f32.mrf.mxu0 }
 0xcd6   :  { %v1693_v6 = vadd.f32 %v1678_v32, %v3906_v35 }
 0xcd8   :  { %v4085_v34 = vadd.f32 %v3117_v2, %v1693_v6 }
 0xcda   :  { %v1707_v36 = vsel %vm292_vm1, %v4085_v34, 0.0 }
 0xcdb   :  { %1708 = vadd.xlane.f32.xlu2 %v1707_v36 }
 0xcdd   :  { %v1681_v8 = vpop.f32.mrf.mxu0 }
 0xcde   :  { %v1694_v10 = vadd.f32 %v1681_v8, %v3911_v61 }
 0xce0   :  { %v4090_v39 = vadd.f32 %v3117_v2, %v1694_v10 }
 0xce2   :  { %v1710_v40 = vsel %vm292_vm1, %v4090_v39, 0.0 }
 0xce3   :  { %1711 = vadd.xlane.f32.xlu0 %v1710_v40 }
 0xce5   :  { %v1684_v14 = vpop.f32.mrf.mxu0 }
 0xce6   :  { %v1695_v43 = vadd.f32 %v1684_v14, %v3916_v59 }
 0xce8   :  { %v4095_v55 = vadd.f32 %v3117_v2, %v1695_v43 }
 0xcea   :  { %v1713_v45 = vsel %vm292_vm1, %v4095_v55, 0.0 }
 0xceb   :  { %1714 = vadd.xlane.f32.xlu1 %v1713_v45  ;;  %v4148_v45 = vld [vmem:[%s4768_s6] ss:$0 sm:$0xff] }
 0xd0c   :  { %v1687_v19 = vpop.f32.mrf.mxu0 }
 0xd0d   :  { %v1696_v46 = vadd.f32 %v1687_v19, %v3921_v11 }
 0xd0f   :  { %v4100_v47 = vadd.f32 %v3117_v2, %v1696_v46 }
 0xd11   :  { %v1716_v1 = vsel %vm292_vm1, %v4100_v47, 0.0 }
 0xd12   :  { %1717 = vadd.xlane.f32.xlu0 %v1716_v1 }
 0xd14   :  { %v1690_v26 = vpop.f32.mrf.mxu0 }
 0xd15   :  { %v1697_v41 = vadd.f32 %v1690_v26, %v3926_v16  ;;  %v4151_v26 = vld [vmem:[%s4769_s12] ss:$0 sm:$0xff] }
 0xd17   :  { %v4105_v50 = vadd.f32 %v3117_v2, %v1697_v41 }
 0xd19   :  { %v1719_v48 = vsel %vm292_vm1, %v4105_v50, 0.0 }
 0xd1a   :  { %1720 = vadd.xlane.f32.xlu1 %v1719_v48 }
 0xd4e   :  { %v1709_v28 = vpop.xlane.xlu2 %1708 }
 0xd4f   :  { %v1722_v20 = vmul.f32 %v1709_v28, %v3624_v12 }
 0xd51   :  { %v1727_v52 = vsub.f32 %v4085_v34, %v1722_v20 }
 0xd53   :  { %v1732_v56 = vmul.f32 %v1727_v52, %v1727_v52 }
 0xd55   :  { %v1737_v57 = vsel %vm292_vm1, %v1732_v56, 0.0 }
 0xd56   :  { %1738 = vadd.xlane.f32.xlu2 %v1737_v57  ;;  %v1712_v60 = vpop.xlane.xlu0 %1711 }
 0xd57   :  { %v1723_v62 = vmul.f32 %v1712_v60, %v3624_v12 }
 0xd59   :  { %v4114_v53 = vsub.f32 %v4090_v39, %v1723_v62 }
 0xd5b   :  { %v1733_v54 = vmul.f32 %v4114_v53, %v4114_v53 }
 0xd5d   :  { %v1740_v33 = vsel %vm292_vm1, %v1733_v54, 0.0 }
 0xd5e   :  { %v1715_v0 = vpop.xlane.xlu1 %1714  ;;  %1741 = vadd.xlane.f32.xlu0 %v1740_v33 }
 0xd5f   :  { %v1724_v3 = vmul.f32 %v1715_v0, %v3624_v12 }
 0xd61   :  { %v4121_v5 = vsub.f32 %v4095_v55, %v1724_v3 }
 0xd63   :  { %v1734_v7 = vmul.f32 %v4121_v5, %v4121_v5 }
 0xd65   :  { %v1743_v63 = vsel %vm292_vm1, %v1734_v7, 0.0 }
 0xd66   :  { %1744 = vadd.xlane.f32.xlu1 %v1743_v63 }
 0xd85   :  { %v1718_v9 = vpop.xlane.xlu0 %1717 }
 0xd86   :  { %v1725_v44 = vmul.f32 %v1718_v9, %v3624_v12 }
 0xd88   :  { %v4128_v42 = vsub.f32 %v4100_v47, %v1725_v44 }
 0xd8a   :  { %v1735_v30 = vmul.f32 %v4128_v42, %v4128_v42 }
 0xd8c   :  { %v1746_v38 = vsel %vm292_vm1, %v1735_v30, 0.0 }
 0xd8d   :  { %1747 = vadd.xlane.f32.xlu2 %v1746_v38  ;;  %v1721_v37 = vpop.xlane.xlu1 %1720 }
 0xd8e   :  { %v1726_v13 = vmul.f32 %v1721_v37, %v3624_v12 }
 0xd90   :  { %v4135_v17 = vsub.f32 %v4105_v50, %v1726_v13 }
 0xd92   :  { %v1736_v25 = vmul.f32 %v4135_v17, %v4135_v17 }
 0xd94   :  { %v1749_v18 = vsel %vm292_vm1, %v1736_v25, 0.0 }
 0xd95   :  { %1750 = vadd.xlane.f32.xlu0 %v1749_v18 }
 0xdc9   :  { %v1739_v58 = vpop.xlane.xlu2 %1738 }
 0xdca   :  { %v1752_v51 = vmul.f32 %v1739_v58, %v3624_v12 }
 0xdcc   :  { %v1757_v24 = vadd.f32 1e-06, %v1752_v51 }
 0xdce   :  { %3206 = vrsqrt.f32 %v1757_v24  ;;  %vm1768_vm14 = vweird.f32 %v1757_v24 }
 0xdd1   :  { %v1742_v27 = vpop.xlane.xlu0 %1741 }
 0xdd2   :  { %v1753_v49 = vmul.f32 %v1742_v27, %v3624_v12 }
 0xdd4   :  { %v3207_v15 = vpop.eup %3206  ;;  %v1758_v29 = vadd.f32 1e-06, %v1753_v49 }
 0xdd5   :  { %v1763_v31 = vmul.f32 %v3207_v15, %v1757_v24  ;;  %vm1769_vm5 = vweird.f32 %v3207_v15 }
 0xdd6   :  { %3208 = vrsqrt.f32 %v1758_v29  ;;  %vm1770_vm15 = vmor %vm1768_vm14, %vm1769_vm5  ;;  %vm1778_vm3 = vweird.f32 %v1758_v29 }
 0xdd7   :  { %v1764_v2 = vmul.f32 %v3207_v15, %v1763_v31 }
 0xdd9   :  { %v1765_v32 = vmul.f32 0.5, %v1764_v2  ;;  %v1745_v6 = vpop.xlane.xlu1 %1744 }
 0xdda   :  { %v1754_v36 = vmul.f32 %v1745_v6, %v3624_v12 }
 0xddb   :  { %v1766_v8 = vsub.f32 1.5, %v1765_v32 }
 0xddc   :  { %v3209_v10 = vpop.eup %3208  ;;  %v1759_v40 = vadd.f32 1e-06, %v1754_v36 }
 0xddd   :  { %v1767_v14 = vmul.f32 %v3207_v15, %v1766_v8  ;;  %v1773_v43 = vmul.f32 %v3209_v10, %v1758_v29  ;;  %vm1779_vm2 = vweird.f32 %v3209_v10 }
 0xdde   :  { %3210 = vrsqrt.f32 %v1759_v40  ;;  %vm1780_vm10 = vmor %vm1778_vm3, %vm1779_vm2  ;;  %vm1788_vm4 = vweird.f32 %v1759_v40 }
 0xddf   :  { %v1771_v19 = vsel %vm1770_vm15, %v3207_v15, %v1767_v14  ;;  %v1774_v46 = vmul.f32 %v3209_v10, %v1773_v43  ;;  %v1941_v14 = vld [vmem:[%s4770_s20 + $0x30] sm:$0xff]  ;;  %v1940_v43 = vld [vmem:[%s4770_s20 + $0x28] sm:$0xff] }
 0xde0   :  { %v1812_v1 = vmul.f32 %v1771_v19, %v1727_v52  ;;  %v1939_v19 = vld [vmem:[%s4770_s20 + $0x20] sm:$0xff] }
 0xde1   :  { %v1775_v41 = vmul.f32 0.5, %v1774_v46  ;;  %v1938_v46 = vld [vmem:[%s4770_s20 + $0x18] sm:$0xff] }
 0xde2   :  { %v1821_v48 = vmul.f32 %v4148_v45, %v1812_v1  ;;  %v1936_v1 = vld [vmem:[%s4770_s20 + $0x8] sm:$0xff] }
 0xde3   :  { %v1776_v28 = vsub.f32 1.5, %v1775_v41 }
 0xde4   :  { %v3211_v20 = vpop.eup %3210  ;;  %v1830_v56 = vadd.f32 %v4151_v26, %v1821_v48 }
 0xde5   :  { %v1777_v57 = vmul.f32 %v3209_v10, %v1776_v28  ;;  %v1783_v60 = vmul.f32 %v3211_v20, %v1759_v40  ;;  %vm1789_vm11 = vweird.f32 %v3211_v20  ;;  %v1942_v40 = vld [vmem:[%s4770_s20 + $0x38] sm:$0xff] }
 0xde6   :  { %2944 = vmatmul.msk.f32.vlgmr.msra.gmra.mxu2 %vm292_vm1, %v1830_v56  ;;  %vm1790_vm6 = vmor %vm1788_vm4, %vm1789_vm11  ;;  %1966 = vmatpush.msrb.mxu1 %v1942_v40  ;;  %vm2359_vm4 = vcmask 39936  }
 0xde7   :  { %v1781_v62 = vsel %vm1780_vm10, %v3209_v10, %v1777_v57  ;;  %v1784_v54 = vmul.f32 %v3211_v20, %v1783_v60 }
 0xde8   :  { %v1813_v52 = vmul.f32 %v1781_v62, %v4114_v53  ;;  %1967 = vmatpush.msrb.mxu1 %v1941_v14 }
 0xde9   :  { %v1785_v33 = vmul.f32 0.5, %v1784_v54 }
 0xdea   :  { %v1822_v0 = vmul.f32 %v4148_v45, %v1813_v52  ;;  %1968 = vmatpush.msrb.mxu1 %v1940_v43 }
 0xdeb   :  { %v1786_v3 = vsub.f32 1.5, %v1785_v33 }
 0xdec   :  { %v1831_v7 = vadd.f32 %v4151_v26, %v1822_v0  ;;  %1969 = vmatpush.msrb.mxu1 %v1939_v19 }
 0xded   :  { %v1787_v63 = vmul.f32 %v3211_v20, %v1786_v3 }
 0xdee   :  { %2945 = vmatmul.msk.f32.gmra.mxu2 %vm292_vm1, %v1831_v7  ;;  %1970 = vmatpush.msrb.mxu1 %v1938_v46 }
 0xdef   :  { %v1791_v9 = vsel %vm1790_vm6, %v3211_v20, %v1787_v63 }
 0xdf0   :  { %v1814_v44 = vmul.f32 %v1791_v9, %v4121_v5 }
 0xdf2   :  { %v1823_v30 = vmul.f32 %v4148_v45, %v1814_v44 }
 0xdf4   :  { %v1832_v38 = vadd.f32 %v4151_v26, %v1823_v30 }
 0xdf6   :  { %2946 = vmatmul.msk.f32.gmra.mxu2 %vm292_vm1, %v1832_v38 }
 0xe00   :  { %v1748_v53 = vpop.xlane.xlu2 %1747 }
 0xe01   :  { %v1755_v37 = vmul.f32 %v1748_v53, %v3624_v12 }
 0xe03   :  { %v1760_v13 = vadd.f32 1e-06, %v1755_v37 }
 0xe05   :  { %3212 = vrsqrt.f32 %v1760_v13  ;;  %vm1798_vm8 = vweird.f32 %v1760_v13 }
 0xe08   :  { %v1751_v25 = vpop.xlane.xlu0 %1750 }
 0xe09   :  { %v1756_v18 = vmul.f32 %v1751_v25, %v3624_v12 }
 0xe0b   :  { %v3213_v4 = vpop.eup %3212  ;;  %v1761_v21 = vadd.f32 1e-06, %v1756_v18 }
 0xe0c   :  { %v1793_v22 = vmul.f32 %v3213_v4, %v1760_v13  ;;  %vm1799_vm7 = vweird.f32 %v3213_v4 }
 0xe0d   :  { %3214 = vrsqrt.f32 %v1761_v21  ;;  %vm1800_vm9 = vmor %vm1798_vm8, %vm1799_vm7  ;;  %vm1808_vm13 = vweird.f32 %v1761_v21 }
 0xe0e   :  { %v1794_v23 = vmul.f32 %v3213_v4, %v1793_v22 }
 0xe10   :  { %v1795_v5 = vmul.f32 0.5, %v1794_v23 }
 0xe12   :  { %v1796_v58 = vsub.f32 1.5, %v1795_v5 }
 0xe13   :  { %v3215_v51 = vpop.eup %3214 }
 0xe14   :  { %v1797_v24 = vmul.f32 %v3213_v4, %v1796_v58  ;;  %v1803_v27 = vmul.f32 %v3215_v51, %v1761_v21  ;;  %vm1809_vm12 = vweird.f32 %v3215_v51 }
 0xe15   :  { %vm1810_vm5 = vmor %vm1808_vm13, %vm1809_vm12 }
 0xe16   :  { %v1801_v49 = vsel %vm1800_vm9, %v3213_v4, %v1797_v24  ;;  %v1804_v15 = vmul.f32 %v3215_v51, %v1803_v27 }
 0xe17   :  { %v1815_v29 = vmul.f32 %v1801_v49, %v4128_v42 }
 0xe18   :  { %v1805_v31 = vmul.f32 0.5, %v1804_v15 }
 0xe19   :  { %v1824_v12 = vmul.f32 %v4148_v45, %v1815_v29  ;;  %v2139_v29 = vld [vmem:[%s4772_s16 + $0x18] sm:$0xff] }
 0xe1a   :  { %v1806_v2 = vsub.f32 1.5, %v1805_v31  ;;  %2171 = vmatpush.msrb.mxu3 %v2139_v29 }
 0xe1b   :  { %v1833_v32 = vadd.f32 %v4151_v26, %v1824_v12 }
 0xe1c   :  { %v1807_v6 = vmul.f32 %v3215_v51, %v1806_v2 }
 0xe1d   :  { %2947 = vmatmul.msk.f32.gmra.mxu2 %vm292_vm1, %v1833_v32 }
 0xe1e   :  { %v1811_v36 = vsel %vm1810_vm5, %v3215_v51, %v1807_v6 }
 0xe1f   :  { %v1816_v42 = vmul.f32 %v1811_v36, %v4135_v17  ;;  %v1937_v17 = vld [vmem:[%s4770_s20 + $0x10] sm:$0xff] }
 0xe20   :  { %1971 = vmatpush.msrb.mxu1 %v1937_v17 }
 0xe21   :  { %v1825_v8 = vmul.f32 %v4148_v45, %v1816_v42  ;;  %v1935_v45 = vld [vmem:[%s4770_s20] sm:$0xff] }
 0xe22   :  { %1972 = vmatpush.msrb.mxu1 %v1936_v1 }
 0xe23   :  { %v1834_v10 = vadd.f32 %v4151_v26, %v1825_v8  ;;  %v3120_v26 = vld [vmem:[%s4771_s15] ss:$0 sm:$0xff] }
 0xe24   :  { %1973 = vmatpush.msrb.mxu1 %v1935_v45 }
 0xe25   :  { %2948 = vmatmul.msk.f32.gmra.mxu2 %vm292_vm1, %v1834_v10 }
 0xe69   :  { %v1875_v41 = vpop.f32.mrf.mxu2 }
 0xe6a   :  { %v1876_v48 = vadd.f32 %v3120_v26, %v1875_v41 }
 0xe6c   :  { %v1890_v28 = vmul.f32 %v1876_v48, %v1876_v48 }
 0xe6e   :  { %v1895_v20 = vmul.f32 %v1890_v28, %v1876_v48  ;;  %v2138_v28 = vld [vmem:[%s4772_s16 + $0x10] sm:$0xff] }
 0xe6f   :  { %2172 = vmatpush.msrb.mxu3 %v2138_v28 }
 0xe70   :  { %v1900_v56 = vmul.f32 0.044715, %v1895_v20  ;;  %v2137_v20 = vld [vmem:[%s4772_s16 + $0x8] sm:$0xff] }
 0xe71   :  { %v1878_v57 = vpop.f32.mrf.mxu2  ;;  %2173 = vmatpush.msrb.mxu3 %v2137_v20 }
 0xe72   :  { %v1905_v60 = vadd.f32 %v1900_v56, %v1876_v48  ;;  %v1879_v62 = vadd.f32 %v3120_v26, %v1878_v57  ;;  %v2136_v56 = vld [vmem:[%s4772_s16] sm:$0xff] }
 0xe73   :  { %2174 = vmatpush.msrb.mxu3 %v2136_v56  ;;  %v3121_v57 = vld [vmem:[%s4773_s18] ss:$0 sm:$0xff] }
 0xe74   :  { %v1910_v54 = vmul.f32 0.7978846, %v1905_v60  ;;  %v1891_v52 = vmul.f32 %v1879_v62, %v1879_v62 }
 0xe76   :  { %3216 = vtanh.f32 %v1910_v54  ;;  %v1896_v33 = vmul.f32 %v1891_v52, %v1879_v62 }
 0xe78   :  { %v1901_v0 = vmul.f32 0.044715, %v1896_v33 }
 0xe79   :  { %v1881_v3 = vpop.f32.mrf.mxu2 }
 0xe7a   :  { %v1906_v7 = vadd.f32 %v1901_v0, %v1879_v62  ;;  %v1882_v63 = vadd.f32 %v3120_v26, %v1881_v3 }
 0xe7c   :  { %v3217_v9 = vpop.eup %3216  ;;  %v1892_v44 = vmul.f32 %v1882_v63, %v1882_v63  ;;  %v1911_v30 = vmul.f32 0.7978846, %v1906_v7 }
 0xe7d   :  { %v1920_v38 = vadd.f32 1.0, %v3217_v9  ;;  %v2199_v9 = vld [vmem:[%s4774_s22 + $0x18] sm:$0xff] }
 0xe7e   :  { %v1897_v53 = vmul.f32 %v1892_v44, %v1882_v63  ;;  %3218 = vtanh.f32 %v1911_v30 }
 0xe7f   :  { %v1925_v37 = vmul.f32 0.5, %v1920_v38 }
 0xe80   :  { %v1902_v13 = vmul.f32 0.044715, %v1897_v53 }
 0xe81   :  { %v1930_v25 = vmul.f32 %v1925_v37, %v1876_v48 }
 0xe82   :  { %v1907_v18 = vadd.f32 %v1902_v13, %v1882_v63  ;;  %v2197_v13 = vld [vmem:[%s4774_s22 + $0x8] sm:$0xff] }
 0xe83   :  { %2949 = vmatmul.msk.f32.vlgmr.msrb.gmra.mxu1 %vm192_vm0, %v1930_v25  ;;  %v2196_v25 = vld [vmem:[%s4774_s22] sm:$0xff] }
 0xe84   :  { %v3219_v4 = vpop.eup %3218  ;;  %v1912_v21 = vmul.f32 0.7978846, %v1907_v18  ;;  %v3122_v18 = vld [vmem:[%s4775_s23] ss:$0 sm:$0xff] }
 0xe85   :  { %v1921_v22 = vadd.f32 1.0, %v3219_v4 }
 0xe86   :  { %3220 = vtanh.f32 %v1912_v21 }
 0xe87   :  { %v1926_v23 = vmul.f32 0.5, %v1921_v22 }
 0xe89   :  { %v1931_v5 = vmul.f32 %v1926_v23, %v1879_v62 }
 0xe8b   :  { %2950 = vmatmul.msk.f32.gmra.mxu1 %vm192_vm0, %v1931_v5 }
 0xe8c   :  { %v3221_v58 = vpop.eup %3220 }
 0xe8d   :  { %v1922_v51 = vadd.f32 1.0, %v3221_v58 }
 0xe8f   :  { %v1927_v24 = vmul.f32 0.5, %v1922_v51 }
 0xe91   :  { %v1932_v27 = vmul.f32 %v1927_v24, %v1882_v63  ;;  %v2200_v63 = vld [vmem:[%s4774_s22 + $0x20] sm:$0xff] }
 0xe93   :  { %2951 = vmatmul.msk.f32.gmra.mxu1 %vm192_vm0, %v1932_v27 }
 0xea0   :  { %v1884_v49 = vpop.f32.mrf.mxu2 }
 0xea1   :  { %v1885_v15 = vadd.f32 %v3120_v26, %v1884_v49 }
 0xea3   :  { %v1893_v31 = vmul.f32 %v1885_v15, %v1885_v15 }
 0xea5   :  { %v1898_v12 = vmul.f32 %v1893_v31, %v1885_v15 }
 0xea7   :  { %v1903_v2 = vmul.f32 0.044715, %v1898_v12 }
 0xea8   :  { %v1887_v32 = vpop.f32.mrf.mxu2 }
 0xea9   :  { %v1908_v6 = vadd.f32 %v1903_v2, %v1885_v15  ;;  %v1888_v36 = vadd.f32 %v3120_v26, %v1887_v32  ;;  %v4246_v2 = vld [vmem:[%s4776_s26] ss:$0 sm:$0xff] }
 0xeab   :  { %v1894_v42 = vmul.f32 %v1888_v36, %v1888_v36  ;;  %v1913_v8 = vmul.f32 0.7978846, %v1908_v6 }
 0xead   :  { %v1899_v10 = vmul.f32 %v1894_v42, %v1888_v36  ;;  %3222 = vtanh.f32 %v1913_v8 }
 0xeaf   :  { %v1904_v40 = vmul.f32 0.044715, %v1899_v10 }
 0xeb1   :  { %v1909_v14 = vadd.f32 %v1904_v40, %v1888_v36 }
 0xeb3   :  { %v3223_v43 = vpop.eup %3222  ;;  %v1914_v19 = vmul.f32 0.7978846, %v1909_v14 }
 0xeb4   :  { %v1923_v46 = vadd.f32 1.0, %v3223_v43  ;;  %v2254_v43 = vlaneseq }
 0xeb5   :  { %3224 = vtanh.f32 %v1914_v19 }
 0xeb6   :  { %v1928_v17 = vmul.f32 0.5, %v1923_v46 }
 0xeb8   :  { %v1933_v1 = vmul.f32 %v1928_v17, %v1885_v15 }
 0xeba   :  { %2952 = vmatmul.msk.f32.gmra.mxu1 %vm192_vm0, %v1933_v1 }
 0xebb   :  { %v3225_v45 = vpop.eup %3224 }
 0xebc   :  { %v1924_v26 = vadd.f32 1.0, %v3225_v45 }
 0xebe   :  { %v1929_v41 = vmul.f32 0.5, %v1924_v26  ;;  %v2255_v26 = vand.u32 127, %v2254_v43 }
 0xec0   :  { %v1934_v48 = vmul.f32 %v1929_v41, %v1888_v36  ;;  %vm2257_vm14 = vcmp.ge.s32.totalorder %v2255_v26, 3 }
 0xec2   :  { %2953 = vmatmul.msk.f32.gmra.mxu1 %vm192_vm0, %v1934_v48  ;;  %vm2206_vm0 = vcmask 392192  }
 0xf00   :  { %v1975_v60 = vpop.f32.mrf.mxu1 }
 0xf01   :  { %v1990_v62 = vadd.f32 %v1975_v60, %v4085_v34 }
 0xf03   :  { %v4194_v54 = vadd.f32 %v3121_v57, %v1990_v62 }
 0xf05   :  { %2099 = vst.msk [vmem:[%s3542_s17] sm:$0xff] %vm292_vm1, %v4194_v54  ;;  %2959 = vmatmul.msk.f32.vlgmr.msrb.gmra.mxu3 %vm292_vm1, %v4194_v54 }
 0xf08   :  { %v1978_v52 = vpop.f32.mrf.mxu1 }
 0xf09   :  { %v1991_v33 = vadd.f32 %v1978_v52, %v4090_v39  ;;  %v2201_v39 = vld [vmem:[%s4774_s22 + $0x28] sm:$0xff] }
 0xf0a   :  { %2232 = vmatpush.msrb.mxu0 %v2201_v39 }
 0xf0b   :  { %v4202_v0 = vadd.f32 %v3121_v57, %v1991_v33 }
 0xf0c   :  { %2233 = vmatpush.msrb.mxu0 %v2200_v63 }
 0xf0d   :  { %2100 = vst.msk [vmem:[%s3542_s17 + $0x8] sm:$0xff] %vm292_vm1, %v4202_v0  ;;  %2960 = vmatmul.msk.f32.gmra.mxu3 %vm292_vm1, %v4202_v0 }
 0xf0e   :  { %2234 = vmatpush.msrb.mxu0 %v2199_v9 }
 0xf10   :  { %v1981_v34 = vpop.f32.mrf.mxu1 }
 0xf11   :  { %v1992_v3 = vadd.f32 %v1981_v34, %v4095_v55 }
 0xf13   :  { %v4210_v7 = vadd.f32 %v3121_v57, %v1992_v3 }
 0xf15   :  { %2101 = vst.msk [vmem:[%s3542_s17 + $0x10] sm:$0xff] %vm292_vm1, %v4210_v7  ;;  %2961 = vmatmul.msk.f32.gmra.mxu3 %vm292_vm1, %v4210_v7 }
 0xf37   :  { %v1984_v44 = vpop.f32.mrf.mxu1 }
 0xf38   :  { %v1993_v55 = vadd.f32 %v1984_v44, %v4100_v47  ;;  %v2198_v47 = vld [vmem:[%s4774_s22 + $0x10] sm:$0xff] }
 0xf39   :  { %2235 = vmatpush.msrb.mxu0 %v2198_v47 }
 0xf3a   :  { %v4221_v30 = vadd.f32 %v3121_v57, %v1993_v55 }
 0xf3b   :  { %2236 = vmatpush.msrb.mxu0 %v2197_v13 }
 0xf3c   :  { %2102 = vst.msk [vmem:[%s3542_s17 + $0x18] sm:$0xff] %vm292_vm1, %v4221_v30  ;;  %2962 = vmatmul.msk.f32.gmra.mxu3 %vm292_vm1, %v4221_v30 }
 0xf3d   :  { %2237 = vmatpush.msrb.mxu0 %v2196_v25 }
 0xf3f   :  { %v1987_v38 = vpop.f32.mrf.mxu1 }
 0xf40   :  { %v1994_v53 = vadd.f32 %v1987_v38, %v4105_v50 }
 0xf42   :  { %v4229_v37 = vadd.f32 %v3121_v57, %v1994_v53 }
 0xf44   :  { %2103 = vst.msk [vmem:[%s3542_s17 + $0x20] sm:$0xff] %vm292_vm1, %v4229_v37  ;;  %2963 = vmatmul.msk.f32.gmra.mxu3 %vm292_vm1, %v4229_v37  ;;  %vm2256_vm1 = vcmp.eq.s32.totalorder %v2255_v26, 0  ;;  %s3353_s17 = smov 1  }
 0xf45   :  { %vm4255_vm2 = vmor %vm2256_vm1, %vm2257_vm14 }
 0xf88   :  { %v2176_v4 = vpop.f32.mrf.mxu3 }
 0xf89   :  { %v2177_v21 = vadd.f32 %v3122_v18, %v2176_v4 }
 0xf8b   :  { %v2191_v22 = vmax.f32 %v2177_v21, 0.0 }
 0xf8d   :  { %2964 = vmatmul.msk.f32.vlgmr.msrb.gmra.mxu0 %vm2206_vm0, %v2191_v22 }
 0xf90   :  { %v2179_v50 = vpop.f32.mrf.mxu3 }
 0xf91   :  { %v2180_v23 = vadd.f32 %v3122_v18, %v2179_v50 }
 0xf93   :  { %v2192_v5 = vmax.f32 %v2180_v23, 0.0 }
 0xf95   :  { %2965 = vmatmul.msk.f32.gmra.mxu0 %vm2206_vm0, %v2192_v5 }
 0xf98   :  { %v2182_v58 = vpop.f32.mrf.mxu3 }
 0xf99   :  { %v2183_v51 = vadd.f32 %v3122_v18, %v2182_v58 }
 0xf9b   :  { %v2193_v24 = vmax.f32 %v2183_v51, 0.0 }
 0xf9d   :  { %2966 = vmatmul.msk.f32.gmra.mxu0 %vm2206_vm0, %v2193_v24 }
 0xfbf   :  { %v2185_v27 = vpop.f32.mrf.mxu3 }
 0xfc0   :  { %v2186_v49 = vadd.f32 %v3122_v18, %v2185_v27 }
 0xfc2   :  { %v2194_v15 = vmax.f32 %v2186_v49, 0.0 }
 0xfc4   :  { %2967 = vmatmul.msk.f32.gmra.mxu0 %vm2206_vm0, %v2194_v15 }
 0xfc7   :  { %v2188_v29 = vpop.f32.mrf.mxu3 }
 0xfc8   :  { %v2189_v31 = vadd.f32 %v3122_v18, %v2188_v29 }
 0xfca   :  { %v2195_v12 = vmax.f32 %v2189_v31, 0.0 }
 0xfcc   :  { %2968 = vmatmul.msk.f32.gmra.mxu0 %vm2206_vm0, %v2195_v12 }
0x100a   :  { %v2239_v32 = vpop.f32.mrf.mxu0 }
0x100b   :  { %v2240_v6 = vadd.f32 %v4246_v2, %v2239_v32 }
0x100d   :  { %v2969_v36 = vmul.f32 -1.442695, %v2240_v6 }
0x100f   :  { %3226 = vpow2.f32 %v2969_v36 }
0x1012   :  { %v2242_v42 = vpop.f32.mrf.mxu0 }
0x1013   :  { %v2243_v8 = vadd.f32 %v4246_v2, %v2242_v42 }
0x1015   :  { %v3227_v10 = vpop.eup %3226  ;;  %v2970_v40 = vmul.f32 -1.442695, %v2243_v8 }
0x1016   :  { %v2274_v14 = vadd.f32 1.0, %v3227_v10 }
0x1017   :  { %3228 = vpow2.f32 %v2970_v40 }
0x1018   :  { %3230 = vrcp.f32 %v2274_v14  ;;  %v2290_v20 = vand.u32 2147483648, %v2274_v14  ;;  %v2288_v57 = vand.u32 2147483647, %v2274_v14  ;;  %vm2284_vm3 = vweird.f32 %v2274_v14 }
0x101a   :  { %v2245_v19 = vpop.f32.mrf.mxu0  ;;  %v2291_v34 = vor.u32 1.1754944e-38, %v2290_v20  ;;  %vm2289_vm11 = vcmp.eq.f32.partialorder %v2288_v57, 8.507059e+37 }
0x101b   :  { %v4251_v46 = vadd.f32 %v4246_v2, %v2245_v19 }
0x101d   :  { %v3229_v17 = vpop.eup %3228  ;;  %v2971_v1 = vmul.f32 -1.442695, %v4251_v46 }
0x101e   :  { %v3231_v45 = vpop.eup %3230  ;;  %v2275_v41 = vadd.f32 1.0, %v3229_v17 }
0x101f   :  { %v2280_v48 = vmul.f32 %v3231_v45, %v2274_v14  ;;  %3232 = vpow2.f32 %v2971_v1  ;;  %vm2285_vm15 = vweird.f32 %v3231_v45 }
0x1020   :  { %3234 = vrcp.f32 %v2275_v41  ;;  %vm2286_vm10 = vmor %vm2284_vm3, %vm2285_vm15  ;;  %v2305_v38 = vand.u32 2147483648, %v2275_v41  ;;  %v2303_v47 = vand.u32 2147483647, %v2275_v41  ;;  %vm2299_vm7 = vweird.f32 %v2275_v41 }
0x1021   :  { %v2281_v28 = vsub.f32 1.0, %v2280_v48 }
0x1022   :  { %v2306_v18 = vor.u32 1.1754944e-38, %v2305_v38  ;;  %vm2304_vm9 = vcmp.eq.f32.partialorder %v2303_v47, 8.507059e+37 }
0x1023   :  { %v2282_v56 = vmul.f32 %v3231_v45, %v2281_v28 }
0x1025   :  { %v3233_v60 = vpop.eup %3232  ;;  %v2283_v52 = vadd.f32 %v3231_v45, %v2282_v56 }
0x1026   :  { %v3235_v33 = vpop.eup %3234  ;;  %v2276_v3 = vadd.f32 1.0, %v3233_v60 }
0x1027   :  { %v2287_v39 = vsel %vm2286_vm10, %v3231_v45, %v2283_v52  ;;  %v2295_v63 = vmul.f32 %v3235_v33, %v2275_v41  ;;  %vm2300_vm6 = vweird.f32 %v3235_v33  ;;  %v4294_v52 = vld [vmem:[%s4779_s28] sm:$0xff] }
0x1028   :  { %v2292_v9 = vsel %vm2289_vm11, %v2291_v34, %v2287_v39  ;;  %3236 = vrcp.f32 %v2276_v3  ;;  %vm2301_vm8 = vmor %vm2299_vm7, %vm2300_vm6  ;;  %v2320_v5 = vand.u32 2147483648, %v2276_v3  ;;  %v2318_v51 = vand.u32 2147483647, %v2276_v3 }
0x1029   :  { %v4261_v44 = vsel %vm4255_vm2, %v2292_v9, %v2240_v6  ;;  %v2296_v55 = vsub.f32 1.0, %v2295_v63  ;;  %vm2314_vm13 = vweird.f32 %v2276_v3  ;;  %v4306_v9 = vld [vmem:[%s4779_s28 + $0x10] sm:$0xff]  ;;  %vm2381_vm11 = vcmp.gt.f32.partialorder %v4294_v52, 0.5 }
0x102a   :  { %2360 = vst.msk [vmem:[%s3552_s4] sm:$0xff] %vm2359_vm4, %v4261_v44  ;;  %2590 = vrot.lane.b32.xlu1 %v4261_v44, %s3353_s17  ;;  %v2321_v27 = vor.u32 1.1754944e-38, %v2320_v5  ;;  %vm2319_vm0 = vcmp.eq.f32.partialorder %v2318_v51, 8.507059e+37 }
0x102b   :  { %v2297_v53 = vmul.f32 %v3235_v33, %v2296_v55  ;;  %v4309_v55 = vld [vmem:[%s4779_s28 + $0x20] sm:$0xff] }
0x102d   :  { %v2298_v13 = vadd.f32 %v3235_v33, %v2297_v53  ;;  %v3354_v53 = vmov 0  }
0x102e   :  { %v3237_v25 = vpop.eup %3236  ;;  %3065 = vset.pattern.permute.xlu1 %v3354_v53  ;;  %3059 = vset.pattern.permute.xlu0 %v3354_v53 }
0x102f   :  { %v2302_v4 = vsel %vm2301_vm8, %v3235_v33, %v2298_v13  ;;  %v2310_v21 = vmul.f32 %v3237_v25, %v2276_v3  ;;  %vm2315_vm12 = vweird.f32 %v3237_v25  ;;  %v4300_v33 = vld [vmem:[%s4779_s28 + $0x18] sm:$0xff]  ;;  %v4303_v3 = vld [vmem:[%s4779_s28 + $0x8] sm:$0xff] }
0x1030   :  { %v2307_v22 = vsel %vm2304_vm9, %v2306_v18, %v2302_v4  ;;  %vm2316_vm5 = vmor %vm2314_vm13, %vm2315_vm12  ;;  %vm2384_vm6 = vcmp.gt.f32.partialorder %v4300_v33, 0.5  ;;  %vm2382_vm8 = vcmp.gt.f32.partialorder %v4303_v3, 0.5  ;;  %vm2383_vm12 = vcmp.gt.f32.partialorder %v4306_v9, 0.5 }
0x1031   :  { %v4270_v50 = vsel %vm4255_vm2, %v2307_v22, %v2243_v8  ;;  %v2311_v23 = vsub.f32 1.0, %v2310_v21  ;;  %v3356_v3 = vmov 1  }
0x1032   :  { %2361 = vst.msk [vmem:[%s3552_s4 + $0x8] sm:$0xff] %vm2359_vm4, %v4270_v50  ;;  %2592 = vrot.lane.b32.xlu0 %v4270_v50, %s3353_s17  ;;  %v2387_v22 = vsel %vm2382_vm8, %v4270_v50, -1.0  ;;  %3077 = vset.pattern.permute.xlu2 %v3356_v3 }
0x1033   :  { %v2312_v58 = vmul.f32 %v3237_v25, %v2311_v23 }
0x1035   :  { %v2313_v24 = vadd.f32 %v3237_v25, %v2312_v58 }
0x1037   :  { %v2317_v49 = vsel %vm2316_vm5, %v3237_v25, %v2313_v24  ;;  %vm2385_vm5 = vcmp.gt.f32.partialorder %v4309_v55, 0.5  ;;  %v2386_v25 = vsel %vm2381_vm11, %v4261_v44, -1.0 }
0x1038   :  { %v2322_v15 = vsel %vm2319_vm0, %v2321_v27, %v2317_v49  ;;  %vm2124_vm0 = vcmask 7168  }
0x1039   :  { %v4280_v29 = vsel %vm4255_vm2, %v2322_v15, %v4251_v46  ;;  %v2391_v62 = vsel %vm2124_vm0, %v2386_v25, -inf  ;;  %v2392_v27 = vsel %vm2124_vm0, %v2387_v22, -inf }
0x103a   :  { %2362 = vst.msk [vmem:[%s3552_s4 + $0x10] sm:$0xff] %vm2359_vm4, %v4280_v29  ;;  %2594 = vrot.lane.b32.xlu0 %v4280_v29, %s3353_s17  ;;  %v2388_v23 = vsel %vm2383_vm12, %v4280_v29, -1.0 }
0x103b   :  { %v2393_v49 = vsel %vm2124_vm0, %v2388_v23, -inf }
0x1041   :  { %v2248_v31 = vpop.f32.mrf.mxu0 }
0x1042   :  { %v2249_v12 = vadd.f32 %v4246_v2, %v2248_v31 }
0x1044   :  { %v2972_v32 = vmul.f32 -1.442695, %v2249_v12 }
0x1046   :  { %3238 = vpow2.f32 %v2972_v32 }
0x1049   :  { %v2251_v6 = vpop.f32.mrf.mxu0 }
0x104a   :  { %v2252_v36 = vadd.f32 %v4246_v2, %v2251_v6 }
0x104c   :  { %v3239_v42 = vpop.eup %3238  ;;  %v2973_v8 = vmul.f32 -1.442695, %v2252_v36 }
0x104d   :  { %v2277_v10 = vadd.f32 1.0, %v3239_v42  ;;  %v4350_v42 = vshrl.u32 %v2254_v43, 7 }
0x104e   :  { %3240 = vpow2.f32 %v2973_v8 }
0x104f   :  { %3242 = vrcp.f32 %v2277_v10  ;;  %v2335_v1 = vand.u32 2147483648, %v2277_v10  ;;  %v2333_v26 = vand.u32 2147483647, %v2277_v10  ;;  %vm2329_vm14 = vweird.f32 %v2277_v10 }
0x1051   :  { %v2336_v48 = vor.u32 1.1754944e-38, %v2335_v1  ;;  %vm2334_vm3 = vcmp.eq.f32.partialorder %v2333_v26, 8.507059e+37 }
0x1054   :  { %v3241_v40 = vpop.eup %3240 }
0x1055   :  { %v3243_v14 = vpop.eup %3242  ;;  %v2278_v19 = vadd.f32 1.0, %v3241_v40  ;;  %v4353_v40 = vadd.s32 8, %v4350_v42 }
0x1056   :  { %v2325_v46 = vmul.f32 %v3243_v14, %v2277_v10  ;;  %vm2330_vm1 = vweird.f32 %v3243_v14 }
0x1057   :  { %3244 = vrcp.f32 %v2278_v19  ;;  %vm2331_vm15 = vmor %vm2329_vm14, %vm2330_vm1  ;;  %v2350_v34 = vand.u32 2147483648, %v2278_v19  ;;  %v2348_v63 = vand.u32 2147483647, %v2278_v19  ;;  %vm2344_vm7 = vweird.f32 %v2278_v19 }
0x1058   :  { %v2326_v17 = vsub.f32 1.0, %v2325_v46  ;;  %v4359_v46 = vadd.s32 16, %v4350_v42 }
0x1059   :  { %v2351_v47 = vor.u32 1.1754944e-38, %v2350_v34  ;;  %vm2349_vm13 = vcmp.eq.f32.partialorder %v2348_v63, 8.507059e+37 }
0x105a   :  { %v2327_v45 = vmul.f32 %v3243_v14, %v2326_v17  ;;  %v4362_v17 = vadd.s32 24, %v4350_v42 }
0x105c   :  { %v2328_v2 = vadd.f32 %v3243_v14, %v2327_v45 }
0x105d   :  { %v3245_v41 = vpop.eup %3244 }
0x105e   :  { %v2332_v28 = vsel %vm2331_vm15, %v3243_v14, %v2328_v2  ;;  %v2340_v20 = vmul.f32 %v3245_v41, %v2278_v19  ;;  %vm2345_vm10 = vweird.f32 %v3245_v41  ;;  %v4356_v14 = vadd.s32 32, %v4350_v42 }
0x105f   :  { %v2337_v56 = vsel %vm2334_vm3, %v2336_v48, %v2332_v28  ;;  %vm2346_vm9 = vmor %vm2344_vm7, %vm2345_vm10 }
0x1060   :  { %v4291_v57 = vsel %vm4255_vm2, %v2337_v56, %v2249_v12  ;;  %v2341_v60 = vsub.f32 1.0, %v2340_v20 }
0x1061   :  { %2363 = vst.msk [vmem:[%s3552_s4 + $0x18] sm:$0xff] %vm2359_vm4, %v4291_v57  ;;  %v2389_v18 = vsel %vm2384_vm6, %v4291_v57, -1.0 }
0x1062   :  { %v2342_v39 = vmul.f32 %v3245_v41, %v2341_v60  ;;  %v2394_v58 = vsel %vm2124_vm0, %v2389_v18, -inf }
0x1063   :  { %v2398_v15 = vmax.f32 %v2393_v49, %v2394_v58 }
0x1064   :  { %v2343_v38 = vadd.f32 %v3245_v41, %v2342_v39 }
0x1066   :  { %v2347_v13 = vsel %vm2346_vm9, %v3245_v41, %v2343_v38 }
0x1067   :  { %v2352_v4 = vsel %vm2349_vm13, %v2351_v47, %v2347_v13 }
0x1068   :  { %v4326_v21 = vsel %vm4255_vm2, %v2352_v4, %v2252_v36 }
0x1069   :  { %2364 = vst.msk [vmem:[%s3552_s4 + $0x20] sm:$0xff] %vm2359_vm4, %v4326_v21  ;;  %v2390_v5 = vsel %vm2385_vm5, %v4326_v21, -1.0  ;;  %2598 = vrot.lane.b32.xlu2 %v4326_v21, %s3353_s17  ;;  %s4780_s4 = sld [smem:[#allocation6_spill]] }
0x106a   :  { %v2395_v51 = vsel %vm2124_vm0, %v2390_v5, -inf }
0x106b   :  { %v2396_v24 = vmax.f32 %v2391_v62, %v2395_v51  ;;  %v3355_v62 = vmov 0.0  }
0x106d   :  { %v2397_v31 = vmax.f32 %v2396_v24, %v2392_v27 }
0x106f   :  { %v2399_v12 = vmax.f32 %v2397_v31, %v2398_v15  ;;  %v4402_v31 = vld [vmem:[%s4780_s4 + $0x18] sm:$0xff] }
0x1071   :  { %v2400_v32 = vrot.slane %v2399_v12, 4  ;;  %2596 = vrot.lane.b32.xlu2 %v4291_v57, %s3353_s17 }
0x1073   :  { %v2401_v6 = vmax.f32 %v2399_v12, %v2400_v32 }
0x1075   :  { %v2402_v36 = vrot.slane %v2401_v6, 2 }
0x1077   :  { %v2403_v8 = vmax.f32 %v2401_v6, %v2402_v36 }
0x1079   :  { %v2404_v10 = vrot.slane %v2403_v8, 1 }
0x107b   :  { %v2405_v19 = vmax.f32 %v2403_v8, %v2404_v10 }
0x107d   :  { %vm2406_vm2 = vcmp.ge.f32.partialorder %v2386_v25, %v2405_v19  ;;  %vm2407_vm4 = vcmp.ge.f32.partialorder %v2387_v22, %v2405_v19  ;;  %vm2410_vm1 = vcmp.ge.f32.partialorder %v2390_v5, %v2405_v19  ;;  %vm2408_vm14 = vcmp.ge.f32.partialorder %v2388_v23, %v2405_v19  ;;  %v4385_v22 = vld [vmem:[%s4780_s4] sm:$0xff]  ;;  %v4388_v23 = vld [vmem:[%s4780_s4 + $0x8] sm:$0xff]  ;;  %v4391_v5 = vld [vmem:[%s4780_s4 + $0x10] sm:$0xff] }
0x107e   :  { %v2411_v43 = vsel %vm2406_vm2, %v4350_v42, 40  ;;  %v2412_v1 = vsel %vm2407_vm4, %v4353_v40, 40  ;;  %v2415_v45 = vsel %vm2410_vm1, %v4356_v14, 40  ;;  %vm2409_vm15 = vcmp.ge.f32.partialorder %v2389_v18, %v2405_v19 }
0x107f   :  { %v2416_v26 = vsel %vm2124_vm0, %v2411_v43, 2147483647  ;;  %v2420_v2 = vsel %vm2124_vm0, %v2415_v45, 2147483647  ;;  %v2413_v41 = vsel %vm2408_vm14, %v4359_v46, 40  ;;  %v2414_v48 = vsel %vm2409_vm15, %v4362_v17, 40 }
0x1080   :  { %vm2421_vm3 = vcmp.lt.s32.totalorder %v2416_v26, %v2420_v2  ;;  %v2417_v28 = vsel %vm2124_vm0, %v2412_v1, 2147483647  ;;  %v2418_v56 = vsel %vm2124_vm0, %v2413_v41, 2147483647  ;;  %v2419_v60 = vsel %vm2124_vm0, %v2414_v48, 2147483647 }
0x1081   :  { %v2422_v20 = vsel %vm2421_vm3, %v2416_v26, %v2420_v2  ;;  %vm2425_vm7 = vcmp.lt.s32.totalorder %v2418_v56, %v2419_v60 }
0x1082   :  { %vm2423_vm10 = vcmp.lt.s32.totalorder %v2422_v20, %v2417_v28  ;;  %v2426_v39 = vsel %vm2425_vm7, %v2418_v56, %v2419_v60 }
0x1083   :  { %v2424_v34 = vsel %vm2423_vm10, %v2422_v20, %v2417_v28  ;;  %vm2498_vm10 = vcmask 15368  }
0x1084   :  { %vm2427_vm9 = vcmp.lt.s32.totalorder %v2424_v34, %v2426_v39 }
0x1085   :  { %v2428_v63 = vsel %vm2427_vm9, %v2424_v34, %v2426_v39 }
0x1086   :  { %v2429_v38 = vrot.slane %v2428_v63, 4 }
0x1088   :  { %vm2430_vm13 = vcmp.lt.s32.totalorder %v2428_v63, %v2429_v38 }
0x1089   :  { %v2431_v47 = vsel %vm2430_vm13, %v2428_v63, %v2429_v38 }
0x108a   :  { %v2432_v13 = vrot.slane %v2431_v47, 2 }
0x108c   :  { %vm2433_vm2 = vcmp.lt.s32.totalorder %v2431_v47, %v2432_v13 }
0x108d   :  { %v2434_v25 = vsel %vm2433_vm2, %v2431_v47, %v2432_v13 }
0x108e   :  { %v2435_v18 = vrot.slane %v2434_v25, 1 }
0x1090   :  { %vm2436_vm4 = vcmp.lt.s32.totalorder %v2434_v25, %v2435_v18 }
0x1091   :  { %v4374_v4 = vsel %vm2436_vm4, %v2434_v25, %v2435_v18 }
0x1092   :  { %vm2440_vm1 = vcmp.eq.s32.totalorder %v4359_v46, %v4374_v4  ;;  %vm2441_vm14 = vcmp.eq.s32.totalorder %v4362_v17, %v4374_v4  ;;  %vm2438_vm15 = vcmp.eq.s32.totalorder %v4350_v42, %v4374_v4  ;;  %vm2439_vm3 = vcmp.eq.s32.totalorder %v4353_v40, %v4374_v4 }
0x1093   :  { %v2976_v58 = vsel %vm2440_vm1, 1.0, %v3355_v62  ;;  %v2977_v51 = vsel %vm2441_vm14, 1.0, %v3355_v62  ;;  %v2974_v24 = vsel %vm2438_vm15, 1.0, %v3355_v62  ;;  %v2975_v27 = vsel %vm2439_vm3, 1.0, %v3355_v62 }
0x1094   :  { %v4397_v49 = vpack.i.bf16 %v2977_v51, %v2976_v58  ;;  %v4399_v15 = vpack.i.bf16 %v2975_v27, %v2974_v24  ;;  %v2453_v12 = vmul.f32 %v2974_v24, %v4385_v22  ;;  %v2454_v32 = vmul.f32 %v2975_v27, %v4388_v23 }
0x1095   :  { %v2455_v6 = vmul.f32 %v2976_v58, %v4391_v5  ;;  %v2456_v36 = vmul.f32 %v2977_v51, %v4402_v31 }
0x1096   :  { %3067 = vperm.xlu1 %3065, %v4397_v49   ;;  %3061 = vperm.xlu0 %3059, %v4399_v15   ;;  %v2458_v8 = vsel %vm2124_vm0, %v2453_v12, 0.0  ;;  %v2459_v10 = vsel %vm2124_vm0, %v2454_v32, 0.0 }
0x1097   :  { %v2460_v19 = vadd.f32 %v2459_v10, %v2458_v8  ;;  %v2461_v43 = vsel %vm2124_vm0, %v2455_v6, 0.0  ;;  %v2463_v45 = vsel %vm2124_vm0, %v2456_v36, 0.0 }
0x1099   :  { %v2462_v1 = vadd.f32 %v2461_v43, %v2460_v19 }
0x109b   :  { %v4414_v26 = vadd.f32 %v2463_v45, %v2462_v1 }
0x109c   :  { %v2591_v41 = vpop.permute.xlu1 %2590 }
0x109d   :  { %v2605_v20 = vsel %vm2381_vm11, %v2591_v41, -1.0 }
0x109e   :  { %v2610_v34 = vsel %vm2498_vm10, %v2605_v20, -inf  ;;  %3071 = vset.pattern.permute.xlu1 %v3356_v3  ;;  %3104 = vset.pattern.permute.xlu0 %v3356_v3 }
0x10a4   :  { %v2593_v2 = vpop.permute.xlu0 %2592 }
0x10a5   :  { %v2606_v39 = vsel %vm2382_vm8, %v2593_v2, -1.0 }
0x10a6   :  { %v2611_v13 = vsel %vm2498_vm10, %v2606_v39, -inf }
0x10ac   :  { %v2595_v56 = vpop.permute.xlu0 %2594 }
0x10ad   :  { %v2607_v63 = vsel %vm2383_vm12, %v2595_v56, -1.0 }
0x10ae   :  { %v2612_v52 = vsel %vm2498_vm10, %v2607_v63, -inf }
0x10c3   :  { %v2599_v48 = vpop.permute.xlu2 %2598 }
0x10c4   :  { %v2609_v28 = vsel %vm2385_vm5, %v2599_v48, -1.0 }
0x10c5   :  { %v2614_v60 = vsel %vm2498_vm10, %v2609_v28, -inf }
0x10c6   :  { %v2615_v38 = vmax.f32 %v2610_v34, %v2614_v60 }
0x10c8   :  { %v2616_v18 = vmax.f32 %v2615_v38, %v2611_v13 }
0x10cb   :  { %v2597_v47 = vpop.permute.xlu2 %2596 }
0x10cc   :  { %v2608_v55 = vsel %vm2384_vm6, %v2597_v47, -1.0 }
0x10cd   :  { %v2613_v25 = vsel %vm2498_vm10, %v2608_v55, -inf }
0x10ce   :  { %v2617_v58 = vmax.f32 %v2612_v52, %v2613_v25 }
0x10d0   :  { %v2618_v51 = vmax.f32 %v2616_v18, %v2617_v58 }
0x10d2   :  { %v2619_v24 = vrot.slane %v2618_v51, 4 }
0x10d4   :  { %v2620_v9 = vmax.f32 %v2618_v51, %v2619_v24 }
0x10d6   :  { %v2621_v27 = vrot.slane %v2620_v9, 2 }
0x10d8   :  { %v2622_v12 = vmax.f32 %v2620_v9, %v2621_v27 }
0x10da   :  { %v2623_v32 = vrot.slane %v2622_v12, 1 }
0x10dc   :  { %v2624_v33 = vmax.f32 %v2622_v12, %v2623_v32  ;;  %v4460_v12 = vld [vmem:[%s4780_s4 + $0x20] sm:$0xff] }
0x10de   :  { %vm2625_vm11 = vcmp.ge.f32.partialorder %v2605_v20, %v2624_v33  ;;  %vm2626_vm6 = vcmp.ge.f32.partialorder %v2606_v39, %v2624_v33  ;;  %vm2627_vm8 = vcmp.ge.f32.partialorder %v2607_v63, %v2624_v33  ;;  %vm2628_vm12 = vcmp.ge.f32.partialorder %v2608_v55, %v2624_v33 }
0x10df   :  { %vm2629_vm5 = vcmp.ge.f32.partialorder %v2609_v28, %v2624_v33  ;;  %v2630_v6 = vsel %vm2625_vm11, %v4350_v42, 40  ;;  %v2632_v36 = vsel %vm2627_vm8, %v4359_v46, 40  ;;  %v2631_v8 = vsel %vm2626_vm6, %v4353_v40, 40 }
0x10e0   :  { %v2633_v10 = vsel %vm2628_vm12, %v4362_v17, 40  ;;  %v2634_v19 = vsel %vm2629_vm5, %v4356_v14, 40  ;;  %v2635_v43 = vsel %vm2498_vm10, %v2630_v6, 2147483647  ;;  %v2637_v1 = vsel %vm2498_vm10, %v2632_v36, 2147483647 }
0x10e1   :  { %v2638_v45 = vsel %vm2498_vm10, %v2633_v10, 2147483647  ;;  %v2639_v2 = vsel %vm2498_vm10, %v2634_v19, 2147483647  ;;  %v2636_v41 = vsel %vm2498_vm10, %v2631_v8, 2147483647  ;;  %vm2442_vm12 = vcmp.eq.s32.totalorder %v4356_v14, %v4374_v4 }
0x10e2   :  { %vm2640_vm7 = vcmp.lt.s32.totalorder %v2635_v43, %v2639_v2  ;;  %vm2644_vm9 = vcmp.lt.s32.totalorder %v2637_v1, %v2638_v45  ;;  %v2955_v39 = vmul.f32 -1.442695, %v4202_v0 }
0x10e3   :  { %v2641_v48 = vsel %vm2640_vm7, %v2635_v43, %v2639_v2  ;;  %v2645_v20 = vsel %vm2644_vm9, %v2637_v1, %v2638_v45  ;;  %v4474_v1 = vsel %vm2442_vm12, 1.0, %v3355_v62 }
0x10e4   :  { %vm2642_vm13 = vcmp.lt.s32.totalorder %v2641_v48, %v2636_v41  ;;  %3246 = vpow2.f32 %v2955_v39 }
0x10e5   :  { %v2643_v28 = vsel %vm2642_vm13, %v2641_v48, %v2636_v41 }
0x10e6   :  { %vm2646_vm2 = vcmp.lt.s32.totalorder %v2643_v28, %v2645_v20 }
0x10e7   :  { %v2647_v56 = vsel %vm2646_vm2, %v2643_v28, %v2645_v20  ;;  %v2954_v20 = vmul.f32 -1.442695, %v4194_v54  ;;  %vm2539_vm2 = vcmask 23560  }
0x10e8   :  { %v2648_v60 = vrot.slane %v2647_v56, 4 }
0x10ea   :  { %vm2649_vm4 = vcmp.lt.s32.totalorder %v2647_v56, %v2648_v60  ;;  %v3247_v18 = vpop.eup %3246 }
0x10eb   :  { %v2650_v34 = vsel %vm2649_vm4, %v2647_v56, %v2648_v60  ;;  %v2020_v24 = vadd.f32 1.0, %v3247_v18  ;;  %v2958_v56 = vmul.f32 -1.442695, %v4229_v37  ;;  %vm2555_vm4 = vcmask 39960  }
0x10ec   :  { %v2651_v63 = vrot.slane %v2650_v34, 2 }
0x10ed   :  { %3248 = vrcp.f32 %v2020_v24  ;;  %vm2044_vm7 = vweird.f32 %v2020_v24 }
0x10ee   :  { %vm2652_vm1 = vcmp.lt.s32.totalorder %v2650_v34, %v2651_v63 }
0x10ef   :  { %v2653_v38 = vsel %vm2652_vm1, %v2650_v34, %v2651_v63 }
0x10f0   :  { %v2654_v47 = vrot.slane %v2653_v38, 1 }
0x10f2   :  { %vm2655_vm14 = vcmp.lt.s32.totalorder %v2653_v38, %v2654_v47 }
0x10f3   :  { %v2656_v55 = vsel %vm2655_vm14, %v2653_v38, %v2654_v47  ;;  %v3249_v45 = vpop.eup %3248  ;;  %v2956_v47 = vmul.f32 -1.442695, %v4210_v7 }
0x10f4   :  { %vm2659_vm15 = vcmp.eq.s32.totalorder %v4359_v46, %v2656_v55  ;;  %vm2660_vm3 = vcmp.eq.s32.totalorder %v4362_v17, %v2656_v55  ;;  %vm2657_vm11 = vcmp.eq.s32.totalorder %v4350_v42, %v2656_v55  ;;  %vm2658_vm6 = vcmp.eq.s32.totalorder %v4353_v40, %v2656_v55 }
0x10f5   :  { %v2981_v13 = vsel %vm2659_vm15, 1.0, %v3355_v62  ;;  %v2982_v52 = vsel %vm2660_vm3, 1.0, %v3355_v62  ;;  %v2979_v0 = vsel %vm2657_vm11, 1.0, %v3355_v62  ;;  %v2980_v25 = vsel %vm2658_vm6, 1.0, %v3355_v62 }
0x10f6   :  { %v3078_v58 = vpack.i.bf16 %v2982_v52, %v2981_v13  ;;  %v3089_v51 = vpack.i.bf16 %v2980_v25, %v2979_v0  ;;  %vm2661_vm8 = vcmp.eq.s32.totalorder %v4356_v14, %v2656_v55  ;;  %v2712_v46 = vmul.f32 %v2979_v0, %v4385_v22 }
0x10f7   :  { %v2713_v42 = vmul.f32 %v2980_v25, %v4388_v23  ;;  %v2983_v40 = vsel %vm2661_vm8, 1.0, %v3355_v62  ;;  %v2714_v17 = vmul.f32 %v2981_v13, %v4391_v5  ;;  %v2715_v3 = vmul.f32 %v2982_v52, %v4402_v31 }
0x10f8   :  { %3079 = vperm.xlu2 %3077, %v3078_v58   ;;  %3090 = vrot.lane.b32.xlu0 %v3089_v51, %s3357_s1  ;;  %v2717_v9 = vsel %vm2498_vm10, %v2712_v46, 0.0  ;;  %v2716_v33 = vmul.f32 %v2983_v40, %v4460_v12  ;;  %v2040_v2 = vmul.f32 %v3249_v45, %v2020_v24  ;;  %vm2045_vm5 = vweird.f32 %v3249_v45 }
0x10f9   :  { %3073 = vperm.xlu1 %3071, %v3089_v51   ;;  %v2718_v27 = vsel %vm2498_vm10, %v2713_v42, 0.0  ;;  %v2720_v6 = vsel %vm2498_vm10, %v2714_v17, 0.0  ;;  %v2722_v8 = vsel %vm2498_vm10, %v2715_v3, 0.0  ;;  %v2050_v62 = vand.u32 2147483648, %v2020_v24  ;;  %vm2046_vm9 = vmor %vm2044_vm7, %vm2045_vm5 }
0x10fa   :  { %v2719_v32 = vadd.f32 %v2718_v27, %v2717_v9  ;;  %v2724_v19 = vsel %vm2498_vm10, %v2716_v33, 0.0  ;;  %v2041_v14 = vsub.f32 1.0, %v2040_v2  ;;  %v2957_v13 = vmul.f32 -1.442695, %v4221_v30 }
0x10fb   :  { %v2051_v48 = vor.u32 1.1754944e-38, %v2050_v62 }
0x10fc   :  { %v2721_v36 = vadd.f32 %v2720_v6, %v2719_v32  ;;  %v2042_v4 = vmul.f32 %v3249_v45, %v2041_v14 }
0x10fe   :  { %v2723_v10 = vadd.f32 %v2722_v8, %v2721_v36 }
0x1100   :  { %2749 = vperm.xlu2 %3077, %v2983_v40   ;;  %v4468_v43 = vadd.f32 %v2724_v19, %v2723_v10  ;;  %3095 = vrot.lane.b32.xlu0 %v4397_v49, %s3353_s17  ;;  %v2048_v49 = vand.u32 2147483647, %v2020_v24 }
0x1101   :  { %3083 = vset.pattern.permute.xlu1 %v3354_v53  ;;  %v2043_v53 = vadd.f32 %v3249_v45, %v2042_v4 }
0x1102   :  { %2531 = vperm.xlu1 %3083, %v4474_v1   ;;  %vm2049_vm13 = vcmp.eq.f32.partialorder %v2048_v49, 8.507059e+37 }
0x1103   :  { %v2047_v41 = vsel %vm2046_vm9, %v3249_v45, %v2043_v53  ;;  %vm2130_vm9 = vcmask 15360  }
0x1104   :  { %v2052_v28 = vsel %vm2049_vm13, %v2051_v48, %v2047_v41 }
0x1108   :  { %3085 = vrot.lane.b32.xlu2 %v4399_v15, %s3353_s17  ;;  %v2915_v15 = vmul.f32 -1.442695, %v3911_v61  ;;  %v3062_v60 = vpop.permute.xlu0 %3061  ;;  %v3068_v63 = vpop.permute.xlu1 %3067 }
0x1109   :  { %v3064_v34 = vunpack.i.h.bf16 %v3062_v60  ;;  %v3063_v39 = vunpack.i.l.bf16 %v3062_v60  ;;  %v3069_v18 = vunpack.i.l.bf16 %v3068_v63 }
0x110a   :  { %3100 = vrot.lane.b32.xlu1 %v3078_v58, %s3357_s1  ;;  %3250 = vpow2.f32 %v2915_v15 }
0x110b   :  { %3252 = vpow2.f32 %v2954_v20  ;;  %v2535_v52 = vmul.f32 %v3064_v34, %v4270_v50  ;;  %v2534_v61 = vmul.f32 %v3063_v39, %v4261_v44  ;;  %v2536_v32 = vmul.f32 %v3069_v18, %v4280_v29 }
0x110c   :  { %3254 = vpow2.f32 %v2958_v56 }
0x110d   :  { %3256 = vpow2.f32 %v2956_v47  ;;  %v2541_v7 = vsel %vm2539_vm2, %v2535_v52, 0.0  ;;  %v2540_v58 = vsel %vm2539_vm2, %v2534_v61, 0.0  ;;  %v2557_v46 = vsel %vm2555_vm4, %v2535_v52, 0.0 }
0x110e   :  { %3258 = vpow2.f32 %v2957_v13  ;;  %v2556_v42 = vsel %vm2555_vm4, %v2534_v61, 0.0  ;;  %v2542_v27 = vadd.f32 %v2541_v7, %v2540_v58 }
0x110f   :  { %v2558_v33 = vadd.f32 %v2557_v46, %v2556_v42 }
0x1110   :  { %2685 = vrot.lane.b32.xlu2 %v2983_v40, %s3357_s1  ;;  %v3251_v38 = vpop.eup %3250  ;;  %v3070_v40 = vunpack.i.h.bf16 %v3068_v63 }
0x1111   :  { %v3253_v55 = vpop.eup %3252  ;;  %v4491_v0 = vadd.f32 1.0, %v3251_v38 }
0x1112   :  { %2486 = vrot.lane.b32.xlu1 %v4474_v1, %s3353_s17  ;;  %v3255_v37 = vpop.eup %3254  ;;  %v4493_v25 = vadd.f32 1.0, %v3253_v55  ;;  %v2537_v19 = vmul.f32 %v3070_v40, %v4291_v57 }
0x1113   :  { %v4497_v51 = vadd.f32 1.0, %v3255_v37  ;;  %3260 = vrcp.f32 %v4491_v0  ;;  %v3257_v10 = vpop.eup %3256  ;;  %vm1145_vm1 = vweird.f32 %v4491_v0 }
0x1114   :  { %3262 = vrcp.f32 %v4493_v25  ;;  %v3259_v45 = vpop.eup %3258  ;;  %v4521_v56 = vadd.f32 1.0, %v3257_v10  ;;  %v2545_v38 = vsel %vm2539_vm2, %v2537_v19, 0.0  ;;  %v2561_v61 = vsel %vm2555_vm4, %v2537_v19, 0.0 }
0x1115   :  { %3264 = vrcp.f32 %v4497_v51  ;;  %v4525_v63 = vadd.f32 1.0, %v3259_v45  ;;  %vm2029_vm6 = vweird.f32 %v4493_v25  ;;  %vm2089_vm8 = vweird.f32 %v4497_v51 }
0x1116   :  { %3266 = vrcp.f32 %v4521_v56 }
0x1117   :  { %3268 = vrcp.f32 %v4525_v63 }
0x1119   :  { %v4516_v41 = vpop.eup %3260 }
0x111a   :  { %2111 = vrot.lane.b32.xlu1 %v2052_v28, %s3353_s17  ;;  %v4519_v20 = vpop.eup %3262  ;;  %vm1146_vm14 = vweird.f32 %v4516_v41 }
0x111b   :  { %v4529_v52 = vpop.eup %3264  ;;  %vm2030_vm15 = vweird.f32 %v4519_v20  ;;  %vm4575_vm11 = vmor %vm1145_vm1, %vm1146_vm14  ;;  %vm2074_vm14 = vweird.f32 %v4525_v63 }
0x111c   :  { %vm2090_vm3 = vweird.f32 %v4529_v52  ;;  %vm4586_vm12 = vmor %vm2029_vm6, %vm2030_vm15  ;;  %vm2059_vm15 = vweird.f32 %v4521_v56 }
0x111d   :  { %vm4596_vm7 = vmor %vm2089_vm8, %vm2090_vm3 }
0x1152   :  { %v3080_v54 = vpop.permute.xlu2 %3079 }
0x1153   :  { %v3081_v30 = vunpack.i.l.bf16 %v3080_v54  ;;  %v3082_v24 = vunpack.i.h.bf16 %v3080_v54 }
0x1155   :  { %v2754_v6 = vmul.f32 %v3081_v30, %v4280_v29  ;;  %v2755_v2 = vmul.f32 %v3082_v24, %v4291_v57  ;;  %v2543_v29 = vsel %vm2539_vm2, %v2536_v32, 0.0 }
0x1156   :  { %v2544_v48 = vadd.f32 %v2543_v29, %v2542_v27 }
0x1157   :  { %v2760_v57 = vsel %vm2539_vm2, %v2754_v6, 0.0  ;;  %v2775_v60 = vsel %vm2555_vm4, %v2754_v6, 0.0  ;;  %v2762_v47 = vsel %vm2539_vm2, %v2755_v2, 0.0  ;;  %v2777_v54 = vsel %vm2555_vm4, %v2755_v2, 0.0 }
0x1158   :  { %v2546_v58 = vadd.f32 %v2545_v38, %v2544_v48 }
0x115a   :  { %v2750_v14 = vpop.permute.xlu2 %2749 }
0x115b   :  { %v2756_v34 = vmul.f32 %v2750_v14, %v4326_v21  ;;  %v4548_v14 = vpop.eup %3266 }
0x115c   :  { %v4550_v48 = vpop.eup %3268  ;;  %vm2060_vm1 = vweird.f32 %v4548_v14 }
0x115d   :  { %v2779_v46 = vsel %vm2555_vm4, %v2756_v34, 0.0 }
0x116b   :  { %v3074_v17 = vpop.permute.xlu1 %3073 }
0x116c   :  { %v3076_v3 = vunpack.i.h.bf16 %v3074_v17  ;;  %v3075_v9 = vunpack.i.l.bf16 %v3074_v17  ;;  %v2764_v17 = vsel %vm2539_vm2, %v2756_v34, 0.0 }
0x116e   :  { %v2753_v36 = vmul.f32 %v3076_v3, %v4270_v50  ;;  %v2752_v8 = vmul.f32 %v3075_v9, %v4261_v44  ;;  %v2559_v50 = vsel %vm2555_vm4, %v2536_v32, 0.0  ;;  %v2025_v32 = vmul.f32 %v4519_v20, %v4493_v25 }
0x116f   :  { %v2560_v28 = vadd.f32 %v2559_v50, %v2558_v33 }
0x1170   :  { %v2758_v4 = vsel %vm2539_vm2, %v2753_v36, 0.0  ;;  %v2773_v53 = vsel %vm2555_vm4, %v2753_v36, 0.0  ;;  %v2757_v62 = vsel %vm2539_vm2, %v2752_v8, 0.0  ;;  %v2772_v49 = vsel %vm2555_vm4, %v2752_v8, 0.0 }
0x1171   :  { %v2759_v44 = vadd.f32 %v2758_v4, %v2757_v62  ;;  %v2774_v15 = vadd.f32 %v2773_v53, %v2772_v49  ;;  %v2562_v30 = vadd.f32 %v2561_v61, %v2560_v28  ;;  %v2085_v8 = vmul.f32 %v4529_v52, %v4497_v51 }
0x1172   :  { %v2026_v29 = vsub.f32 1.0, %v2025_v32  ;;  %v2070_v61 = vmul.f32 %v4550_v48, %v4525_v63  ;;  %v2035_v32 = vand.u32 2147483648, %v4493_v25 }
0x1173   :  { %v2761_v39 = vadd.f32 %v2760_v57, %v2759_v44  ;;  %v2776_v55 = vadd.f32 %v2775_v60, %v2774_v15  ;;  %v2086_v49 = vsub.f32 1.0, %v2085_v8 }
0x1174   :  { %v2532_v13 = vpop.permute.xlu1 %2531  ;;  %v2027_v38 = vmul.f32 %v4519_v20, %v2026_v29 }
0x1175   :  { %v2763_v37 = vadd.f32 %v2762_v47, %v2761_v39  ;;  %v2538_v18 = vmul.f32 %v2532_v13, %v4326_v21  ;;  %v2778_v7 = vadd.f32 %v2777_v54, %v2776_v55  ;;  %v1141_v21 = vmul.f32 %v4516_v41, %v4491_v0 }
0x1176   :  { %v2087_v13 = vmul.f32 %v4529_v52, %v2086_v49 }
0x1177   :  { %v2547_v42 = vsel %vm2539_vm2, %v2538_v18, 0.0  ;;  %v2563_v40 = vsel %vm2555_vm4, %v2538_v18, 0.0  ;;  %v2780_v9 = vadd.f32 %v2779_v46, %v2778_v7  ;;  %v2765_v27 = vadd.f32 %v2764_v17, %v2763_v37 }
0x1178   :  { %v2548_v24 = vadd.f32 %v2547_v42, %v2546_v58  ;;  %v2564_v3 = vadd.f32 %v2563_v40, %v2562_v30  ;;  %v1142_v62 = vsub.f32 1.0, %v1141_v21  ;;  %v1149_v37 = vand.u32 2147483647, %v4491_v0 }
0x1179   :  { %v2781_v36 = vrot.slane %v2780_v9, 4  ;;  %v2766_v10 = vrot.slane %v2765_v27, 4  ;;  %v2055_v18 = vmul.f32 %v4548_v14, %v4521_v56  ;;  %v1151_v46 = vand.u32 2147483648, %v4491_v0 }
0x117a   :  { %v2549_v33 = vrot.slane %v2548_v24, 4  ;;  %v2565_v6 = vrot.slane %v2564_v3, 4  ;;  %v1143_v39 = vmul.f32 %v4516_v41, %v1142_v62  ;;  %v2095_v21 = vand.u32 2147483648, %v4497_v51 }
0x117b   :  { %v2782_v2 = vadd.f32 %v2781_v36, %v2780_v9  ;;  %v2767_v53 = vadd.f32 %v2766_v10, %v2765_v27  ;;  %v2071_v9 = vsub.f32 1.0, %v2070_v61  ;;  %v2033_v0 = vand.u32 2147483647, %v4493_v25 }
0x117c   :  { %v2550_v19 = vadd.f32 %v2549_v33, %v2548_v24  ;;  %v4546_v45 = vpop.permute.xlu1 %3100  ;;  %v2566_v4 = vadd.f32 %v2565_v6, %v2564_v3  ;;  %v1144_v40 = vadd.f32 %v4516_v41, %v1143_v39  ;;  %v2088_v24 = vadd.f32 %v4529_v52, %v2087_v13 }
0x117d   :  { %v2783_v44 = vrot.slane %v2782_v2, 2  ;;  %v2768_v28 = vrot.slane %v2767_v53, 2  ;;  %v2028_v3 = vadd.f32 %v4519_v20, %v2027_v38  ;;  %v2056_v33 = vsub.f32 1.0, %v2055_v18 }
0x117e   :  { %v2551_v50 = vrot.slane %v2550_v19, 2  ;;  %v2567_v60 = vrot.slane %v2566_v4, 2  ;;  %v2093_v6 = vand.u32 2147483647, %v4497_v51  ;;  %v1148_v8 = vsel %vm4575_vm11, %v4516_v41, %v1144_v40  ;;  %vm2061_vm11 = vmor %vm2059_vm15, %vm2060_vm1 }
0x117f   :  { %v2784_v57 = vadd.f32 %v2783_v44, %v2782_v2  ;;  %v2769_v34 = vadd.f32 %v2768_v28, %v2767_v53  ;;  %vm1150_vm5 = vcmp.eq.f32.partialorder %v1149_v37, 8.507059e+37  ;;  %v2092_v2 = vsel %vm4596_vm7, %v4529_v52, %v2088_v24  ;;  %v3086_v37 = vpop.permute.xlu2 %3085 }
0x1180   :  { %v2552_v15 = vadd.f32 %v2551_v50, %v2550_v19  ;;  %v2568_v17 = vadd.f32 %v2567_v60, %v2566_v4  ;;  %v1152_v19 = vor.u32 1.1754944e-38, %v1151_v46  ;;  %v2032_v25 = vsel %vm4586_vm12, %v4519_v20, %v2028_v3 }
0x1181   :  { %v2785_v47 = vrot.slane %v2784_v57, 1  ;;  %v2770_v54 = vrot.slane %v2769_v34, 1  ;;  %v2072_v41 = vmul.f32 %v4550_v48, %v2071_v9  ;;  %v2096_v4 = vor.u32 1.1754944e-38, %v2095_v21 }
0x1182   :  { %v2553_v55 = vrot.slane %v2552_v15, 1  ;;  %v2569_v51 = vrot.slane %v2568_v17, 1  ;;  %v2036_v53 = vor.u32 1.1754944e-38, %v2035_v32  ;;  %v2057_v62 = vmul.f32 %v4548_v14, %v2056_v33 }
0x1183   :  { %v2786_v58 = vadd.f32 %v2785_v47, %v2784_v57  ;;  %v2771_v42 = vadd.f32 %v2770_v54, %v2769_v34  ;;  %v1153_v29 = vsel %vm1150_vm5, %v1152_v19, %v1148_v8  ;;  %vm2094_vm13 = vcmp.eq.f32.partialorder %v2093_v6, 8.507059e+37 }
0x1184   :  { %v4561_v7 = vpop.permute.xlu1 %2486  ;;  %v2554_v30 = vadd.f32 %v2553_v55, %v2552_v15  ;;  %vm2034_vm2 = vcmp.eq.f32.partialorder %v2033_v0, 8.507059e+37  ;;  %v2097_v49 = vsel %vm2094_vm13, %v2096_v4, %v2092_v2  ;;  %v2570_v28 = vadd.f32 %v2569_v51, %v2568_v17 }
0x1185   :  { %2796 = vrot.lane.b32.xlu1 %v2786_v58, %s3357_s1  ;;  %2788 = vrot.lane.b32.xlu0 %v2771_v42, %s3357_s1  ;;  %v2037_v52 = vsel %vm2034_vm2, %v2036_v53, %v2032_v25  ;;  %v2073_v20 = vadd.f32 %v4550_v48, %v2072_v41  ;;  %vm2075_vm4 = vweird.f32 %v4550_v48  ;;  %v2058_v57 = vadd.f32 %v4548_v14, %v2057_v62 }
0x1186   :  { %2572 = vrot.lane.b32.xlu2 %v2554_v30, %s3357_s1  ;;  %v2080_v15 = vand.u32 2147483648, %v4525_v63  ;;  %v2065_v60 = vand.u32 2147483648, %v4521_v56  ;;  %v2078_v34 = vand.u32 2147483647, %v4525_v63  ;;  %v2063_v39 = vand.u32 2147483647, %v4521_v56  ;;  %vm2076_vm3 = vmor %vm2074_vm14, %vm2075_vm4  ;;  %v3091_v63 = vpop.permute.xlu0 %3090 }
0x1187   :  { %v2077_v38 = vsel %vm2076_vm3, %v4550_v48, %v2073_v20  ;;  %v2062_v47 = vsel %vm2061_vm11, %v4548_v14, %v2058_v57  ;;  %v3088_v56 = vunpack.i.h.bf16 %v3086_v37  ;;  %v3087_v58 = vunpack.i.l.bf16 %v3086_v37 }
0x1188   :  { %v2081_v55 = vor.u32 1.1754944e-38, %v2080_v15  ;;  %v2066_v13 = vor.u32 1.1754944e-38, %v2065_v60  ;;  %vm2079_vm6 = vcmp.eq.f32.partialorder %v2078_v34, 8.507059e+37  ;;  %vm2064_vm8 = vcmp.eq.f32.partialorder %v2063_v39, 8.507059e+37 }
0x1189   :  { %v2494_v48 = vmul.f32 %v3088_v56, %v4388_v23  ;;  %v2493_v14 = vmul.f32 %v3087_v58, %v4385_v22  ;;  %v2914_v42 = vmul.f32 -1.442695, %v3906_v35  ;;  %v2497_v21 = vmul.f32 %v4561_v7, %v4460_v12 }
0x118a   :  { %v2082_v61 = vsel %vm2079_vm6, %v2081_v55, %v2077_v38  ;;  %v2067_v54 = vsel %vm2064_vm8, %v2066_v13, %v2062_v47  ;;  %v2457_v32 = vmul.f32 %v4474_v1, %v4460_v12  ;;  %v2917_v35 = vmul.f32 -1.442695, %v3921_v11  ;;  %v2686_v38 = vpop.permute.xlu2 %2685 }
0x118b   :  { %v2500_v40 = vsel %vm2498_vm10, %v2494_v48, 0.0  ;;  %v2499_v17 = vsel %vm2498_vm10, %v2493_v14, 0.0  ;;  %3270 = vpow2.f32 %v2914_v42  ;;  %v2506_v36 = vsel %vm2498_vm10, %v2497_v21, 0.0 }
0x118c   :  { %v2112_v50 = vpop.permute.xlu1 %2111  ;;  %v2501_v9 = vadd.f32 %v2500_v40, %v2499_v17  ;;  %v2465_v8 = vsel %vm2124_vm0, %v2457_v32, 0.0  ;;  %3272 = vpow2.f32 %v2917_v35  ;;  %v3093_v25 = vunpack.i.h.bf16 %v3091_v63 }
0x118d   :  { %v2126_v44 = vsel %vm2124_vm0, %v1153_v29, %v2112_v50  ;;  %2117 = vrot.lane.b32.xlu1 %v2097_v49, %s3353_s17  ;;  %2580 = vrot.lane.b32.xlu0 %v2570_v28, %s3357_s1  ;;  %v2466_v51 = vadd.f32 %v2465_v8, %v4414_v26  ;;  %v3092_v1 = vunpack.i.l.bf16 %v3091_v63  ;;  %v3102_v4 = vunpack.i.l.bf16 %v4546_v45 }
0x118e   :  { %2132 = vst.msk [vmem:[%s3547_s27 + $0x8] sm:$0xff] %vm2130_vm9, %v2126_v44  ;;  %2109 = vrot.lane.b32.xlu2 %v2037_v52, %s3353_s17  ;;  %v3096_v18 = vpop.permute.xlu0 %3095  ;;  %v2693_v62 = vmul.f32 %v3093_v25, %v4388_v23  ;;  %v2918_v28 = vmul.f32 -1.442695, %v3926_v16  ;;  %v3103_v15 = vunpack.i.h.bf16 %v4546_v45  ;;  %v2916_v37 = vmul.f32 -1.442695, %v3916_v59 }
0x118f   :  { %v3097_v30 = vunpack.i.l.bf16 %v3096_v18  ;;  %v3098_v24 = vunpack.i.h.bf16 %v3096_v18  ;;  %v2467_v7 = vrot.slane %v2466_v51, 4  ;;  %v2692_v29 = vmul.f32 %v3092_v1, %v4385_v22 }
0x1190   :  { %v2694_v44 = vmul.f32 %v3102_v4, %v4391_v5  ;;  %v2698_v20 = vsel %vm2124_vm0, %v2693_v62, 0.0  ;;  %v2726_v32 = vrot.slane %v4468_v43, 4  ;;  %vm2804_vm6 = vcmask 1040384  }
0x1191   :  { %v2495_v46 = vmul.f32 %v3097_v30, %v4391_v5  ;;  %v2496_v27 = vmul.f32 %v3098_v24, %v4402_v31  ;;  %v3271_v0 = vpop.eup %3270  ;;  %v2468_v53 = vadd.f32 %v2467_v7, %v2466_v51  ;;  %v2697_v57 = vsel %vm2124_vm0, %v2692_v29, 0.0 }
0x1192   :  { %v4645_v2 = vadd.f32 1.0, %v3271_v0  ;;  %v3273_v11 = vpop.eup %3272  ;;  %v2700_v22 = vsel %vm2124_vm0, %v2694_v44, 0.0  ;;  %v2699_v34 = vadd.f32 %v2698_v20, %v2697_v57  ;;  %v2695_v5 = vmul.f32 %v3103_v15, %v4402_v31 }
0x1193   :  { %v2502_v3 = vsel %vm2498_vm10, %v2495_v46, 0.0  ;;  %v2504_v6 = vsel %vm2498_vm10, %v2496_v27, 0.0  ;;  %v4651_v26 = vadd.f32 1.0, %v3273_v11  ;;  %v2469_v52 = vrot.slane %v2468_v53, 2 }
0x1194   :  { %v2503_v33 = vadd.f32 %v2502_v3, %v2501_v9  ;;  %3274 = vrcp.f32 %v4645_v2  ;;  %v2701_v47 = vadd.f32 %v2700_v22, %v2699_v34  ;;  %v2702_v45 = vsel %vm2124_vm0, %v2695_v5, 0.0 }
0x1195   :  { %2113 = vrot.lane.b32.xlu0 %v2067_v54, %s3353_s17  ;;  %3276 = vrcp.f32 %v4651_v26  ;;  %v2470_v39 = vadd.f32 %v2469_v52, %v2468_v53  ;;  %v1136_v59 = vand.u32 2147483648, %v4645_v2  ;;  %vm1130_vm12 = vweird.f32 %v4645_v2 }
0x1196   :  { %2115 = vrot.lane.b32.xlu2 %v2082_v61, %s3353_s17  ;;  %v2505_v10 = vadd.f32 %v2504_v6, %v2503_v33  ;;  %3278 = vpow2.f32 %v2918_v28  ;;  %v2696_v61 = vmul.f32 %v2686_v38, %v4460_v12  ;;  %v2703_v18 = vadd.f32 %v2702_v45, %v2701_v47 }
0x1197   :  { %v2471_v54 = vrot.slane %v2470_v39, 1  ;;  %3280 = vpow2.f32 %v2916_v37  ;;  %v1134_v21 = vand.u32 2147483647, %v4645_v2  ;;  %v1137_v8 = vor.u32 1.1754944e-38, %v1136_v59 }
0x1198   :  { %v2507_v19 = vadd.f32 %v2506_v36, %v2505_v10  ;;  %v2704_v31 = vsel %vm2124_vm0, %v2696_v61, 0.0  ;;  %v1181_v11 = vand.u32 2147483648, %v4651_v26  ;;  %vm1175_vm2 = vweird.f32 %v4651_v26 }
0x1199   :  { %v2472_v48 = vadd.f32 %v2471_v54, %v2470_v39  ;;  %v2705_v42 = vadd.f32 %v2704_v31, %v2703_v18  ;;  %vm1135_vm7 = vcmp.eq.f32.partialorder %v1134_v21, 8.507059e+37  ;;  %v1179_v4 = vand.u32 2147483647, %v4651_v26 }
0x119a   :  { %v2508_v41 = vrot.slane %v2507_v19, 4  ;;  %v3275_v49 = vpop.eup %3274  ;;  %vm2806_vm8 = vcmask 25600  }
0x119b   :  { %v1126_v23 = vmul.f32 %v3275_v49, %v4645_v2  ;;  %v3277_v13 = vpop.eup %3276  ;;  %vm1131_vm10 = vweird.f32 %v3275_v49  ;;  %v2706_v33 = vrot.slane %v2705_v42, 4  ;;  %v2727_v2 = vadd.f32 %v2726_v32, %v4468_v43 }
0x119c   :  { %v2509_v50 = vadd.f32 %v2508_v41, %v2507_v19  ;;  %v3279_v56 = vpop.eup %3278  ;;  %v1171_v30 = vmul.f32 %v3277_v13, %v4651_v26  ;;  %vm1132_vm5 = vmor %vm1130_vm12, %vm1131_vm10  ;;  %vm1176_vm13 = vweird.f32 %v3277_v13  ;;  %vm1180_vm1 = vcmp.eq.f32.partialorder %v1179_v4, 8.507059e+37 }
0x119d   :  { %v1127_v55 = vsub.f32 1.0, %v1126_v23  ;;  %v4667_v46 = vadd.f32 1.0, %v3279_v56  ;;  %v3281_v0 = vpop.eup %3280  ;;  %v2707_v19 = vadd.f32 %v2706_v33, %v2705_v42  ;;  %vm1177_vm4 = vmor %vm1175_vm2, %vm1176_vm13  ;;  %v2728_v62 = vrot.slane %v2727_v2, 2 }
0x119e   :  { %v2510_v60 = vrot.slane %v2509_v50, 2  ;;  %v1172_v3 = vsub.f32 1.0, %v1171_v30  ;;  %v4678_v7 = vadd.f32 1.0, %v3281_v0 }
0x119f   :  { %v1128_v58 = vmul.f32 %v3275_v49, %v1127_v55  ;;  %3282 = vrcp.f32 %v4667_v46  ;;  %v2708_v53 = vrot.slane %v2707_v19, 2  ;;  %v2729_v52 = vadd.f32 %v2728_v62, %v2727_v2 }
0x11a0   :  { %v2511_v16 = vadd.f32 %v2510_v60, %v2509_v50  ;;  %v1173_v6 = vmul.f32 %v3277_v13, %v1172_v3  ;;  %3284 = vrcp.f32 %v4678_v7  ;;  %v1182_v50 = vor.u32 1.1754944e-38, %v1181_v11 }
0x11a1   :  { %v1129_v24 = vadd.f32 %v3275_v49, %v1128_v58  ;;  %v2709_v28 = vadd.f32 %v2708_v53, %v2707_v19  ;;  %v2730_v60 = vrot.slane %v2729_v52, 1  ;;  %vm1190_vm15 = vweird.f32 %v4667_v46 }
0x11a2   :  { %v2512_v63 = vrot.slane %v2511_v16, 1  ;;  %v1174_v1 = vadd.f32 %v3277_v13, %v1173_v6  ;;  %v1194_v45 = vand.u32 2147483647, %v4667_v46  ;;  %vm1160_vm12 = vweird.f32 %v4678_v7 }
0x11a3   :  { %v1133_v35 = vsel %vm1132_vm5, %v3275_v49, %v1129_v24  ;;  %v2710_v15 = vrot.slane %v2709_v28, 1  ;;  %v2731_v39 = vadd.f32 %v2730_v60, %v2729_v52  ;;  %v1166_v24 = vand.u32 2147483648, %v4678_v7 }
0x11a4   :  { %v2513_v14 = vadd.f32 %v2512_v63, %v2511_v16  ;;  %v1138_v10 = vsel %vm1135_vm7, %v1137_v8, %v1133_v35  ;;  %v1178_v43 = vsel %vm1177_vm4, %v3277_v13, %v1174_v1  ;;  %v1196_v13 = vand.u32 2147483648, %v4667_v46 }
0x11a5   :  { %v3283_v41 = vpop.eup %3282  ;;  %v1183_v44 = vsel %vm1180_vm1, %v1182_v50, %v1178_v43  ;;  %v2711_v5 = vadd.f32 %v2710_v15, %v2709_v28  ;;  %vm1195_vm11 = vcmp.eq.f32.partialorder %v1194_v45, 8.507059e+37  ;;  %v1164_v3 = vand.u32 2147483647, %v4678_v7 }
0x11a6   :  { %v1186_v29 = vmul.f32 %v3283_v41, %v4667_v46  ;;  %v4691_v26 = vpop.eup %3284  ;;  %vm1191_vm14 = vweird.f32 %v3283_v41  ;;  %v1197_v56 = vor.u32 1.1754944e-38, %v1196_v13 }
0x11a7   :  { %v1156_v23 = vmul.f32 %v4691_v26, %v4678_v7  ;;  %vm1192_vm3 = vmor %vm1190_vm15, %vm1191_vm14  ;;  %vm1161_vm10 = vweird.f32 %v4691_v26 }
0x11a8   :  { %v1187_v57 = vsub.f32 1.0, %v1186_v29  ;;  %vm4715_vm5 = vmor %vm1160_vm12, %vm1161_vm10 }
0x11a9   :  { %v1157_v61 = vsub.f32 1.0, %v1156_v23 }
0x11aa   :  { %v1188_v22 = vmul.f32 %v3283_v41, %v1187_v57 }
0x11ab   :  { %v1158_v58 = vmul.f32 %v4691_v26, %v1157_v61 }
0x11ac   :  { %v1189_v38 = vadd.f32 %v3283_v41, %v1188_v22 }
0x11ae   :  { %v1193_v37 = vsel %vm1192_vm3, %v3283_v41, %v1189_v38 }
0x11af   :  { %v1198_v31 = vsel %vm1195_vm11, %v1197_v56, %v1193_v37 }
0x11e0   :  { %v2573_v12 = vpop.permute.xlu2 %2572 }
0x11e1   :  { %v2575_v40 = vadd.f32 %v2573_v12, %v2472_v48  ;;  %v2577_v17 = vadd.f32 %v2573_v12, %v2513_v14 }
0x11e3   :  { %v2576_v9 = vmul.f32 0.25, %v2575_v40  ;;  %v2578_v27 = vmul.f32 0.25, %v2577_v17  ;;  %v1159_v40 = vadd.f32 %v4691_v26, %v1158_v58 }
0x11e5   :  { %v4675_v36 = vsel %vm2124_vm0, %v2576_v9, %v2578_v27 }
0x11e8   :  { %v2110_v51 = vpop.permute.xlu2 %2109 }
0x11e9   :  { %v2125_v25 = vsel %vm2124_vm0, %v1138_v10, %v2110_v51 }
0x11ea   :  { %2131 = vst.msk [vmem:[%s3547_s27] sm:$0xff] %vm2130_vm9, %v2125_v25 }
0x11f0   :  { %v2116_v49 = vpop.permute.xlu2 %2115 }
0x11f1   :  { %v2128_v20 = vsel %vm2124_vm0, %v1183_v44, %v2116_v49 }
0x11f2   :  { %2134 = vst.msk [vmem:[%s3547_s27 + $0x18] sm:$0xff] %vm2130_vm9, %v2128_v20 }
0x11f7   :  { %v2797_v34 = vpop.permute.xlu1 %2796  ;;  %v2789_v16 = vpop.permute.xlu0 %2788 }
0x11f8   :  { %v2791_v47 = vadd.f32 %v2789_v16, %v2711_v5  ;;  %v2793_v55 = vadd.f32 %v2789_v16, %v2731_v39 }
0x11fa   :  { %v2792_v54 = vmul.f32 0.25, %v2791_v47  ;;  %v2794_v63 = vmul.f32 0.25, %v2793_v55 }
0x11fc   :  { %v2799_v18 = vsel %vm2124_vm0, %v2792_v54, %v2794_v63 }
0x11fd   :  { %v2800_v30 = vsel %vm2130_vm9, %v2799_v18, %v2797_v34 }
0x11fe   :  { %v2802_v14 = vrot.slane %v2800_v30, 7 }
0x11ff   :  { %v2118_v48 = vpop.permute.xlu1 %2117  ;;  %v2581_v42 = vpop.permute.xlu0 %2580 }
0x1200   :  { %v2129_v46 = vsel %vm2124_vm0, %v1198_v31, %v2118_v48  ;;  %v2584_v12 = vsel %vm2130_vm9, %v4675_v36, %v2581_v42 }
0x1201   :  { %2135 = vst.msk [vmem:[%s3547_s27 + $0x20] sm:$0xff] %vm2130_vm9, %v2129_v46  ;;  %v2805_v17 = vsel %vm2804_vm6, %v2584_v12, %v2802_v14 }
0x1202   :  { %2807 = vst.msk [vmem:[#allocation2] sm:$0x3] %vm2806_vm8, %v2805_v17 }
0x1203   :  { %3309 = shalt.err (!%p3306_p4)
}
0x1204   :  { %2824 = dma.vmem_to_hbm [thread:$0]  %s2820_s7, 32, %s2822_s10, [#allocation3]   ;;  %v1163_v9 = vsel %vm4715_vm5, %v4691_v26, %v1159_v40  ;;  %v1167_v27 = vor.u32 1.1754944e-38, %v1166_v24  ;;  %vm1165_vm7 = vcmp.eq.f32.partialorder %v1164_v3, 8.507059e+37 }
0x1206   :  { %v1168_v21 = vsel %vm1165_vm7, %v1167_v27, %v1163_v9 }
0x1207   :  { %v2114_v32 = vpop.permute.xlu0 %2113 }
0x1208   :  { %v2127_v33 = vsel %vm2124_vm0, %v1168_v21, %v2114_v32 }
0x1209   :  { %2133 = vst.msk [vmem:[%s3547_s27 + $0x10] sm:$0xff] %vm2130_vm9, %v2127_v33 }
0x120a   :  { %3310 = dma.done.wait [#allocation3], 32  }
0x120b   :  { %3311 = vsyncadd [#allocation3], 4294967264 }
0x120c   :  { %2835 = vsyncpa [#allocation3], 1 }

</bundles_post_ra>
